<compile_context>
chip_gen: v5e
topology: v5e:2x2
jax: 0.10.0
libtpu: 0.0.40
codegen_flags: <defaults>
</compile_context>

<pallas_src>
import jax
import jax.numpy as jnp
from jax.experimental import pallas as pl
from jax.experimental.pallas import tpu as pltpu

HIDDEN = 256


# --------------------------------------------------------------------------
# Kernel
# --------------------------------------------------------------------------
def generator_kernel(z_ref, w1_ref, b1_ref, w2_ref, b2_ref, out_ref):
    # Hidden layer: bf16 MXU matmul with f32 accumulation, bias + LeakyReLU in f32.
    z = z_ref[...].astype(jnp.bfloat16)                 # in-kernel cast (free)
    h = jnp.dot(z, w1_ref[...], preferred_element_type=jnp.float32)
    h = h + b1_ref[...]                                 # (TB, 256) + (1, 256)
    h = jnp.maximum(h, 0.1 * h)                         # LeakyReLU(0.1)

    # Output layer: bf16 MXU matmul with f32 accumulation, bias + tanh in f32.
    o = jnp.dot(h.astype(jnp.bfloat16), w2_ref[...],
                preferred_element_type=jnp.float32)
    o = o + b2_ref[...]                                 # (TB, img_dim) + (1, img_dim)
    out_ref[...] = jnp.tanh(o).astype(out_ref.dtype)


# --------------------------------------------------------------------------
# Wrapper
# --------------------------------------------------------------------------
def prepare_params(w1, b1, w2, b2):
    """One-time parameter prep (do NOT call per forward).

    Weights are stored (in_features, out_features), i.e. transposed relative
    to PyTorch's (out, in). Matmul weights are cast to bf16 (MXU inputs);
    biases stay f32 rows for f32 bias-add in the kernel.
    """
    return (w1.astype(jnp.bfloat16), b1.astype(jnp.float32),
            w2.astype(jnp.bfloat16), b2.astype(jnp.float32))


def pick_batch_tile(B, *, max_tb=256):
    """Per-generation batch tile.

    v5e/v6e have 1 TensorCore -> one big tile (fewer serial grid steps).
    v7x has 2 TensorCores -> keep the grid a multiple of 2 so the 'parallel'
    batch axis actually shards across both cores.
    """
    try:
        kind = jax.devices()[0].device_kind.lower()
    except Exception:  # pragma: no cover - interpret/CPU fallback
        kind = ""
    n_tc = 2 if "v7" in kind else 1
    tb = min(max_tb, max(1, -(-B // n_tc)))
    tb = max(8, ((tb + 7) // 8) * 8)       # sublane multiple
    return tb


def generator_forward(z, w1_bf, b1, w2_bf, b2, *, tb=None,
                      out_dtype=jnp.float32):
    """z: (B, z_dim) f32 -> (B, img_dim) out_dtype.

    Takes the *prepared* params from `prepare_params` (bf16 weights, f32 bias
    rows). No padding, no post-kernel slice, no wrapper-side casts.
    """
    B, z_dim = z.shape
    hidden = w1_bf.shape[1]
    img_dim = w2_bf.shape[1]
    assert w1_bf.shape == (z_dim, hidden)
    assert b1.shape == (1, hidden)
    assert w2_bf.shape == (hidden, img_dim)
    assert b2.shape == (1, img_dim)

    if tb is None:
        tb = pick_batch_tile(B)
    n_tiles = pl.cdiv(B, tb)   # ragged last tile handled by Pallas edge masking

    cost = pl.CostEstimate(
        flops=2 * B * (z_dim * hidden + hidden * img_dim),
        transcendentals=B * img_dim,
        bytes_accessed=(z.size * z.dtype.itemsize
                        + w1_bf.size * w1_bf.dtype.itemsize
                        + b1.size * b1.dtype.itemsize
                        + w2_bf.size * w2_bf.dtype.itemsize
                        + b2.size * b2.dtype.itemsize
                        + B * img_dim * jnp.dtype(out_dtype).itemsize),
    )

    return pl.pallas_call(
        generator_kernel,
        out_shape=jax.ShapeDtypeStruct((B, img_dim), out_dtype),
        grid_spec=pltpu.PrefetchScalarGridSpec(
            num_scalar_prefetch=0,
            grid=(n_tiles,),
            in_specs=[
                pl.BlockSpec((tb, z_dim), lambda i: (i, 0)),        # z tile (f32)
                pl.BlockSpec((z_dim, hidden), lambda i: (0, 0)),    # w1 resident
                pl.BlockSpec((1, hidden), lambda i: (0, 0)),        # b1 resident
                pl.BlockSpec((hidden, img_dim), lambda i: (0, 0)),  # w2 resident
                pl.BlockSpec((1, img_dim), lambda i: (0, 0)),       # b2 resident
            ],
            out_specs=pl.BlockSpec((tb, img_dim), lambda i: (i, 0)),
        ),
        compiler_params=pltpu.CompilerParams(
            dimension_semantics=("parallel",)),
        cost_estimate=cost,
    )(z, w1_bf, b1, w2_bf, b2)


# --------------------------------------------------------------------------
# Init / references
# --------------------------------------------------------------------------
def init_params(key, z_dim, img_dim, hidden=HIDDEN):
    """Deterministic init mimicking nn.Linear's U(-1/sqrt(fan_in), 1/sqrt(fan_in))."""
    k1, k2, k3, k4 = jax.random.split(key, 4)
    lim1 = 1.0 / jnp.sqrt(z_dim)
    lim2 = 1.0 / jnp.sqrt(hidden)
    w1 = jax.random.uniform(k1, (z_dim, hidden), jnp.float32, -lim1, lim1)
    b1 = jax.random.uniform(k2, (1, hidden), jnp.float32, -lim1, lim1)
    w2 = jax.random.uniform(k3, (hidden, img_dim), jnp.float32, -lim2, lim2)
    b2 = jax.random.uniform(k4, (1, img_dim), jnp.float32, -lim2, lim2)
    return w1, b1, w2, b2


def reference_forward_bf16(z, w1, b1, w2, b2):
    """Reference matching the kernel's precision (bf16 MXU inputs, f32 acc)."""
    h = jnp.dot(z.astype(jnp.bfloat16), w1.astype(jnp.bfloat16),
                preferred_element_type=jnp.float32) + b1
    h = jnp.maximum(h, 0.1 * h)
    o = jnp.dot(h.astype(jnp.bfloat16), w2.astype(jnp.bfloat16),
                preferred_element_type=jnp.float32) + b2
    return jnp.tanh(o)


def reference_forward_f32(z, w1, b1, w2, b2):
    """Full-f32 reference of the original module semantics (sanity check)."""
    h = z @ w1 + b1
    h = jnp.where(h >= 0.0, h, 0.1 * h)
    return jnp.tanh(h @ w2 + b2)


# --------------------------------------------------------------------------
# Demo / self-test
# --------------------------------------------------------------------------
if __name__ == "__main__":
    # MNIST-style generator. B=256 exercises the batch-tiled grid:
    # grid=(1,) on v5e/v6e (tb=256), grid=(2,) on v7x (tb=128, one per TC).
    B, Z_DIM, IMG_DIM = 256, 64, 784

    key = jax.random.PRNGKey(0)
    kz, kp = jax.random.split(key)
    z = jax.random.normal(kz, (B, Z_DIM), jnp.float32)
    w1, b1, w2, b2 = init_params(kp, Z_DIM, IMG_DIM)

    # One-time param prep (hoisted out of the forward path).
    w1_bf, b1_p, w2_bf, b2_p = prepare_params(w1, b1, w2, b2)

    out = generator_forward(z, w1_bf, b1_p, w2_bf, b2_p)
    out = jax.block_until_ready(out)
    assert out.shape == (B, IMG_DIM)
    assert out.dtype == jnp.float32

    # Exact-precision check against a bf16-matmul reference.
    ref_bf16 = reference_forward_bf16(z, w1, b1, w2, b2)
    assert jnp.allclose(out, ref_bf16, atol=1e-4, rtol=1e-4)

    # Semantic sanity check against the full-f32 PyTorch-equivalent math
    # (loose tolerance accounts for bf16 MXU inputs).
    ref_f32 = reference_forward_f32(z, w1, b1, w2, b2)
    assert jnp.allclose(out, ref_f32, atol=3e-2, rtol=3e-2)

    print("KERNEL_OK")
</pallas_src>

<mosaic_0001>
module attributes {stable_mosaic.version = 11 : i64} {
  func.func @generator_kernel(%arg0: i32, %arg1: memref<256x64xf32, #tpu.memory_space<vmem>>, %arg2: memref<64x256xbf16, #tpu.memory_space<vmem>>, %arg3: memref<1x256xf32, #tpu.memory_space<vmem>>, %arg4: memref<256x784xbf16, #tpu.memory_space<vmem>>, %arg5: memref<1x784xf32, #tpu.memory_space<vmem>>, %arg6: memref<256x784xf32, #tpu.memory_space<vmem>>) attributes {dimension_semantics = [#tpu.dimension_semantics<parallel>], iteration_bounds = array<i64: 1>, scalar_prefetch = 0 : i64, scratch_operands = 0 : i64, tpu.core_type = #tpu.core_type<tc>, window_params = [{transform_indices = @transform_0, window_bounds = array<i64: 256, 64>}, {pipeline_mode = #tpu.pipeline_mode<synchronous>, transform_indices = @transform_1, window_bounds = array<i64: 64, 256>}, {pipeline_mode = #tpu.pipeline_mode<synchronous>, transform_indices = @transform_2, window_bounds = array<i64: 1, 256>}, {pipeline_mode = #tpu.pipeline_mode<synchronous>, transform_indices = @transform_3, window_bounds = array<i64: 256, 784>}, {pipeline_mode = #tpu.pipeline_mode<synchronous>, transform_indices = @transform_4, window_bounds = array<i64: 1, 784>}, {transform_indices = @transform_5, window_bounds = array<i64: 256, 784>}]} {
    %c0 = arith.constant 0 : index
    %c0_0 = arith.constant 0 : index
    %0 = vector.load %arg1[%c0, %c0_0] : memref<256x64xf32, #tpu.memory_space<vmem>>, vector<256x64xf32>
    %1 = arith.truncf %0 : vector<256x64xf32> to vector<256x64xbf16>
    %c0_1 = arith.constant 0 : index
    %c0_2 = arith.constant 0 : index
    %2 = vector.load %arg2[%c0_1, %c0_2] : memref<64x256xbf16, #tpu.memory_space<vmem>>, vector<64x256xbf16>
    %cst = arith.constant dense<0.000000e+00> : vector<256x256xf32>
    %3 = tpu.matmul %1, %2, %cst {dimension_numbers = #tpu.dot_dimension_numbers<[1], [0], [0], [1], [0, 0, 1, 1], [], []>} : vector<256x64xbf16>, vector<64x256xbf16>, vector<256x256xf32> -> vector<256x256xf32>
    %c0_3 = arith.constant 0 : index
    %c0_4 = arith.constant 0 : index
    %4 = vector.load %arg3[%c0_3, %c0_4] : memref<1x256xf32, #tpu.memory_space<vmem>>, vector<1x256xf32>
    %5 = vector.broadcast %4 : vector<1x256xf32> to vector<256x256xf32>
    %6 = arith.addf %3, %5 : vector<256x256xf32>
    %cst_5 = arith.constant 1.000000e-01 : f32
    %7 = vector.broadcast %cst_5 : f32 to vector<256x256xf32>
    %8 = arith.mulf %7, %6 : vector<256x256xf32>
    %9 = arith.maximumf %6, %8 : vector<256x256xf32>
    %10 = arith.truncf %9 : vector<256x256xf32> to vector<256x256xbf16>
    %c0_6 = arith.constant 0 : index
    %c0_7 = arith.constant 0 : index
    %11 = vector.load %arg4[%c0_6, %c0_7] : memref<256x784xbf16, #tpu.memory_space<vmem>>, vector<256x784xbf16>
    %cst_8 = arith.constant dense<0.000000e+00> : vector<256x784xf32>
    %12 = tpu.matmul %10, %11, %cst_8 {dimension_numbers = #tpu.dot_dimension_numbers<[1], [0], [0], [1], [0, 0, 1, 1], [], []>} : vector<256x256xbf16>, vector<256x784xbf16>, vector<256x784xf32> -> vector<256x784xf32>
    %c0_9 = arith.constant 0 : index
    %c0_10 = arith.constant 0 : index
    %13 = vector.load %arg5[%c0_9, %c0_10] : memref<1x784xf32, #tpu.memory_space<vmem>>, vector<1x784xf32>
    %14 = vector.broadcast %13 : vector<1x784xf32> to vector<256x784xf32>
    %15 = arith.addf %12, %14 : vector<256x784xf32>
    %16 = math.tanh %15 : vector<256x784xf32>
    %c0_11 = arith.constant 0 : index
    %c0_12 = arith.constant 0 : index
    %17 = vector.load %arg6[%c0_11, %c0_12] : memref<256x784xf32, #tpu.memory_space<vmem>>, vector<256x784xf32>
    tpu.vector_store %arg6[%c0_11, %c0_12], %16 {strides = array<i32>} : memref<256x784xf32, #tpu.memory_space<vmem>>, vector<256x784xf32>,
    return
  }
  func.func @transform_0(%arg0: i32) -> (i32, i32) {
    %c0_i32 = arith.constant 0 : i32
    %c0_i32_0 = arith.constant 0 : i32
    return %arg0, %c0_i32 : i32, i32
  }
  func.func @transform_1(%arg0: i32) -> (i32, i32) {
    %c0_i32 = arith.constant 0 : i32
    %c0_i32_0 = arith.constant 0 : i32
    %c0_i32_1 = arith.constant 0 : i32
    return %c0_i32, %c0_i32_0 : i32, i32
  }
  func.func @transform_2(%arg0: i32) -> (i32, i32) {
    %c0_i32 = arith.constant 0 : i32
    %c0_i32_0 = arith.constant 0 : i32
    %c0_i32_1 = arith.constant 0 : i32
    return %c0_i32, %c0_i32_0 : i32, i32
  }
  func.func @transform_3(%arg0: i32) -> (i32, i32) {
    %c0_i32 = arith.constant 0 : i32
    %c0_i32_0 = arith.constant 0 : i32
    %c0_i32_1 = arith.constant 0 : i32
    return %c0_i32, %c0_i32_0 : i32, i32
  }
  func.func @transform_4(%arg0: i32) -> (i32, i32) {
    %c0_i32 = arith.constant 0 : i32
    %c0_i32_0 = arith.constant 0 : i32
    %c0_i32_1 = arith.constant 0 : i32
    return %c0_i32, %c0_i32_0 : i32, i32
  }
  func.func @transform_5(%arg0: i32) -> (i32, i32) {
    %c0_i32 = arith.constant 0 : i32
    %c0_i32_0 = arith.constant 0 : i32
    return %arg0, %c0_i32 : i32, i32
  }
}

</mosaic_0001>

<bundles_post_ra>
// kernel: tpu_custom_call.1
= control target key start
LH: loop header
LB: loop body
LE: loop exit
PB: predicated region body
PF: predicated region fallthrough
CT: control target
= control target key end

     0   :  { %vm123_vm0 = vcmask 523264   ;;  %vm2706_vm1 = vcmask 130048   ;;  %s6215_s1 = inlined_call_operand.vmem [shape: bf16[64,256], index: 1, kind: input, shape index: {}]   ;;  %s6216_s0 = inlined_call_operand.vmem [shape: f32[256,64], index: 0, kind: input, shape index: {}]   ;;  %s6217_s3 = inlined_call_operand.vmem [shape: bf16[256,784], index: 3, kind: input, shape index: {}]   ;;  %s6218_s2 = inlined_call_operand.vmem [shape: f32[1,256], index: 2, kind: input, shape index: {}]   ;;  %s6219_s4 = inlined_call_operand.vmem [shape: f32[1,784], index: 4, kind: input, shape index: {}]   ;;  %s6220_s5 = inlined_call_operand.vmem [shape: f32[256,784], index: 5, kind: output, shape index: {}]  }
   0x1   :  { %v2955_v0 = vld [vmem:[%s6215_s1 + $0x30] sm:$0xf]  ;;  %v3448_v1 = vld [vmem:[%s6215_s1 + $0x34] sm:$0xf0]  ;;  %v3447_v2 = vld [vmem:[%s6215_s1 + $0x34] sm:$0xf] }
   0x2   :  { %v2956_v3 = vor.u32 %v3448_v1, %v2955_v0  ;;  %v2957_v4 = vld [vmem:[%s6215_s1 + $0x38] sm:$0xf0]  ;;  %v2947_v5 = vld [vmem:[%s6215_s1 + $0x20] sm:$0xf]  ;;  %v3446_v6 = vld [vmem:[%s6215_s1 + $0x24] sm:$0xf0] }
   0x3   :  { %v2960_v7 = vor.u32 %v3447_v2, %v2957_v4  ;;  %v3445_v8 = vld [vmem:[%s6215_s1 + $0x24] sm:$0xf]  ;;  %v2949_v9 = vld [vmem:[%s6215_s1 + $0x28] sm:$0xf0]  ;;  %v2948_v10 = vor.u32 %v3446_v6, %v2947_v5  ;;  %v2939_v12 = vld [vmem:[%s6215_s1 + $0x10] sm:$0xf] }
   0x4   :  { %176 = vmatpush.bf16.msra.mxu0 %v2956_v3  ;;  %v2952_v11 = vor.u32 %v3445_v8, %v2949_v9  ;;  %v3444_v13 = vld [vmem:[%s6215_s1 + $0x14] sm:$0xf0]  ;;  %v3443_v14 = vld [vmem:[%s6215_s1 + $0x14] sm:$0xf]  ;;  %v2941_v15 = vld [vmem:[%s6215_s1 + $0x18] sm:$0xf0] }
   0x5   :  { %265 = vmatpush.bf16.msra.mxu1 %v2960_v7  ;;  %v2940_v16 = vor.u32 %v3444_v13, %v2939_v12  ;;  %v2944_v17 = vor.u32 %v3443_v14, %v2941_v15  ;;  %v2931_v18 = vld [vmem:[%s6215_s1] sm:$0xf]  ;;  %v3442_v19 = vld [vmem:[%s6215_s1 + $0x4] sm:$0xf0]  ;;  %v3441_v20 = vld [vmem:[%s6215_s1 + $0x4] sm:$0xf] }
   0x6   :  { %v2933_v21 = vld [vmem:[%s6215_s1 + $0x8] sm:$0xf0]  ;;  %v2932_v22 = vor.u32 %v3442_v19, %v2931_v18  ;;  %v21_v23 = vld [vmem:[%s6216_s0] sm:$0xff]  ;;  %v23_v27 = vld [vmem:[%s6216_s0 + $0x10] sm:$0xff] }
   0x7   :  { %v22_v24 = vld [vmem:[%s6216_s0 + $0x8] sm:$0xff]  ;;  %v2936_v25 = vor.u32 %v3441_v20, %v2933_v21  ;;  %v24_v28 = vld [vmem:[%s6216_s0 + $0x18] sm:$0xff]  ;;  %v25_v30 = vld [vmem:[%s6216_s0 + $0x20] sm:$0xff] }
   0x8   :  { %177 = vmatpush.bf16.msra.mxu0 %v2948_v10  ;;  %v53_v26 = vpack.c.bf16 %v22_v24, %v21_v23  ;;  %v54_v29 = vpack.c.bf16 %v24_v28, %v23_v27  ;;  %v26_v31 = vld [vmem:[%s6216_s0 + $0x28] sm:$0xff]  ;;  %v27_v33 = vld [vmem:[%s6216_s0 + $0x30] sm:$0xff]  ;;  %v28_v34 = vld [vmem:[%s6216_s0 + $0x38] sm:$0xff] }
   0x9   :  { %266 = vmatpush.bf16.msra.mxu1 %v2952_v11  ;;  %v55_v32 = vpack.c.bf16 %v26_v31, %v25_v30  ;;  %v56_v35 = vpack.c.bf16 %v28_v34, %v27_v33  ;;  %v29_v36 = vld [vmem:[%s6216_s0 + $0x40] sm:$0xff]  ;;  %v30_v37 = vld [vmem:[%s6216_s0 + $0x48] sm:$0xff]  ;;  %v31_v45 = vld [vmem:[%s6216_s0 + $0x50] sm:$0xff] }
   0xa   :  { %v57_v38 = vpack.c.bf16 %v30_v37, %v29_v36  ;;  %v3191_v39 = vld [vmem:[%s6217_s3 + $0x188] sm:$0xf]  ;;  %v3501_v40 = vld [vmem:[%s6217_s3 + $0x1a0] sm:$0xf0]  ;;  %v32_v46 = vld [vmem:[%s6216_s0 + $0x58] sm:$0xff] }
   0xb   :  { %v3415_v41 = vld [vmem:[%s6217_s3 + $0x348] sm:$0xf]  ;;  %v3192_v42 = vor.u32 %v3501_v40, %v3191_v39  ;;  %v3557_v43 = vld [vmem:[%s6217_s3 + $0x360] sm:$0xf0]  ;;  %v58_v47 = vpack.c.bf16 %v32_v46, %v31_v45  ;;  %v3163_v48 = vld [vmem:[%s6217_s3 + $0x150] sm:$0xf] }
   0xc   :  { %178 = vmatpush.bf16.msra.mxu0 %v2940_v16  ;;  %v3416_v44 = vor.u32 %v3557_v43, %v3415_v41  ;;  %v3494_v49 = vld [vmem:[%s6217_s3 + $0x168] sm:$0xf0]  ;;  %v3387_v50 = vld [vmem:[%s6217_s3 + $0x310] sm:$0xf]  ;;  %v3135_v53 = vld [vmem:[%s6217_s3 + $0x118] sm:$0xf] }
   0xd   :  { %267 = vmatpush.bf16.msra.mxu1 %v2944_v17  ;;  %1230 = vmatpush.bf16.msra.mxu2 %v3192_v42  ;;  %v3164_v51 = vor.u32 %v3494_v49, %v3163_v48  ;;  %v3550_v52 = vld [vmem:[%s6217_s3 + $0x328] sm:$0xf0]  ;;  %v3487_v54 = vld [vmem:[%s6217_s3 + $0x130] sm:$0xf0]  ;;  %v3359_v56 = vld [vmem:[%s6217_s3 + $0x2d8] sm:$0xf] }
   0xe   :  { %1319 = vmatpush.bf16.msra.mxu3 %v3416_v44  ;;  %v3388_v55 = vor.u32 %v3550_v52, %v3387_v50  ;;  %v3543_v57 = vld [vmem:[%s6217_s3 + $0x2f0] sm:$0xf0]  ;;  %v3136_v58 = vor.u32 %v3487_v54, %v3135_v53  ;;  %v3107_v60 = vld [vmem:[%s6217_s3 + $0xe0] sm:$0xf]  ;;  %v3480_v61 = vld [vmem:[%s6217_s3 + $0xf8] sm:$0xf0] }
   0xf   :  { %v3360_v59 = vor.u32 %v3543_v57, %v3359_v56  ;;  %v3331_v62 = vld [vmem:[%s6217_s3 + $0x2a0] sm:$0xf]  ;;  %v3536_v63 = vld [vmem:[%s6217_s3 + $0x2b8] sm:$0xf0]  ;;  %v3108_v0 = vor.u32 %v3480_v61, %v3107_v60  ;;  %v34_v2 = vld [vmem:[%s6216_s0 + $0x68] sm:$0xff] }
  0x10   :  { %179 = vmatpush.bf16.msra.mxu0 %v2932_v22  ;;  %v33_v1 = vld [vmem:[%s6216_s0 + $0x60] sm:$0xff]  ;;  %v3332_v3 = vor.u32 %v3536_v63, %v3331_v62  ;;  %v3079_v5 = vld [vmem:[%s6217_s3 + $0xa8] sm:$0xf]  ;;  %v3051_v11 = vld [vmem:[%s6217_s3 + $0x70] sm:$0xf] }
  0x11   :  { %268 = vmatpush.bf16.msra.mxu1 %v2936_v25  ;;  %1231 = vmatpush.bf16.msra.mxu2 %v3164_v51  ;;  %v59_v4 = vpack.c.bf16 %v34_v2, %v33_v1  ;;  %v3473_v6 = vld [vmem:[%s6217_s3 + $0xc0] sm:$0xf0]  ;;  %v3303_v8 = vld [vmem:[%s6217_s3 + $0x268] sm:$0xf]  ;;  %v3466_v12 = vld [vmem:[%s6217_s3 + $0x88] sm:$0xf0] }
  0x12   :  { %1320 = vmatpush.bf16.msra.mxu3 %v3388_v55  ;;  %v3080_v7 = vor.u32 %v3473_v6, %v3079_v5  ;;  %v3529_v9 = vld [vmem:[%s6217_s3 + $0x280] sm:$0xf0]  ;;  %v3275_v13 = vld [vmem:[%s6217_s3 + $0x230] sm:$0xf]  ;;  %v3052_v14 = vor.u32 %v3466_v12, %v3051_v11  ;;  %v3522_v15 = vld [vmem:[%s6217_s3 + $0x248] sm:$0xf0] }
  0x13   :  { %2961 = vmatmul.msk.bf16.vlgmr.msra.gmra.mxu0 %vm123_vm0, %v53_v26  ;;  %v3304_v10 = vor.u32 %v3529_v9, %v3303_v8  ;;  %v3276_v16 = vor.u32 %v3522_v15, %v3275_v13  ;;  %v3023_v17 = vld [vmem:[%s6217_s3 + $0x38] sm:$0xf]  ;;  %v3459_v18 = vld [vmem:[%s6217_s3 + $0x50] sm:$0xf0]  ;;  %v2995_v25 = vld [vmem:[%s6217_s3] sm:$0xf] }
  0x14   :  { %2977 = vmatmul.msk.bf16.vlgmr.msra.gmra.mxu1 %vm123_vm0, %v53_v26  ;;  %v3247_v19 = vld [vmem:[%s6217_s3 + $0x1f8] sm:$0xf]  ;;  %v3024_v20 = vor.u32 %v3459_v18, %v3023_v17  ;;  %v3515_v21 = vld [vmem:[%s6217_s3 + $0x210] sm:$0xf0]  ;;  %v3452_v26 = vld [vmem:[%s6217_s3 + $0x18] sm:$0xf0] }
  0x15   :  { %1232 = vmatpush.bf16.msra.mxu2 %v3136_v58  ;;  %v3248_v22 = vor.u32 %v3515_v21, %v3247_v19  ;;  %v35_v23 = vld [vmem:[%s6216_s0 + $0x70] sm:$0xff]  ;;  %v36_v24 = vld [vmem:[%s6216_s0 + $0x78] sm:$0xff]  ;;  %v3219_v27 = vld [vmem:[%s6217_s3 + $0x1c0] sm:$0xf]  ;;  %v2996_v28 = vor.u32 %v3452_v26, %v2995_v25 }
  0x16   :  { %1321 = vmatpush.bf16.msra.mxu3 %v3360_v59  ;;  %v60_v31 = vpack.c.bf16 %v36_v24, %v35_v23  ;;  %v3502_v33 = vld [vmem:[%s6217_s3 + $0x1a8] sm:$0xf0]  ;;  %v3423_v34 = vld [vmem:[%s6217_s3 + $0x350] sm:$0xf]  ;;  %v37_v41 = vld [vmem:[%s6216_s0 + $0x80] sm:$0xff] }
  0x17   :  { %v3558_v36 = vld [vmem:[%s6217_s3 + $0x368] sm:$0xf0]  ;;  %v77_v43 = vld [vmem:[%s6218_s2] sm:$0x3]  ;;  %v39_v62 = vld [vmem:[%s6216_s0 + $0x90] sm:$0xff] }
  0x18   :  { %v3498_v37 = vld [vmem:[%s6217_s3 + $0x18c] sm:$0xf]  ;;  %v3424_v39 = vor.u32 %v3558_v36, %v3423_v34  ;;  %v4283_v48 = vperm.slane %v77_v43, 0  ;;  %v4285_v51 = vperm.slane %v77_v43, 1  ;;  %v40_v63 = vld [vmem:[%s6216_s0 + $0x98] sm:$0xff] }
  0x19   :  { %1233 = vmatpush.bf16.msra.mxu2 %v3108_v0  ;;  %v38_v42 = vld [vmem:[%s6216_s0 + $0x88] sm:$0xff]  ;;  %v62_v5 = vpack.c.bf16 %v40_v63, %v39_v62  ;;  %v3171_v11 = vld [vmem:[%s6217_s3 + $0x158] sm:$0xf]  ;;  %v3495_v12 = vld [vmem:[%s6217_s3 + $0x170] sm:$0xf0] }
  0x1a   :  { %1322 = vmatpush.bf16.msra.mxu3 %v3332_v3  ;;  %v61_v44 = vpack.c.bf16 %v38_v42, %v37_v41  ;;  %v3554_v46 = vld [vmem:[%s6217_s3 + $0x34c] sm:$0xf]  ;;  %v3395_v13 = vld [vmem:[%s6217_s3 + $0x318] sm:$0xf]  ;;  %v3551_v15 = vld [vmem:[%s6217_s3 + $0x330] sm:$0xf0] }
  0x1b   :  { %v3165_v17 = vld [vmem:[%s6217_s3 + $0x16c] sm:$0xf0]  ;;  %v3396_v19 = vor.u32 %v3551_v15, %v3395_v13 }
  0x1d   :  { %1234 = vmatpush.bf16.msra.mxu2 %v3080_v7 }
  0x1e   :  { %1323 = vmatpush.bf16.msra.mxu3 %v3304_v10 }
  0x21   :  { %1235 = vmatpush.bf16.msra.mxu2 %v3052_v14  ;;  %v3172_v14 = vor.u32 %v3495_v12, %v3171_v11  ;;  %v3137_v11 = vld [vmem:[%s6217_s3 + $0x134] sm:$0xf0] }
  0x22   :  { %1324 = vmatpush.bf16.msra.mxu3 %v3276_v16  ;;  %v3491_v16 = vld [vmem:[%s6217_s3 + $0x154] sm:$0xf] }
  0x23   :  { %2962 = vmatmul.msk.bf16.gmra.mxu0 %vm123_vm0, %v54_v29 }
  0x24   :  { %2978 = vmatmul.msk.bf16.gmra.mxu1 %vm123_vm0, %v54_v29  ;;  %v3508_v29 = vld [vmem:[%s6217_s3 + $0x1d8] sm:$0xf0] }
  0x25   :  { %1236 = vmatpush.bf16.msra.mxu2 %v3024_v20  ;;  %v3220_v30 = vor.u32 %v3508_v29, %v3219_v27  ;;  %v3168_v20 = vor.u32 %v3491_v16, %v3165_v17  ;;  %v42_v29 = vld [vmem:[%s6216_s0 + $0xa8] sm:$0xff] }
  0x26   :  { %1325 = vmatpush.bf16.msra.mxu3 %v3248_v22 }
  0x29   :  { %1237 = vmatpush.bf16.msra.mxu2 %v2996_v28  ;;  %v41_v28 = vld [vmem:[%s6216_s0 + $0xa0] sm:$0xff] }
  0x2a   :  { %1326 = vmatpush.bf16.msra.mxu3 %v3220_v30 }
  0x2e   :  { %1675 = vmatpush.bf16.msrb.mxu3 %v3424_v39  ;;  %v3389_v39 = vld [vmem:[%s6217_s3 + $0x32c] sm:$0xf0] }
  0x32   :  { %1676 = vmatpush.bf16.msrb.mxu3 %v3396_v19 }
  0x33   :  { %2963 = vmatmul.msk.bf16.gmra.mxu0 %vm123_vm0, %v55_v32 }
  0x34   :  { %2979 = vmatmul.msk.bf16.gmra.mxu1 %vm123_vm0, %v55_v32  ;;  %v3199_v32 = vld [vmem:[%s6217_s3 + $0x190] sm:$0xf] }
  0x43   :  { %2964 = vmatmul.msk.bf16.gmra.mxu0 %vm123_vm0, %v56_v35 }
  0x44   :  { %2980 = vmatmul.msk.bf16.gmra.mxu1 %vm123_vm0, %v56_v35  ;;  %v3200_v35 = vor.u32 %v3502_v33, %v3199_v32 }
  0x46   :  { %1586 = vmatpush.bf16.msrb.mxu2 %v3200_v35  ;;  %v63_v35 = vpack.c.bf16 %v42_v29, %v41_v28 }
  0x4a   :  { %1587 = vmatpush.bf16.msrb.mxu2 %v3172_v14 }
  0x53   :  { %2965 = vmatmul.msk.bf16.gmra.mxu0 %vm123_vm0, %v57_v38 }
  0x54   :  { %2981 = vmatmul.msk.bf16.gmra.mxu1 %vm123_vm0, %v57_v38  ;;  %v3193_v38 = vld [vmem:[%s6217_s3 + $0x1a4] sm:$0xf0] }
  0x55   :  { %v3196_v40 = vor.u32 %v3498_v37, %v3193_v38  ;;  %v3547_v38 = vld [vmem:[%s6217_s3 + $0x314] sm:$0xf] }
  0x56   :  { %v3392_v41 = vor.u32 %v3547_v38, %v3389_v39 }
  0x57   :  { %1408 = vmatpush.bf16.msrb.mxu0 %v3196_v40 }
  0x5b   :  { %1409 = vmatpush.bf16.msrb.mxu0 %v3168_v20 }
  0x63   :  { %2966 = vmatmul.msk.bf16.gmra.mxu0 %vm123_vm0, %v58_v47 }
  0x64   :  { %2982 = vmatmul.msk.bf16.gmra.mxu1 %vm123_vm0, %v58_v47  ;;  %v3417_v47 = vld [vmem:[%s6217_s3 + $0x364] sm:$0xf0] }
  0x65   :  { %v3420_v50 = vor.u32 %v3554_v46, %v3417_v47 }
  0x67   :  { %1497 = vmatpush.bf16.msrb.mxu1 %v3420_v50 }
  0x6b   :  { %1498 = vmatpush.bf16.msrb.mxu1 %v3392_v41 }
  0x73   :  { %2967 = vmatmul.msk.bf16.gmra.mxu0 %vm123_vm0, %v59_v4 }
  0x74   :  { %2983 = vmatmul.msk.bf16.gmra.mxu1 %vm123_vm0, %v59_v4 }
  0x83   :  { %2968 = vmatmul.msk.bf16.gmra.mxu0 %vm123_vm0, %v60_v31 }
  0x84   :  { %2984 = vmatmul.msk.bf16.gmra.mxu1 %vm123_vm0, %v60_v31 }
  0x90   :  { %v181_v45 = vpop.f32.mrf.mxu0 }
  0x91   :  { %v270_v49 = vpop.f32.mrf.mxu1  ;;  %v182_v52 = vadd.f32 %v181_v45, %v4283_v48 }
  0x92   :  { %v271_v53 = vadd.f32 %v270_v49, %v4285_v51 }
  0x93   :  { %2969 = vmatmul.msk.bf16.gmra.mxu0 %vm123_vm0, %v61_v44  ;;  %v350_v55 = vmul.f32 0.1, %v182_v52 }
  0x94   :  { %2985 = vmatmul.msk.bf16.gmra.mxu1 %vm123_vm0, %v61_v44  ;;  %v351_v58 = vmul.f32 0.1, %v271_v53 }
  0x95   :  { %v414_v0 = vmax.f32 %v182_v52, %v350_v55  ;;  %v44_v55 = vld [vmem:[%s6216_s0 + $0xb8] sm:$0xff] }
  0x96   :  { %v415_v2 = vmax.f32 %v271_v53, %v351_v58 }
  0x98   :  { %v183_v54 = vpop.f32.mrf.mxu0 }
  0x99   :  { %v184_v56 = vadd.f32 %v183_v54, %v4283_v48  ;;  %v272_v57 = vpop.f32.mrf.mxu1  ;;  %v43_v54 = vld [vmem:[%s6216_s0 + $0xb0] sm:$0xff] }
  0x9a   :  { %v273_v59 = vadd.f32 %v272_v57, %v4285_v51 }
  0x9b   :  { %v352_v60 = vmul.f32 0.1, %v184_v56 }
  0x9c   :  { %v353_v61 = vmul.f32 0.1, %v273_v59 }
  0x9d   :  { %v416_v1 = vmax.f32 %v184_v56, %v352_v60 }
  0x9e   :  { %v417_v3 = vmax.f32 %v273_v59, %v353_v61  ;;  %v64_v61 = vpack.c.bf16 %v44_v55, %v43_v54 }
  0x9f   :  { %v4299_v4 = vpack.c.bf16 %v416_v1, %v414_v0 }
  0xa0   :  { %v4301_v6 = vpack.c.bf16 %v417_v3, %v415_v2  ;;  %v186_v7 = vpop.f32.mrf.mxu0  ;;  %v3143_v3 = vld [vmem:[%s6217_s3 + $0x120] sm:$0xf] }
  0xa1   :  { %v275_v8 = vpop.f32.mrf.mxu1  ;;  %1238 = vmatmul.bf16.vlgmr.msra.gmra.mxu2 %v4299_v4  ;;  %v187_v9 = vadd.f32 %v186_v7, %v4283_v48  ;;  %v3367_v7 = vld [vmem:[%s6217_s3 + $0x2e0] sm:$0xf] }
  0xa2   :  { %1327 = vmatmul.bf16.vlgmr.msra.gmra.mxu3 %v4301_v6  ;;  %v276_v10 = vadd.f32 %v275_v8, %v4285_v51 }
  0xa3   :  { %2970 = vmatmul.msk.bf16.gmra.mxu0 %vm123_vm0, %v62_v5  ;;  %v354_v21 = vmul.f32 0.1, %v187_v9 }
  0xa4   :  { %2986 = vmatmul.msk.bf16.gmra.mxu1 %vm123_vm0, %v62_v5  ;;  %v355_v24 = vmul.f32 0.1, %v276_v10  ;;  %v3488_v5 = vld [vmem:[%s6217_s3 + $0x138] sm:$0xf0] }
  0xa5   :  { %v418_v30 = vmax.f32 %v187_v9, %v354_v21  ;;  %v3144_v8 = vor.u32 %v3488_v5, %v3143_v3  ;;  %v3544_v9 = vld [vmem:[%s6217_s3 + $0x2f8] sm:$0xf0] }
  0xa6   :  { %v419_v32 = vmax.f32 %v276_v10, %v355_v24  ;;  %v3484_v10 = vld [vmem:[%s6217_s3 + $0x11c] sm:$0xf]  ;;  %v3368_v13 = vor.u32 %v3544_v9, %v3367_v7  ;;  %v3470_v7 = vld [vmem:[%s6217_s3 + $0xac] sm:$0xf] }
  0xa7   :  { %v3140_v14 = vor.u32 %v3484_v10, %v3137_v11  ;;  %1588 = vmatpush.bf16.msrb.mxu2 %v3144_v8  ;;  %v3081_v8 = vld [vmem:[%s6217_s3 + $0xc4] sm:$0xf0]  ;;  %v3526_v9 = vld [vmem:[%s6217_s3 + $0x26c] sm:$0xf] }
  0xa8   :  { %v188_v18 = vpop.f32.mrf.mxu0  ;;  %1677 = vmatpush.bf16.msrb.mxu3 %v3368_v13  ;;  %v3084_v10 = vor.u32 %v3470_v7, %v3081_v8  ;;  %v3305_v11 = vld [vmem:[%s6217_s3 + $0x284] sm:$0xf0] }
  0xa9   :  { %v189_v22 = vadd.f32 %v188_v18, %v4283_v48  ;;  %v277_v23 = vpop.f32.mrf.mxu1  ;;  %1410 = vmatpush.bf16.msrb.mxu0 %v3140_v14 }
  0xaa   :  { %v278_v25 = vadd.f32 %v277_v23, %v4285_v51  ;;  %v46_v23 = vld [vmem:[%s6216_s0 + $0xc8] sm:$0xff] }
  0xab   :  { %v356_v26 = vmul.f32 0.1, %v189_v22 }
  0xac   :  { %v357_v27 = vmul.f32 0.1, %v278_v25 }
  0xad   :  { %v420_v31 = vmax.f32 %v189_v22, %v356_v26  ;;  %v45_v22 = vld [vmem:[%s6216_s0 + $0xc0] sm:$0xff] }
  0xae   :  { %v421_v33 = vmax.f32 %v278_v25, %v357_v27  ;;  %v65_v29 = vpack.c.bf16 %v46_v23, %v45_v22 }
  0xaf   :  { %v4335_v34 = vpack.c.bf16 %v420_v31, %v418_v30 }
  0xb0   :  { %v4337_v36 = vpack.c.bf16 %v421_v33, %v419_v32  ;;  %v191_v37 = vpop.f32.mrf.mxu0  ;;  %v3540_v32 = vld [vmem:[%s6217_s3 + $0x2dc] sm:$0xf]  ;;  %v3361_v33 = vld [vmem:[%s6217_s3 + $0x2f4] sm:$0xf0] }
  0xb1   :  { %v280_v40 = vpop.f32.mrf.mxu1  ;;  %1243 = vmatmul.bf16.gmra.mxu2 %v4335_v34  ;;  %v192_v42 = vadd.f32 %v191_v37, %v4283_v48  ;;  %v3364_v37 = vor.u32 %v3540_v32, %v3361_v33 }
  0xb2   :  { %1332 = vmatmul.bf16.gmra.mxu3 %v4337_v36  ;;  %v281_v43 = vadd.f32 %v280_v40, %v4285_v51 }
  0xb3   :  { %2971 = vmatmul.msk.bf16.gmra.mxu0 %vm123_vm0, %v63_v35  ;;  %v358_v45 = vmul.f32 0.1, %v192_v42  ;;  %1499 = vmatpush.bf16.msrb.mxu1 %v3364_v37  ;;  %v3456_v37 = vld [vmem:[%s6217_s3 + $0x3c] sm:$0xf] }
  0xb4   :  { %2987 = vmatmul.msk.bf16.gmra.mxu1 %vm123_vm0, %v63_v35  ;;  %v359_v49 = vmul.f32 0.1, %v281_v43 }
  0xb5   :  { %v422_v56 = vmax.f32 %v192_v42, %v358_v45 }
  0xb6   :  { %v423_v58 = vmax.f32 %v281_v43, %v359_v49  ;;  %v47_v49 = vld [vmem:[%s6216_s0 + $0xd0] sm:$0xff] }
  0xb8   :  { %v193_v44 = vpop.f32.mrf.mxu0 }
  0xb9   :  { %v194_v46 = vadd.f32 %v193_v44, %v4283_v48  ;;  %v282_v47 = vpop.f32.mrf.mxu1 }
  0xba   :  { %v283_v50 = vadd.f32 %v282_v47, %v4285_v51 }
  0xbb   :  { %v360_v52 = vmul.f32 0.1, %v194_v46 }
  0xbc   :  { %v361_v53 = vmul.f32 0.1, %v283_v50 }
  0xbd   :  { %v424_v57 = vmax.f32 %v194_v46, %v360_v52 }
  0xbe   :  { %v425_v59 = vmax.f32 %v283_v50, %v361_v53  ;;  %v48_v50 = vld [vmem:[%s6216_s0 + $0xd8] sm:$0xff] }
  0xbf   :  { %v4359_v60 = vpack.c.bf16 %v424_v57, %v422_v56  ;;  %v3477_v56 = vld [vmem:[%s6217_s3 + $0xe4] sm:$0xf]  ;;  %v3109_v57 = vld [vmem:[%s6217_s3 + $0xfc] sm:$0xf0] }
  0xc0   :  { %v4361_v62 = vpack.c.bf16 %v425_v59, %v423_v58  ;;  %v196_v63 = vpop.f32.mrf.mxu0  ;;  %v3533_v58 = vld [vmem:[%s6217_s3 + $0x2a4] sm:$0xf] }
  0xc1   :  { %v285_v0 = vpop.f32.mrf.mxu1  ;;  %1248 = vmatmul.bf16.gmra.mxu2 %v4359_v60  ;;  %v197_v1 = vadd.f32 %v196_v63, %v4283_v48  ;;  %v3112_v63 = vor.u32 %v3477_v56, %v3109_v57 }
  0xc2   :  { %1337 = vmatmul.bf16.gmra.mxu3 %v4361_v62  ;;  %v286_v2 = vadd.f32 %v285_v0, %v4285_v51  ;;  %v3333_v0 = vld [vmem:[%s6217_s3 + $0x2bc] sm:$0xf0] }
  0xc3   :  { %2972 = vmatmul.msk.bf16.gmra.mxu0 %vm123_vm0, %v64_v61  ;;  %v362_v15 = vmul.f32 0.1, %v197_v1  ;;  %v3336_v3 = vor.u32 %v3533_v58, %v3333_v0 }
  0xc4   :  { %2988 = vmatmul.msk.bf16.gmra.mxu1 %vm123_vm0, %v64_v61  ;;  %v363_v18 = vmul.f32 0.1, %v286_v2  ;;  %v66_v61 = vpack.c.bf16 %v48_v50, %v47_v49  ;;  %1411 = vmatpush.bf16.msrb.mxu0 %v3112_v63 }
  0xc5   :  { %v426_v24 = vmax.f32 %v197_v1, %v362_v15  ;;  %1500 = vmatpush.bf16.msrb.mxu1 %v3336_v3  ;;  %v3115_v15 = vld [vmem:[%s6217_s3 + $0xe8] sm:$0xf] }
  0xc6   :  { %v427_v26 = vmax.f32 %v286_v2, %v363_v18 }
  0xc8   :  { %v198_v12 = vpop.f32.mrf.mxu0  ;;  %1412 = vmatpush.bf16.msrb.mxu0 %v3084_v10 }
  0xc9   :  { %v199_v16 = vadd.f32 %v198_v12, %v4283_v48  ;;  %v287_v17 = vpop.f32.mrf.mxu1  ;;  %v3308_v12 = vor.u32 %v3526_v9, %v3305_v11 }
  0xca   :  { %v288_v19 = vadd.f32 %v287_v17, %v4285_v51  ;;  %v3339_v17 = vld [vmem:[%s6217_s3 + $0x2a8] sm:$0xf] }
  0xcb   :  { %v364_v20 = vmul.f32 0.1, %v199_v16  ;;  %1501 = vmatpush.bf16.msrb.mxu1 %v3308_v12 }
  0xcc   :  { %v365_v21 = vmul.f32 0.1, %v288_v19 }
  0xcd   :  { %v428_v25 = vmax.f32 %v199_v16, %v364_v20  ;;  %v3481_v16 = vld [vmem:[%s6217_s3 + $0x100] sm:$0xf0]  ;;  %v3463_v20 = vld [vmem:[%s6217_s3 + $0x74] sm:$0xf] }
  0xce   :  { %v429_v27 = vmax.f32 %v288_v19, %v365_v21  ;;  %v3116_v18 = vor.u32 %v3481_v16, %v3115_v15  ;;  %v3537_v19 = vld [vmem:[%s6217_s3 + $0x2c0] sm:$0xf0]  ;;  %v3053_v21 = vld [vmem:[%s6217_s3 + $0x8c] sm:$0xf0] }
  0xcf   :  { %v4395_v28 = vpack.c.bf16 %v428_v25, %v426_v24  ;;  %v3340_v23 = vor.u32 %v3537_v19, %v3339_v17  ;;  %v3056_v24 = vor.u32 %v3463_v20, %v3053_v21  ;;  %v3519_v25 = vld [vmem:[%s6217_s3 + $0x234] sm:$0xf]  ;;  %v52_v17 = vld [vmem:[%s6216_s0 + $0xf8] sm:$0xff] }
  0xd0   :  { %v4397_v30 = vpack.c.bf16 %v429_v27, %v427_v26  ;;  %v201_v31 = vpop.f32.mrf.mxu0  ;;  %v3277_v26 = vld [vmem:[%s6217_s3 + $0x24c] sm:$0xf0]  ;;  %1589 = vmatpush.bf16.msrb.mxu2 %v3116_v18 }
  0xd1   :  { %v290_v35 = vpop.f32.mrf.mxu1  ;;  %1253 = vmatmul.bf16.gmra.mxu2 %v4395_v28  ;;  %v202_v38 = vadd.f32 %v201_v31, %v4283_v48  ;;  %v3280_v33 = vor.u32 %v3519_v25, %v3277_v26  ;;  %1678 = vmatpush.bf16.msrb.mxu3 %v3340_v23  ;;  %v51_v16 = vld [vmem:[%s6216_s0 + $0xf0] sm:$0xff] }
  0xd2   :  { %1342 = vmatmul.bf16.gmra.mxu3 %v4397_v30  ;;  %v291_v39 = vadd.f32 %v290_v35, %v4285_v51  ;;  %1413 = vmatpush.bf16.msrb.mxu0 %v3056_v24  ;;  %v68_v23 = vpack.c.bf16 %v52_v17, %v51_v16 }
  0xd3   :  { %2973 = vmatmul.msk.bf16.gmra.mxu0 %vm123_vm0, %v65_v29  ;;  %v366_v41 = vmul.f32 0.1, %v202_v38  ;;  %1502 = vmatpush.bf16.msrb.mxu1 %v3280_v33  ;;  %v3311_v33 = vld [vmem:[%s6217_s3 + $0x270] sm:$0xf] }
  0xd4   :  { %2989 = vmatmul.msk.bf16.gmra.mxu1 %vm123_vm0, %v65_v29  ;;  %v367_v44 = vmul.f32 0.1, %v291_v39 }
  0xd5   :  { %v430_v52 = vmax.f32 %v202_v38, %v366_v41  ;;  %v3025_v38 = vld [vmem:[%s6217_s3 + $0x54] sm:$0xf0] }
  0xd6   :  { %v431_v54 = vmax.f32 %v291_v39, %v367_v44  ;;  %v3512_v39 = vld [vmem:[%s6217_s3 + $0x1fc] sm:$0xf]  ;;  %v3028_v41 = vor.u32 %v3456_v37, %v3025_v38  ;;  %v49_v44 = vld [vmem:[%s6216_s0 + $0xe0] sm:$0xff]  ;;  %v3530_v37 = vld [vmem:[%s6217_s3 + $0x288] sm:$0xf0] }
  0xd8   :  { %v203_v40 = vpop.f32.mrf.mxu0  ;;  %1414 = vmatpush.bf16.msrb.mxu0 %v3028_v41 }
  0xd9   :  { %v204_v42 = vadd.f32 %v203_v40, %v4283_v48  ;;  %v292_v43 = vpop.f32.mrf.mxu1 }
  0xda   :  { %v293_v45 = vadd.f32 %v292_v43, %v4285_v51 }
  0xdb   :  { %v368_v46 = vmul.f32 0.1, %v204_v42 }
  0xdc   :  { %v369_v47 = vmul.f32 0.1, %v293_v45 }
  0xdd   :  { %v432_v53 = vmax.f32 %v204_v42, %v368_v46  ;;  %v3249_v42 = vld [vmem:[%s6217_s3 + $0x214] sm:$0xf0] }
  0xde   :  { %v433_v55 = vmax.f32 %v293_v45, %v369_v47  ;;  %v50_v45 = vld [vmem:[%s6216_s0 + $0xe8] sm:$0xff]  ;;  %v3252_v46 = vor.u32 %v3512_v39, %v3249_v42  ;;  %v3312_v39 = vor.u32 %v3530_v37, %v3311_v33  ;;  %v3467_v33 = vld [vmem:[%s6217_s3 + $0x90] sm:$0xf0] }
  0xdf   :  { %v4428_v59 = vpack.c.bf16 %v432_v53, %v430_v52  ;;  %v3449_v53 = vld [vmem:[%s6217_s3 + $0x4] sm:$0xf]  ;;  %v67_v57 = vpack.c.bf16 %v50_v45, %v49_v44 }
  0xe0   :  { %v4433_v1 = vpack.c.bf16 %v433_v55, %v431_v54  ;;  %v206_v2 = vpop.f32.mrf.mxu0  ;;  %v2997_v54 = vld [vmem:[%s6217_s3 + $0x1c] sm:$0xf0]  ;;  %v3505_v55 = vld [vmem:[%s6217_s3 + $0x1c4] sm:$0xf]  ;;  %1503 = vmatpush.bf16.msrb.mxu1 %v3252_v46  ;;  %1679 = vmatpush.bf16.msrb.mxu3 %v3312_v39 }
  0xe1   :  { %v295_v5 = vpop.f32.mrf.mxu1  ;;  %1258 = vmatmul.bf16.gmra.mxu2 %v4428_v59  ;;  %v207_v13 = vadd.f32 %v206_v2, %v4283_v48  ;;  %v3000_v58 = vor.u32 %v3449_v53, %v2997_v54 }
  0xe2   :  { %1347 = vmatmul.bf16.gmra.mxu3 %v4433_v1  ;;  %v296_v14 = vadd.f32 %v295_v5, %v4285_v51 }
  0xe3   :  { %2974 = vmatmul.msk.bf16.gmra.mxu0 %vm123_vm0, %v66_v61  ;;  %v370_v27 = vmul.f32 0.1, %v207_v13 }
  0xe4   :  { %2990 = vmatmul.msk.bf16.gmra.mxu1 %vm123_vm0, %v66_v61  ;;  %v371_v29 = vmul.f32 0.1, %v296_v14  ;;  %v3221_v61 = vld [vmem:[%s6217_s3 + $0x1dc] sm:$0xf0]  ;;  %1415 = vmatpush.bf16.msrb.mxu0 %v3000_v58 }
  0xe5   :  { %v434_v47 = vmax.f32 %v207_v13, %v370_v27  ;;  %v3224_v2 = vor.u32 %v3505_v55, %v3221_v61 }
  0xe6   :  { %v435_v50 = vmax.f32 %v296_v14, %v371_v29 }
  0xe7   :  { %1504 = vmatpush.bf16.msrb.mxu1 %v3224_v2 }
  0xe8   :  { %v208_v22 = vpop.f32.mrf.mxu0 }
  0xe9   :  { %v209_v31 = vadd.f32 %v208_v22, %v4283_v48  ;;  %v297_v32 = vpop.f32.mrf.mxu1 }
  0xea   :  { %v298_v35 = vadd.f32 %v297_v32, %v4285_v51  ;;  %v3474_v32 = vld [vmem:[%s6217_s3 + $0xc8] sm:$0xf0] }
  0xeb   :  { %v372_v40 = vmul.f32 0.1, %v209_v31 }
  0xec   :  { %v373_v43 = vmul.f32 0.1, %v298_v35 }
  0xed   :  { %v436_v49 = vmax.f32 %v209_v31, %v372_v40  ;;  %v3087_v31 = vld [vmem:[%s6217_s3 + $0xb0] sm:$0xf] }
  0xee   :  { %v437_v52 = vmax.f32 %v298_v35, %v373_v43  ;;  %v3088_v35 = vor.u32 %v3474_v32, %v3087_v31  ;;  %v3059_v32 = vld [vmem:[%s6217_s3 + $0x78] sm:$0xf] }
  0xef   :  { %v4506_v56 = vpack.c.bf16 %v436_v49, %v434_v47 }
  0xf0   :  { %v4511_v63 = vpack.c.bf16 %v437_v52, %v435_v50  ;;  %v211_v0 = vpop.f32.mrf.mxu0  ;;  %1590 = vmatpush.bf16.msrb.mxu2 %v3088_v35  ;;  %v3283_v35 = vld [vmem:[%s6217_s3 + $0x238] sm:$0xf] }
  0xf1   :  { %v300_v3 = vpop.f32.mrf.mxu1  ;;  %1263 = vmatmul.bf16.gmra.mxu2 %v4506_v56  ;;  %v212_v5 = vadd.f32 %v211_v0, %v4283_v48 }
  0xf2   :  { %1352 = vmatmul.bf16.gmra.mxu3 %v4511_v63  ;;  %v301_v7 = vadd.f32 %v300_v3, %v4285_v51 }
  0xf3   :  { %2975 = vmatmul.msk.bf16.gmra.mxu0 %vm123_vm0, %v67_v57  ;;  %v374_v9 = vmul.f32 0.1, %v212_v5 }
  0xf4   :  { %2991 = vmatmul.msk.bf16.gmra.mxu1 %vm123_vm0, %v67_v57  ;;  %v375_v12 = vmul.f32 0.1, %v301_v7 }
  0xf5   :  { %v438_v18 = vmax.f32 %v212_v5, %v374_v9 }
  0xf6   :  { %v439_v20 = vmax.f32 %v301_v7, %v375_v12 }
  0xf8   :  { %v213_v8 = vpop.f32.mrf.mxu0 }
  0xf9   :  { %v214_v10 = vadd.f32 %v213_v8, %v4283_v48  ;;  %v302_v11 = vpop.f32.mrf.mxu1 }
  0xfa   :  { %v303_v13 = vadd.f32 %v302_v11, %v4285_v51 }
  0xfb   :  { %v376_v14 = vmul.f32 0.1, %v214_v10 }
  0xfc   :  { %v377_v15 = vmul.f32 0.1, %v303_v13 }
  0xfd   :  { %v440_v19 = vmax.f32 %v214_v10, %v376_v14 }
  0xfe   :  { %v441_v21 = vmax.f32 %v303_v13, %v377_v15  ;;  %v4566_v15 = vld [vmem:[%s6219_s4] sm:$0x7f] }
  0xff   :  { %v4527_v22 = vpack.c.bf16 %v440_v19, %v438_v18 }
 0x100   :  { %v4529_v24 = vpack.c.bf16 %v441_v21, %v439_v20  ;;  %v216_v25 = vpop.f32.mrf.mxu0  ;;  %v4574_v20 = vperm.slane %v4566_v15, 0 }
 0x101   :  { %v305_v26 = vpop.f32.mrf.mxu1  ;;  %1268 = vmatmul.bf16.gmra.mxu2 %v4527_v22  ;;  %v217_v27 = vadd.f32 %v216_v25, %v4283_v48 }
 0x102   :  { %1357 = vmatmul.bf16.gmra.mxu3 %v4529_v24  ;;  %v306_v29 = vadd.f32 %v305_v26, %v4285_v51 }
 0x103   :  { %2976 = vmatmul.msk.bf16.gmra.mxu0 %vm123_vm0, %v68_v23  ;;  %v378_v40 = vmul.f32 0.1, %v217_v27 }
 0x104   :  { %2992 = vmatmul.msk.bf16.gmra.mxu1 %vm123_vm0, %v68_v23  ;;  %v379_v43 = vmul.f32 0.1, %v306_v29 }
 0x105   :  { %v442_v47 = vmax.f32 %v217_v27, %v378_v40  ;;  %v3060_v40 = vor.u32 %v3467_v33, %v3059_v32 }
 0x106   :  { %v443_v50 = vmax.f32 %v306_v29, %v379_v43 }
 0x107   :  { %1591 = vmatpush.bf16.msrb.mxu2 %v3060_v40 }
 0x108   :  { %v218_v38 = vpop.f32.mrf.mxu0 }
 0x109   :  { %v219_v41 = vadd.f32 %v218_v38, %v4283_v48  ;;  %v307_v42 = vpop.f32.mrf.mxu1 }
 0x10a   :  { %v308_v44 = vadd.f32 %v307_v42, %v4285_v51 }
 0x10b   :  { %v380_v45 = vmul.f32 0.1, %v219_v41 }
 0x10c   :  { %v381_v46 = vmul.f32 0.1, %v308_v44 }
 0x10d   :  { %v444_v49 = vmax.f32 %v219_v41, %v380_v45  ;;  %v3523_v41 = vld [vmem:[%s6217_s3 + $0x250] sm:$0xf0] }
 0x10e   :  { %v445_v52 = vmax.f32 %v308_v44, %v381_v46  ;;  %v3284_v44 = vor.u32 %v3523_v41, %v3283_v35 }
 0x10f   :  { %v4551_v53 = vpack.c.bf16 %v444_v49, %v442_v47 }
 0x110   :  { %v4553_v54 = vpack.c.bf16 %v445_v52, %v443_v50  ;;  %v221_v55 = vpop.f32.mrf.mxu0  ;;  %1680 = vmatpush.bf16.msrb.mxu3 %v3284_v44 }
 0x111   :  { %v310_v57 = vpop.f32.mrf.mxu1  ;;  %1273 = vmatmul.bf16.gmra.mxu2 %v4551_v53  ;;  %v222_v58 = vadd.f32 %v221_v55, %v4283_v48 }
 0x112   :  { %1362 = vmatmul.bf16.gmra.mxu3 %v4553_v54  ;;  %v311_v61 = vadd.f32 %v310_v57, %v4285_v51 }
 0x113   :  { %1416 = vmatmul.bf16.vlgmr.msrb.gmra.mxu0 %v4299_v4  ;;  %v382_v2 = vmul.f32 0.1, %v222_v58 }
 0x114   :  { %1505 = vmatmul.bf16.vlgmr.msrb.gmra.mxu1 %v4301_v6  ;;  %v383_v7 = vmul.f32 0.1, %v311_v61 }
 0x115   :  { %v446_v11 = vmax.f32 %v222_v58, %v382_v2 }
 0x116   :  { %v447_v13 = vmax.f32 %v311_v61, %v383_v7 }
 0x118   :  { %v223_v0 = vpop.f32.mrf.mxu0 }
 0x119   :  { %v224_v3 = vadd.f32 %v223_v0, %v4283_v48  ;;  %v312_v5 = vpop.f32.mrf.mxu1 }
 0x11a   :  { %v313_v8 = vadd.f32 %v312_v5, %v4285_v51 }
 0x11b   :  { %v384_v9 = vmul.f32 0.1, %v224_v3 }
 0x11c   :  { %v385_v10 = vmul.f32 0.1, %v313_v8 }
 0x11d   :  { %v448_v12 = vmax.f32 %v224_v3, %v384_v9 }
 0x11e   :  { %v449_v14 = vmax.f32 %v313_v8, %v385_v10 }
 0x11f   :  { %v4568_v16 = vpack.c.bf16 %v448_v12, %v446_v11 }
 0x120   :  { %v4570_v17 = vpack.c.bf16 %v449_v14, %v447_v13  ;;  %v226_v18 = vpop.f32.mrf.mxu0 }
 0x121   :  { %v315_v19 = vpop.f32.mrf.mxu1  ;;  %1278 = vmatmul.bf16.gmra.mxu2 %v4568_v16  ;;  %v227_v23 = vadd.f32 %v226_v18, %v4283_v48 }
 0x122   :  { %1367 = vmatmul.bf16.gmra.mxu3 %v4570_v17  ;;  %v316_v27 = vadd.f32 %v315_v19, %v4285_v51 }
 0x123   :  { %1421 = vmatmul.bf16.gmra.mxu0 %v4335_v34  ;;  %v386_v37 = vmul.f32 0.1, %v227_v23 }
 0x124   :  { %1510 = vmatmul.bf16.gmra.mxu1 %v4337_v36  ;;  %v1239_v21 = vpop.f32.mrf.mxu2  ;;  %v387_v42 = vmul.f32 0.1, %v316_v27 }
 0x125   :  { %v1240_v25 = vadd.f32 %v1239_v21, %v4574_v20  ;;  %v1328_v26 = vpop.f32.mrf.mxu3  ;;  %v450_v49 = vmax.f32 %v227_v23, %v386_v37 }
 0x126   :  { %v451_v57 = vmax.f32 %v316_v27, %v387_v42 }
 0x127   :  { %v1329_v29 = vadd.f32 %v1328_v26, %v1240_v25 }
 0x128   :  { %v228_v31 = vpop.f32.mrf.mxu0 }
 0x129   :  { %3561 = vtanh.f32 %v1329_v29  ;;  %v229_v38 = vadd.f32 %v228_v31, %v4283_v48  ;;  %v317_v39 = vpop.f32.mrf.mxu1 }
 0x12a   :  { %v318_v43 = vadd.f32 %v317_v39, %v4285_v51 }
 0x12b   :  { %v388_v45 = vmul.f32 0.1, %v229_v38 }
 0x12c   :  { %v389_v46 = vmul.f32 0.1, %v318_v43  ;;  %v1241_v47 = vpop.f32.mrf.mxu2 }
 0x12d   :  { %v452_v50 = vmax.f32 %v229_v38, %v388_v45  ;;  %v1242_v52 = vadd.f32 %v1241_v47, %v4574_v20  ;;  %v1330_v55 = vpop.f32.mrf.mxu3 }
 0x12e   :  { %v453_v58 = vmax.f32 %v318_v43, %v389_v46 }
 0x12f   :  { %v3562_v61 = vpop.eup %3561  ;;  %v4597_v0 = vpack.c.bf16 %v452_v50, %v450_v49  ;;  %v1331_v2 = vadd.f32 %v1330_v55, %v1242_v52 }
 0x130   :  { %2700 = vst [vmem:[%s6220_s5] sm:$0xff] %v3562_v61  ;;  %v4602_v3 = vpack.c.bf16 %v453_v58, %v451_v57  ;;  %v231_v5 = vpop.f32.mrf.mxu0  ;;  %v3031_v61 = vld [vmem:[%s6217_s3 + $0x40] sm:$0xf] }
 0x131   :  { %3563 = vtanh.f32 %v1331_v2  ;;  %v320_v7 = vpop.f32.mrf.mxu1  ;;  %1283 = vmatmul.bf16.gmra.mxu2 %v4597_v0  ;;  %v232_v9 = vadd.f32 %v231_v5, %v4283_v48  ;;  %v3460_v2 = vld [vmem:[%s6217_s3 + $0x58] sm:$0xf0] }
 0x132   :  { %1372 = vmatmul.bf16.gmra.mxu3 %v4602_v3  ;;  %v321_v12 = vadd.f32 %v320_v7, %v4285_v51 }
 0x133   :  { %1426 = vmatmul.bf16.gmra.mxu0 %v4359_v60  ;;  %v390_v19 = vmul.f32 0.1, %v232_v9 }
 0x134   :  { %1515 = vmatmul.bf16.gmra.mxu1 %v4361_v62  ;;  %v1244_v8 = vpop.f32.mrf.mxu2  ;;  %v391_v25 = vmul.f32 0.1, %v321_v12 }
 0x135   :  { %v1245_v10 = vadd.f32 %v1244_v8, %v4574_v20  ;;  %v1333_v11 = vpop.f32.mrf.mxu3  ;;  %v454_v32 = vmax.f32 %v232_v9, %v390_v19  ;;  %v3032_v9 = vor.u32 %v3460_v2, %v3031_v61 }
 0x136   :  { %v455_v38 = vmax.f32 %v321_v12, %v391_v25 }
 0x137   :  { %v3564_v13 = vpop.eup %3563  ;;  %v1334_v14 = vadd.f32 %v1333_v11, %v1245_v10  ;;  %v3255_v10 = vld [vmem:[%s6217_s3 + $0x200] sm:$0xf]  ;;  %v3516_v11 = vld [vmem:[%s6217_s3 + $0x218] sm:$0xf0]  ;;  %1592 = vmatpush.bf16.msrb.mxu2 %v3032_v9 }
 0x138   :  { %2708 = vst [vmem:[%s6220_s5 + $0x38] sm:$0xff] %v3564_v13  ;;  %v233_v18 = vpop.f32.mrf.mxu0 }
 0x139   :  { %3565 = vtanh.f32 %v1334_v14  ;;  %v234_v21 = vadd.f32 %v233_v18, %v4283_v48  ;;  %v322_v23 = vpop.f32.mrf.mxu1  ;;  %v3256_v14 = vor.u32 %v3516_v11, %v3255_v10 }
 0x13a   :  { %v323_v26 = vadd.f32 %v322_v23, %v4285_v51 }
 0x13b   :  { %v392_v27 = vmul.f32 0.1, %v234_v21  ;;  %1681 = vmatpush.bf16.msrb.mxu3 %v3256_v14 }
 0x13c   :  { %v393_v29 = vmul.f32 0.1, %v323_v26  ;;  %v1246_v31 = vpop.f32.mrf.mxu2 }
 0x13d   :  { %v456_v33 = vmax.f32 %v234_v21, %v392_v27  ;;  %v1247_v35 = vadd.f32 %v1246_v31, %v4574_v20  ;;  %v1335_v37 = vpop.f32.mrf.mxu3 }
 0x13e   :  { %v457_v39 = vmax.f32 %v323_v26, %v393_v29 }
 0x13f   :  { %v3566_v40 = vpop.eup %3565  ;;  %v4617_v41 = vpack.c.bf16 %v456_v33, %v454_v32  ;;  %v1336_v42 = vadd.f32 %v1335_v37, %v1247_v35 }
 0x140   :  { %2715 = vst [vmem:[%s6220_s5 + $0x70] sm:$0xff] %v3566_v40  ;;  %v4622_v43 = vpack.c.bf16 %v457_v39, %v455_v38  ;;  %v236_v44 = vpop.f32.mrf.mxu0 }
 0x141   :  { %3567 = vtanh.f32 %v1336_v42  ;;  %v325_v45 = vpop.f32.mrf.mxu1  ;;  %1288 = vmatmul.bf16.gmra.mxu2 %v4617_v41  ;;  %v237_v47 = vadd.f32 %v236_v44, %v4283_v48 }
 0x142   :  { %1377 = vmatmul.bf16.gmra.mxu3 %v4622_v43  ;;  %v326_v52 = vadd.f32 %v325_v45, %v4285_v51 }
 0x143   :  { %1431 = vmatmul.bf16.gmra.mxu0 %v4395_v28  ;;  %v394_v5 = vmul.f32 0.1, %v237_v47 }
 0x144   :  { %1520 = vmatmul.bf16.gmra.mxu1 %v4397_v30  ;;  %v1249_v46 = vpop.f32.mrf.mxu2  ;;  %v395_v12 = vmul.f32 0.1, %v326_v52 }
 0x145   :  { %v1250_v49 = vadd.f32 %v1249_v46, %v4574_v20  ;;  %v1338_v50 = vpop.f32.mrf.mxu3  ;;  %v458_v23 = vmax.f32 %v237_v47, %v394_v5 }
 0x146   :  { %v459_v29 = vmax.f32 %v326_v52, %v395_v12 }
 0x147   :  { %v3568_v55 = vpop.eup %3567  ;;  %v1339_v57 = vadd.f32 %v1338_v50, %v1250_v49 }
 0x148   :  { %2722 = vst [vmem:[%s6220_s5 + $0xa8] sm:$0xff] %v3568_v55  ;;  %v238_v58 = vpop.f32.mrf.mxu0 }
 0x149   :  { %3569 = vtanh.f32 %v1339_v57  ;;  %v239_v7 = vadd.f32 %v238_v58, %v4283_v48  ;;  %v327_v8 = vpop.f32.mrf.mxu1 }
 0x14a   :  { %v328_v13 = vadd.f32 %v327_v8, %v4285_v51 }
 0x14b   :  { %v396_v18 = vmul.f32 0.1, %v239_v7 }
 0x14c   :  { %v397_v19 = vmul.f32 0.1, %v328_v13  ;;  %v1251_v21 = vpop.f32.mrf.mxu2 }
 0x14d   :  { %v460_v25 = vmax.f32 %v239_v7, %v396_v18  ;;  %v1252_v26 = vadd.f32 %v1251_v21, %v4574_v20  ;;  %v1340_v27 = vpop.f32.mrf.mxu3 }
 0x14e   :  { %v461_v31 = vmax.f32 %v328_v13, %v397_v19 }
 0x14f   :  { %v3570_v32 = vpop.eup %3569  ;;  %v4649_v33 = vpack.c.bf16 %v460_v25, %v458_v23  ;;  %v1341_v35 = vadd.f32 %v1340_v27, %v1252_v26 }
 0x150   :  { %2729 = vst [vmem:[%s6220_s5 + $0xe0] sm:$0xff] %v3570_v32  ;;  %v4654_v37 = vpack.c.bf16 %v461_v31, %v459_v29  ;;  %v241_v38 = vpop.f32.mrf.mxu0 }
 0x151   :  { %3571 = vtanh.f32 %v1341_v35  ;;  %v330_v39 = vpop.f32.mrf.mxu1  ;;  %1293 = vmatmul.bf16.gmra.mxu2 %v4649_v33  ;;  %v242_v42 = vadd.f32 %v241_v38, %v4283_v48 }
 0x152   :  { %1382 = vmatmul.bf16.gmra.mxu3 %v4654_v37  ;;  %v331_v46 = vadd.f32 %v330_v39, %v4285_v51 }
 0x153   :  { %1436 = vmatmul.bf16.gmra.mxu0 %v4428_v59  ;;  %v398_v52 = vmul.f32 0.1, %v242_v42 }
 0x154   :  { %1525 = vmatmul.bf16.gmra.mxu1 %v4433_v1  ;;  %v1254_v40 = vpop.f32.mrf.mxu2  ;;  %v399_v58 = vmul.f32 0.1, %v331_v46 }
 0x155   :  { %v1255_v44 = vadd.f32 %v1254_v40, %v4574_v20  ;;  %v1343_v45 = vpop.f32.mrf.mxu3  ;;  %v462_v8 = vmax.f32 %v242_v42, %v398_v52  ;;  %v3003_v40 = vld [vmem:[%s6217_s3 + $0x8] sm:$0xf]  ;;  %v3453_v42 = vld [vmem:[%s6217_s3 + $0x20] sm:$0xf0] }
 0x156   :  { %v463_v12 = vmax.f32 %v331_v46, %v399_v58 }
 0x157   :  { %v3572_v47 = vpop.eup %3571  ;;  %v1344_v49 = vadd.f32 %v1343_v45, %v1255_v44 }
 0x158   :  { %2736 = vst [vmem:[%s6220_s5 + $0x118] sm:$0xff] %v3572_v47  ;;  %v243_v50 = vpop.f32.mrf.mxu0  ;;  %v3004_v47 = vor.u32 %v3453_v42, %v3003_v40 }
 0x159   :  { %3573 = vtanh.f32 %v1344_v49  ;;  %v244_v55 = vadd.f32 %v243_v50, %v4283_v48  ;;  %v332_v57 = vpop.f32.mrf.mxu1  ;;  %v3227_v49 = vld [vmem:[%s6217_s3 + $0x1c8] sm:$0xf]  ;;  %v3509_v50 = vld [vmem:[%s6217_s3 + $0x1e0] sm:$0xf0] }
 0x15a   :  { %v333_v61 = vadd.f32 %v332_v57, %v4285_v51  ;;  %v3228_v57 = vor.u32 %v3509_v50, %v3227_v49  ;;  %1593 = vmatpush.bf16.msrb.mxu2 %v3004_v47 }
 0x15b   :  { %v400_v2 = vmul.f32 0.1, %v244_v55 }
 0x15c   :  { %v401_v5 = vmul.f32 0.1, %v333_v61  ;;  %v1256_v7 = vpop.f32.mrf.mxu2  ;;  %1682 = vmatpush.bf16.msrb.mxu3 %v3228_v57 }
 0x15d   :  { %v464_v9 = vmax.f32 %v244_v55, %v400_v2  ;;  %v1257_v10 = vadd.f32 %v1256_v7, %v4574_v20  ;;  %v1345_v11 = vpop.f32.mrf.mxu3 }
 0x15e   :  { %v465_v13 = vmax.f32 %v333_v61, %v401_v5 }
 0x15f   :  { %v3574_v14 = vpop.eup %3573  ;;  %v4669_v18 = vpack.c.bf16 %v464_v9, %v462_v8  ;;  %v1346_v19 = vadd.f32 %v1345_v11, %v1257_v10 }
 0x160   :  { %2743 = vst [vmem:[%s6220_s5 + $0x150] sm:$0xff] %v3574_v14  ;;  %v4674_v21 = vpack.c.bf16 %v465_v13, %v463_v12  ;;  %v246_v23 = vpop.f32.mrf.mxu0 }
 0x161   :  { %3575 = vtanh.f32 %v1346_v19  ;;  %v335_v25 = vpop.f32.mrf.mxu1  ;;  %1298 = vmatmul.bf16.gmra.mxu2 %v4669_v18  ;;  %v247_v27 = vadd.f32 %v246_v23, %v4283_v48 }
 0x162   :  { %1387 = vmatmul.bf16.gmra.mxu3 %v4674_v21  ;;  %v336_v32 = vadd.f32 %v335_v25, %v4285_v51 }
 0x163   :  { %1441 = vmatmul.bf16.gmra.mxu0 %v4506_v56  ;;  %v402_v44 = vmul.f32 0.1, %v247_v27 }
 0x164   :  { %1530 = vmatmul.bf16.gmra.mxu1 %v4511_v63  ;;  %v1259_v26 = vpop.f32.mrf.mxu2  ;;  %v403_v52 = vmul.f32 0.1, %v336_v32 }
 0x165   :  { %v1260_v29 = vadd.f32 %v1259_v26, %v4574_v20  ;;  %v1348_v31 = vpop.f32.mrf.mxu3  ;;  %v466_v5 = vmax.f32 %v247_v27, %v402_v44 }
 0x166   :  { %v467_v10 = vmax.f32 %v336_v32, %v403_v52 }
 0x167   :  { %v3576_v35 = vpop.eup %3575  ;;  %v1349_v38 = vadd.f32 %v1348_v31, %v1260_v29 }
 0x168   :  { %2750 = vst [vmem:[%s6220_s5 + $0x188] sm:$0xff] %v3576_v35  ;;  %v248_v39 = vpop.f32.mrf.mxu0 }
 0x169   :  { %3577 = vtanh.f32 %v1349_v38  ;;  %v249_v45 = vadd.f32 %v248_v39, %v4283_v48  ;;  %v337_v46 = vpop.f32.mrf.mxu1 }
 0x16a   :  { %v338_v55 = vadd.f32 %v337_v46, %v4285_v51 }
 0x16b   :  { %v404_v58 = vmul.f32 0.1, %v249_v45 }
 0x16c   :  { %v405_v61 = vmul.f32 0.1, %v338_v55  ;;  %v1261_v2 = vpop.f32.mrf.mxu2 }
 0x16d   :  { %v468_v7 = vmax.f32 %v249_v45, %v404_v58  ;;  %v1262_v8 = vadd.f32 %v1261_v2, %v4574_v20  ;;  %v1350_v9 = vpop.f32.mrf.mxu3 }
 0x16e   :  { %v469_v11 = vmax.f32 %v338_v55, %v405_v61 }
 0x16f   :  { %v3578_v12 = vpop.eup %3577  ;;  %v4701_v13 = vpack.c.bf16 %v468_v7, %v466_v5  ;;  %v1351_v14 = vadd.f32 %v1350_v9, %v1262_v8 }
 0x170   :  { %2757 = vst [vmem:[%s6220_s5 + $0x1c0] sm:$0xff] %v3578_v12  ;;  %v4706_v19 = vpack.c.bf16 %v469_v11, %v467_v10  ;;  %v251_v23 = vpop.f32.mrf.mxu0 }
 0x171   :  { %3579 = vtanh.f32 %v1351_v14  ;;  %v340_v25 = vpop.f32.mrf.mxu1  ;;  %1303 = vmatmul.bf16.gmra.mxu2 %v4701_v13  ;;  %v252_v27 = vadd.f32 %v251_v23, %v4283_v48 }
 0x172   :  { %1392 = vmatmul.bf16.gmra.mxu3 %v4706_v19  ;;  %v341_v32 = vadd.f32 %v340_v25, %v4285_v51 }
 0x173   :  { %1446 = vmatmul.bf16.gmra.mxu0 %v4527_v22  ;;  %v406_v40 = vmul.f32 0.1, %v252_v27 }
 0x174   :  { %1535 = vmatmul.bf16.gmra.mxu1 %v4529_v24  ;;  %v1264_v26 = vpop.f32.mrf.mxu2  ;;  %v407_v45 = vmul.f32 0.1, %v341_v32 }
 0x175   :  { %v1265_v29 = vadd.f32 %v1264_v26, %v4574_v20  ;;  %v1353_v31 = vpop.f32.mrf.mxu3  ;;  %v470_v52 = vmax.f32 %v252_v27, %v406_v40 }
 0x176   :  { %v471_v61 = vmax.f32 %v341_v32, %v407_v45 }
 0x177   :  { %v3580_v35 = vpop.eup %3579  ;;  %v1354_v38 = vadd.f32 %v1353_v31, %v1265_v29 }
 0x178   :  { %2764 = vst [vmem:[%s6220_s5 + $0x1f8] sm:$0xff] %v3580_v35  ;;  %v253_v39 = vpop.f32.mrf.mxu0 }
 0x179   :  { %3581 = vtanh.f32 %v1354_v38  ;;  %v254_v42 = vadd.f32 %v253_v39, %v4283_v48  ;;  %v342_v44 = vpop.f32.mrf.mxu1 }
 0x17a   :  { %v343_v46 = vadd.f32 %v342_v44, %v4285_v51  ;;  %v4741_v44 = vperm.slane %v4566_v15, 1  ;;  %v3431_v15 = vld [vmem:[%s6217_s3 + $0x358] sm:$0xf] }
 0x17b   :  { %v408_v47 = vmul.f32 0.1, %v254_v42 }
 0x17c   :  { %v409_v49 = vmul.f32 0.1, %v343_v46  ;;  %v1266_v50 = vpop.f32.mrf.mxu2 }
 0x17d   :  { %v472_v55 = vmax.f32 %v254_v42, %v408_v47  ;;  %v1267_v57 = vadd.f32 %v1266_v50, %v4574_v20  ;;  %v1355_v58 = vpop.f32.mrf.mxu3  ;;  %v3207_v47 = vld [vmem:[%s6217_s3 + $0x198] sm:$0xf] }
 0x17e   :  { %v473_v2 = vmax.f32 %v343_v46, %v409_v49  ;;  %v3503_v49 = vld [vmem:[%s6217_s3 + $0x1b0] sm:$0xf0] }
 0x17f   :  { %v3582_v5 = vpop.eup %3581  ;;  %v4721_v7 = vpack.c.bf16 %v472_v55, %v470_v52  ;;  %v1356_v8 = vadd.f32 %v1355_v58, %v1267_v57  ;;  %v3559_v57 = vld [vmem:[%s6217_s3 + $0x370] sm:$0xf0] }
 0x180   :  { %2771 = vst [vmem:[%s6220_s5 + $0x230] sm:$0xff] %v3582_v5  ;;  %v4726_v9 = vpack.c.bf16 %v473_v2, %v471_v61  ;;  %v256_v10 = vpop.f32.mrf.mxu0  ;;  %v3432_v2 = vor.u32 %v3559_v57, %v3431_v15 }
 0x181   :  { %3583 = vtanh.f32 %v1356_v8  ;;  %v345_v11 = vpop.f32.mrf.mxu1  ;;  %1308 = vmatmul.bf16.gmra.mxu2 %v4721_v7  ;;  %v257_v14 = vadd.f32 %v256_v10, %v4283_v48 }
 0x182   :  { %1397 = vmatmul.bf16.gmra.mxu3 %v4726_v9  ;;  %v346_v26 = vadd.f32 %v345_v11, %v4285_v51 }
 0x183   :  { %1451 = vmatmul.bf16.gmra.mxu0 %v4551_v53  ;;  %v410_v32 = vmul.f32 0.1, %v257_v14  ;;  %2031 = vmatpush.bf16.msra.mxu3 %v3432_v2 }
 0x184   :  { %1540 = vmatmul.bf16.gmra.mxu1 %v4553_v54  ;;  %v1269_v12 = vpop.f32.mrf.mxu2  ;;  %v411_v39 = vmul.f32 0.1, %v346_v26 }
 0x185   :  { %v1270_v23 = vadd.f32 %v1269_v12, %v4574_v20  ;;  %v1358_v25 = vpop.f32.mrf.mxu3  ;;  %v474_v50 = vmax.f32 %v257_v14, %v410_v32  ;;  %v3499_v14 = vld [vmem:[%s6217_s3 + $0x194] sm:$0xf] }
 0x186   :  { %v475_v58 = vmax.f32 %v346_v26, %v411_v39  ;;  %v3555_v32 = vld [vmem:[%s6217_s3 + $0x354] sm:$0xf] }
 0x187   :  { %v3584_v27 = vpop.eup %3583  ;;  %v1359_v29 = vadd.f32 %v1358_v25, %v1270_v23  ;;  %v3201_v23 = vld [vmem:[%s6217_s3 + $0x1ac] sm:$0xf0] }
 0x188   :  { %2778 = vst [vmem:[%s6220_s5 + $0x268] sm:$0xff] %v3584_v27  ;;  %v258_v31 = vpop.f32.mrf.mxu0  ;;  %v3204_v27 = vor.u32 %v3499_v14, %v3201_v23 }
 0x189   :  { %3585 = vtanh.f32 %v1359_v29  ;;  %v259_v35 = vadd.f32 %v258_v31, %v4283_v48  ;;  %v347_v38 = vpop.f32.mrf.mxu1 }
 0x18a   :  { %v348_v40 = vadd.f32 %v347_v38, %v4285_v51  ;;  %v3208_v51 = vor.u32 %v3503_v49, %v3207_v47  ;;  %1764 = vmatpush.bf16.msra.mxu0 %v3204_v27 }
 0x18b   :  { %v412_v42 = vmul.f32 0.1, %v259_v35 }
 0x18c   :  { %v413_v45 = vmul.f32 0.1, %v348_v40  ;;  %v1271_v46 = vpop.f32.mrf.mxu2  ;;  %1942 = vmatpush.bf16.msra.mxu2 %v3208_v51 }
 0x18d   :  { %v476_v48 = vmax.f32 %v259_v35, %v412_v42  ;;  %v1272_v52 = vadd.f32 %v1271_v46, %v4574_v20  ;;  %v1360_v55 = vpop.f32.mrf.mxu3  ;;  %v3425_v35 = vld [vmem:[%s6217_s3 + $0x36c] sm:$0xf0] }
 0x18e   :  { %v477_v61 = vmax.f32 %v348_v40, %v413_v45  ;;  %v3428_v40 = vor.u32 %v3555_v32, %v3425_v35 }
 0x18f   :  { %v3586_v5 = vpop.eup %3585  ;;  %v4756_v8 = vpack.c.bf16 %v476_v48, %v474_v50  ;;  %v1361_v10 = vadd.f32 %v1360_v55, %v1272_v52 }
 0x190   :  { %2785 = vst [vmem:[%s6220_s5 + $0x2a0] sm:$0xff] %v3586_v5  ;;  %v4761_v11 = vpack.c.bf16 %v477_v61, %v475_v58  ;;  %v1417_v12 = vpop.f32.mrf.mxu0  ;;  %1853 = vmatpush.bf16.msra.mxu1 %v3428_v40  ;;  %v3496_v40 = vld [vmem:[%s6217_s3 + $0x178] sm:$0xf0] }
 0x191   :  { %3587 = vtanh.f32 %v1361_v10  ;;  %v1418_v25 = vadd.f32 %v1417_v12, %v4741_v44  ;;  %v1506_v26 = vpop.f32.mrf.mxu1  ;;  %1313 = vmatmul.bf16.gmra.mxu2 %v4756_v8 }
 0x192   :  { %1402 = vmatmul.bf16.gmra.mxu3 %v4761_v11 }
 0x193   :  { %v1507_v29 = vadd.f32 %v1506_v26, %v1418_v25  ;;  %1456 = vmatmul.bf16.gmra.mxu0 %v4568_v16 }
 0x194   :  { %1545 = vmatmul.bf16.gmra.mxu1 %v4570_v17  ;;  %v1274_v31 = vpop.f32.mrf.mxu2 }
 0x195   :  { %3589 = vtanh.f32 %v1507_v29  ;;  %v1275_v38 = vadd.f32 %v1274_v31, %v4574_v20  ;;  %v1363_v39 = vpop.f32.mrf.mxu3 }
 0x197   :  { %v3588_v42 = vpop.eup %3587  ;;  %v1364_v45 = vadd.f32 %v1363_v39, %v1275_v38  ;;  %v3179_v39 = vld [vmem:[%s6217_s3 + $0x160] sm:$0xf] }
 0x198   :  { %2792 = vst [vmem:[%s6220_s5 + $0x2d8] sm:$0xff] %v3588_v42  ;;  %v1419_v46 = vpop.f32.mrf.mxu0 }
 0x199   :  { %3591 = vtanh.f32 %v1364_v45  ;;  %v1420_v47 = vadd.f32 %v1419_v46, %v4741_v44  ;;  %v1508_v49 = vpop.f32.mrf.mxu1  ;;  %v3180_v46 = vor.u32 %v3496_v40, %v3179_v39 }
 0x19b   :  { %v3590_v50 = vpop.eup %3589  ;;  %v1509_v48 = vadd.f32 %v1508_v49, %v1420_v47  ;;  %v3403_v47 = vld [vmem:[%s6217_s3 + $0x320] sm:$0xf]  ;;  %v3552_v49 = vld [vmem:[%s6217_s3 + $0x338] sm:$0xf0]  ;;  %1943 = vmatpush.bf16.msra.mxu2 %v3180_v46 }
 0x19c   :  { %2701 = vst [vmem:[%s6220_s5 + $0x8] sm:$0xff] %v3590_v50  ;;  %v1276_v52 = vpop.f32.mrf.mxu2  ;;  %v3404_v50 = vor.u32 %v3552_v49, %v3403_v47 }
 0x19d   :  { %3593 = vtanh.f32 %v1509_v48  ;;  %v1277_v55 = vadd.f32 %v1276_v52, %v4574_v20  ;;  %v1365_v51 = vpop.f32.mrf.mxu3 }
 0x19e   :  { %2032 = vmatpush.bf16.msra.mxu3 %v3404_v50 }
 0x19f   :  { %v3592_v15 = vpop.eup %3591  ;;  %v1366_v57 = vadd.f32 %v1365_v51, %v1277_v55  ;;  %v3492_v51 = vld [vmem:[%s6217_s3 + $0x15c] sm:$0xf] }
 0x1a0   :  { %2799 = vst [vmem:[%s6220_s5 + $0x310] sm:$0xff] %v3592_v15  ;;  %v1422_v58 = vpop.f32.mrf.mxu0  ;;  %v3173_v15 = vld [vmem:[%s6217_s3 + $0x174] sm:$0xf0] }
 0x1a1   :  { %3595 = vtanh.f32 %v1366_v57  ;;  %v1423_v61 = vadd.f32 %v1422_v58, %v4741_v44  ;;  %v1511_v2 = vpop.f32.mrf.mxu1  ;;  %1594 = vmatmul.bf16.vlgmr.msrb.gmra.mxu2 %v4299_v4 }
 0x1a2   :  { %1683 = vmatmul.bf16.vlgmr.msrb.gmra.mxu3 %v4301_v6 }
 0x1a3   :  { %v3594_v5 = vpop.eup %3593  ;;  %v1512_v10 = vadd.f32 %v1511_v2, %v1423_v61  ;;  %1461 = vmatmul.bf16.gmra.mxu0 %v4597_v0  ;;  %v3176_v61 = vor.u32 %v3492_v51, %v3173_v15 }
 0x1a4   :  { %2709 = vst [vmem:[%s6220_s5 + $0x40] sm:$0xff] %v3594_v5  ;;  %1550 = vmatmul.bf16.gmra.mxu1 %v4602_v3  ;;  %v1279_v12 = vpop.f32.mrf.mxu2 }
 0x1a5   :  { %3597 = vtanh.f32 %v1512_v10  ;;  %v1280_v14 = vadd.f32 %v1279_v12, %v4574_v20  ;;  %v1368_v23 = vpop.f32.mrf.mxu3  ;;  %1765 = vmatpush.bf16.msra.mxu0 %v3176_v61  ;;  %v3548_v12 = vld [vmem:[%s6217_s3 + $0x31c] sm:$0xf] }
 0x1a7   :  { %v3596_v25 = vpop.eup %3595  ;;  %v1369_v26 = vadd.f32 %v1368_v23, %v1280_v14  ;;  %v3397_v14 = vld [vmem:[%s6217_s3 + $0x334] sm:$0xf0] }
 0x1a8   :  { %2806 = vst [vmem:[%s6220_s5 + $0x348] sm:$0xff] %v3596_v25  ;;  %v1424_v27 = vpop.f32.mrf.mxu0 }
 0x1a9   :  { %3599 = vtanh.f32 %v1369_v26  ;;  %v1425_v29 = vadd.f32 %v1424_v27, %v4741_v44  ;;  %v1513_v31 = vpop.f32.mrf.mxu1  ;;  %v3400_v26 = vor.u32 %v3548_v12, %v3397_v14 }
 0x1ab   :  { %v3598_v32 = vpop.eup %3597  ;;  %v1514_v35 = vadd.f32 %v1513_v31, %v1425_v29  ;;  %1854 = vmatpush.bf16.msra.mxu1 %v3400_v26  ;;  %v3489_v26 = vld [vmem:[%s6217_s3 + $0x140] sm:$0xf0] }
 0x1ac   :  { %2716 = vst [vmem:[%s6220_s5 + $0x78] sm:$0xff] %v3598_v32  ;;  %v1281_v38 = vpop.f32.mrf.mxu2 }
 0x1ad   :  { %3601 = vtanh.f32 %v1514_v35  ;;  %v1282_v42 = vadd.f32 %v1281_v38, %v4574_v20  ;;  %v1370_v45 = vpop.f32.mrf.mxu3 }
 0x1af   :  { %v3600_v48 = vpop.eup %3599  ;;  %v1371_v52 = vadd.f32 %v1370_v45, %v1282_v42 }
 0x1b0   :  { %2813 = vst [vmem:[%s6220_s5 + $0x380] sm:$0xff] %v3600_v48  ;;  %v1427_v55 = vpop.f32.mrf.mxu0 }
 0x1b1   :  { %3603 = vtanh.f32 %v1371_v52  ;;  %v1428_v57 = vadd.f32 %v1427_v55, %v4741_v44  ;;  %v1516_v58 = vpop.f32.mrf.mxu1  ;;  %1599 = vmatmul.bf16.gmra.mxu2 %v4335_v34 }
 0x1b2   :  { %1688 = vmatmul.bf16.gmra.mxu3 %v4337_v36 }
 0x1b3   :  { %v3602_v2 = vpop.eup %3601  ;;  %v1517_v5 = vadd.f32 %v1516_v58, %v1428_v57  ;;  %1466 = vmatmul.bf16.gmra.mxu0 %v4617_v41 }
 0x1b4   :  { %2723 = vst [vmem:[%s6220_s5 + $0xb0] sm:$0xff] %v3602_v2  ;;  %1555 = vmatmul.bf16.gmra.mxu1 %v4622_v43  ;;  %v1284_v10 = vpop.f32.mrf.mxu2 }
 0x1b5   :  { %3605 = vtanh.f32 %v1517_v5  ;;  %v1285_v23 = vadd.f32 %v1284_v10, %v4574_v20  ;;  %v1373_v25 = vpop.f32.mrf.mxu3 }
 0x1b7   :  { %v3604_v27 = vpop.eup %3603  ;;  %v1374_v29 = vadd.f32 %v1373_v25, %v1285_v23  ;;  %v3151_v25 = vld [vmem:[%s6217_s3 + $0x128] sm:$0xf] }
 0x1b8   :  { %2820 = vst [vmem:[%s6220_s5 + $0x3b8] sm:$0xff] %v3604_v27  ;;  %v1429_v31 = vpop.f32.mrf.mxu0 }
 0x1b9   :  { %3607 = vtanh.f32 %v1374_v29  ;;  %v1430_v32 = vadd.f32 %v1429_v31, %v4741_v44  ;;  %v1518_v35 = vpop.f32.mrf.mxu1  ;;  %v3152_v31 = vor.u32 %v3489_v26, %v3151_v25 }
 0x1bb   :  { %v3606_v38 = vpop.eup %3605  ;;  %v1519_v39 = vadd.f32 %v1518_v35, %v1430_v32  ;;  %v3375_v32 = vld [vmem:[%s6217_s3 + $0x2e8] sm:$0xf]  ;;  %v3545_v35 = vld [vmem:[%s6217_s3 + $0x300] sm:$0xf0]  ;;  %1944 = vmatpush.bf16.msra.mxu2 %v3152_v31  ;;  %v3478_v31 = vld [vmem:[%s6217_s3 + $0xec] sm:$0xf] }
 0x1bc   :  { %2730 = vst [vmem:[%s6220_s5 + $0xe8] sm:$0xff] %v3606_v38  ;;  %v1286_v40 = vpop.f32.mrf.mxu2  ;;  %v3376_v38 = vor.u32 %v3545_v35, %v3375_v32  ;;  %v3117_v32 = vld [vmem:[%s6217_s3 + $0x104] sm:$0xf0]  ;;  %v3534_v35 = vld [vmem:[%s6217_s3 + $0x2ac] sm:$0xf] }
 0x1bd   :  { %3609 = vtanh.f32 %v1519_v39  ;;  %v1287_v42 = vadd.f32 %v1286_v40, %v4574_v20  ;;  %v1375_v45 = vpop.f32.mrf.mxu3 }
 0x1be   :  { %2033 = vmatpush.bf16.msra.mxu3 %v3376_v38 }
 0x1bf   :  { %v3608_v46 = vpop.eup %3607  ;;  %v1376_v47 = vadd.f32 %v1375_v45, %v1287_v42  ;;  %v3485_v45 = vld [vmem:[%s6217_s3 + $0x124] sm:$0xf] }
 0x1c0   :  { %2827 = vst [vmem:[%s6220_s5 + $0x3f0] sm:$0xff] %v3608_v46  ;;  %v1432_v49 = vpop.f32.mrf.mxu0  ;;  %v3145_v46 = vld [vmem:[%s6217_s3 + $0x13c] sm:$0xf0] }
 0x1c1   :  { %3611 = vtanh.f32 %v1376_v47  ;;  %v1433_v50 = vadd.f32 %v1432_v49, %v4741_v44  ;;  %v1521_v48 = vpop.f32.mrf.mxu1  ;;  %1604 = vmatmul.bf16.gmra.mxu2 %v4359_v60 }
 0x1c2   :  { %1693 = vmatmul.bf16.gmra.mxu3 %v4361_v62 }
 0x1c3   :  { %v3610_v52 = vpop.eup %3609  ;;  %v1522_v55 = vadd.f32 %v1521_v48, %v1433_v50  ;;  %1471 = vmatmul.bf16.gmra.mxu0 %v4649_v33  ;;  %v3148_v50 = vor.u32 %v3485_v45, %v3145_v46 }
 0x1c4   :  { %2737 = vst [vmem:[%s6220_s5 + $0x120] sm:$0xff] %v3610_v52  ;;  %1560 = vmatmul.bf16.gmra.mxu1 %v4654_v37  ;;  %v1289_v51 = vpop.f32.mrf.mxu2 }
 0x1c5   :  { %3613 = vtanh.f32 %v1522_v55  ;;  %v1290_v15 = vadd.f32 %v1289_v51, %v4574_v20  ;;  %v1378_v57 = vpop.f32.mrf.mxu3  ;;  %1766 = vmatpush.bf16.msra.mxu0 %v3148_v50  ;;  %v3541_v51 = vld [vmem:[%s6217_s3 + $0x2e4] sm:$0xf]  ;;  %v3471_v50 = vld [vmem:[%s6217_s3 + $0xb4] sm:$0xf] }
 0x1c7   :  { %v3612_v58 = vpop.eup %3611  ;;  %v1379_v61 = vadd.f32 %v1378_v57, %v1290_v15  ;;  %v3369_v15 = vld [vmem:[%s6217_s3 + $0x2fc] sm:$0xf0] }
 0x1c8   :  { %2834 = vst [vmem:[%s6220_s5 + $0x428] sm:$0xff] %v3612_v58  ;;  %v1434_v2 = vpop.f32.mrf.mxu0 }
 0x1c9   :  { %3615 = vtanh.f32 %v1379_v61  ;;  %v1435_v5 = vadd.f32 %v1434_v2, %v4741_v44  ;;  %v1523_v10 = vpop.f32.mrf.mxu1  ;;  %v3372_v61 = vor.u32 %v3541_v51, %v3369_v15 }
 0x1cb   :  { %v3614_v12 = vpop.eup %3613  ;;  %v1524_v14 = vadd.f32 %v1523_v10, %v1435_v5  ;;  %1855 = vmatpush.bf16.msra.mxu1 %v3372_v61 }
 0x1cc   :  { %2744 = vst [vmem:[%s6220_s5 + $0x158] sm:$0xff] %v3614_v12  ;;  %v1291_v23 = vpop.f32.mrf.mxu2 }
 0x1cd   :  { %3617 = vtanh.f32 %v1524_v14  ;;  %v1292_v27 = vadd.f32 %v1291_v23, %v4574_v20  ;;  %v1380_v29 = vpop.f32.mrf.mxu3 }
 0x1cf   :  { %v3616_v39 = vpop.eup %3615  ;;  %v1381_v40 = vadd.f32 %v1380_v29, %v1292_v27 }
 0x1d0   :  { %2841 = vst [vmem:[%s6220_s5 + $0x460] sm:$0xff] %v3616_v39  ;;  %v1437_v42 = vpop.f32.mrf.mxu0 }
 0x1d1   :  { %3619 = vtanh.f32 %v1381_v40  ;;  %v1438_v47 = vadd.f32 %v1437_v42, %v4741_v44  ;;  %v1526_v49 = vpop.f32.mrf.mxu1  ;;  %1609 = vmatmul.bf16.gmra.mxu2 %v4395_v28  ;;  %v3120_v40 = vor.u32 %v3478_v31, %v3117_v32  ;;  %v3341_v42 = vld [vmem:[%s6217_s3 + $0x2c4] sm:$0xf0] }
 0x1d2   :  { %1698 = vmatmul.bf16.gmra.mxu3 %v4397_v30  ;;  %v3344_v46 = vor.u32 %v3534_v35, %v3341_v42 }
 0x1d3   :  { %v3618_v48 = vpop.eup %3617  ;;  %v1527_v52 = vadd.f32 %v1526_v49, %v1438_v47  ;;  %1476 = vmatmul.bf16.gmra.mxu0 %v4669_v18 }
 0x1d4   :  { %2751 = vst [vmem:[%s6220_s5 + $0x190] sm:$0xff] %v3618_v48  ;;  %1565 = vmatmul.bf16.gmra.mxu1 %v4674_v21  ;;  %v1294_v55 = vpop.f32.mrf.mxu2  ;;  %1767 = vmatpush.bf16.msra.mxu0 %v3120_v40  ;;  %v3089_v48 = vld [vmem:[%s6217_s3 + $0xcc] sm:$0xf0]  ;;  %v3513_v40 = vld [vmem:[%s6217_s3 + $0x204] sm:$0xf] }
 0x1d5   :  { %3621 = vtanh.f32 %v1527_v52  ;;  %v1295_v57 = vadd.f32 %v1294_v55, %v4574_v20  ;;  %v1383_v58 = vpop.f32.mrf.mxu3  ;;  %1856 = vmatpush.bf16.msra.mxu1 %v3344_v46  ;;  %v3527_v52 = vld [vmem:[%s6217_s3 + $0x274] sm:$0xf]  ;;  %v3092_v15 = vor.u32 %v3471_v50, %v3089_v48  ;;  %v3123_v50 = vld [vmem:[%s6217_s3 + $0xf0] sm:$0xf]  ;;  %v3482_v48 = vld [vmem:[%s6217_s3 + $0x108] sm:$0xf0] }
 0x1d7   :  { %v3620_v2 = vpop.eup %3619  ;;  %v1384_v5 = vadd.f32 %v1383_v58, %v1295_v57  ;;  %v3313_v57 = vld [vmem:[%s6217_s3 + $0x28c] sm:$0xf0] }
 0x1d8   :  { %2848 = vst [vmem:[%s6220_s5 + $0x498] sm:$0xff] %v3620_v2  ;;  %v1439_v10 = vpop.f32.mrf.mxu0  ;;  %v3316_v61 = vor.u32 %v3527_v52, %v3313_v57  ;;  %1768 = vmatpush.bf16.msra.mxu0 %v3092_v15  ;;  %v3124_v15 = vor.u32 %v3482_v48, %v3123_v50  ;;  %v3347_v57 = vld [vmem:[%s6217_s3 + $0x2b0] sm:$0xf] }
 0x1d9   :  { %3623 = vtanh.f32 %v1384_v5  ;;  %v1440_v12 = vadd.f32 %v1439_v10, %v4741_v44  ;;  %v1528_v14 = vpop.f32.mrf.mxu1  ;;  %v3464_v10 = vld [vmem:[%s6217_s3 + $0x7c] sm:$0xf] }
 0x1da   :  { %1857 = vmatpush.bf16.msra.mxu1 %v3316_v61  ;;  %1945 = vmatpush.bf16.msra.mxu2 %v3124_v15 }
 0x1db   :  { %v3622_v23 = vpop.eup %3621  ;;  %v1529_v25 = vadd.f32 %v1528_v14, %v1440_v12  ;;  %v3061_v12 = vld [vmem:[%s6217_s3 + $0x94] sm:$0xf0]  ;;  %v3520_v14 = vld [vmem:[%s6217_s3 + $0x23c] sm:$0xf] }
 0x1dc   :  { %2758 = vst [vmem:[%s6220_s5 + $0x1c8] sm:$0xff] %v3622_v23  ;;  %v1296_v26 = vpop.f32.mrf.mxu2 }
 0x1dd   :  { %3625 = vtanh.f32 %v1529_v25  ;;  %v1297_v27 = vadd.f32 %v1296_v26, %v4574_v20  ;;  %v1385_v29 = vpop.f32.mrf.mxu3  ;;  %v3064_v26 = vor.u32 %v3464_v10, %v3061_v12  ;;  %v3506_v10 = vld [vmem:[%s6217_s3 + $0x1cc] sm:$0xf] }
 0x1df   :  { %v3624_v38 = vpop.eup %3623  ;;  %v1386_v39 = vadd.f32 %v1385_v29, %v1297_v27  ;;  %v3285_v27 = vld [vmem:[%s6217_s3 + $0x254] sm:$0xf0]  ;;  %1769 = vmatpush.bf16.msra.mxu0 %v3064_v26 }
 0x1e0   :  { %2855 = vst [vmem:[%s6220_s5 + $0x4d0] sm:$0xff] %v3624_v38  ;;  %v1442_v45 = vpop.f32.mrf.mxu0  ;;  %v3288_v31 = vor.u32 %v3520_v14, %v3285_v27  ;;  %v3457_v38 = vld [vmem:[%s6217_s3 + $0x44] sm:$0xf] }
 0x1e1   :  { %3627 = vtanh.f32 %v1386_v39  ;;  %v1443_v47 = vadd.f32 %v1442_v45, %v4741_v44  ;;  %v1531_v49 = vpop.f32.mrf.mxu1  ;;  %1614 = vmatmul.bf16.gmra.mxu2 %v4428_v59  ;;  %v3033_v39 = vld [vmem:[%s6217_s3 + $0x5c] sm:$0xf0] }
 0x1e2   :  { %1703 = vmatmul.bf16.gmra.mxu3 %v4433_v1  ;;  %1858 = vmatpush.bf16.msra.mxu1 %v3288_v31  ;;  %v3036_v46 = vor.u32 %v3457_v38, %v3033_v39 }
 0x1e3   :  { %v3626_v55 = vpop.eup %3625  ;;  %v1532_v51 = vadd.f32 %v1531_v49, %v1443_v47  ;;  %1481 = vmatmul.bf16.gmra.mxu0 %v4701_v13  ;;  %v3257_v47 = vld [vmem:[%s6217_s3 + $0x21c] sm:$0xf0] }
 0x1e4   :  { %2765 = vst [vmem:[%s6220_s5 + $0x200] sm:$0xff] %v3626_v55  ;;  %1570 = vmatmul.bf16.gmra.mxu1 %v4706_v19  ;;  %v1299_v58 = vpop.f32.mrf.mxu2  ;;  %v3260_v52 = vor.u32 %v3513_v40, %v3257_v47  ;;  %1770 = vmatpush.bf16.msra.mxu0 %v3036_v46 }
 0x1e5   :  { %3629 = vtanh.f32 %v1532_v51  ;;  %v1300_v2 = vadd.f32 %v1299_v58, %v4574_v20  ;;  %v1388_v5 = vpop.f32.mrf.mxu3  ;;  %v3538_v58 = vld [vmem:[%s6217_s3 + $0x2c8] sm:$0xf0] }
 0x1e6   :  { %v3348_v61 = vor.u32 %v3538_v58, %v3347_v57  ;;  %1859 = vmatpush.bf16.msra.mxu1 %v3260_v52 }
 0x1e7   :  { %v3628_v23 = vpop.eup %3627  ;;  %v1389_v25 = vadd.f32 %v1388_v5, %v1300_v2  ;;  %v3450_v2 = vld [vmem:[%s6217_s3 + $0xc] sm:$0xf]  ;;  %v3005_v5 = vld [vmem:[%s6217_s3 + $0x24] sm:$0xf0] }
 0x1e8   :  { %2862 = vst [vmem:[%s6220_s5 + $0x508] sm:$0xff] %v3628_v23  ;;  %v1444_v29 = vpop.f32.mrf.mxu0  ;;  %v3008_v23 = vor.u32 %v3450_v2, %v3005_v5  ;;  %2034 = vmatpush.bf16.msra.mxu3 %v3348_v61 }
 0x1e9   :  { %3631 = vtanh.f32 %v1389_v25  ;;  %v1445_v32 = vadd.f32 %v1444_v29, %v4741_v44  ;;  %v1533_v35 = vpop.f32.mrf.mxu1  ;;  %v3229_v25 = vld [vmem:[%s6217_s3 + $0x1e4] sm:$0xf0] }
 0x1ea   :  { %v3232_v27 = vor.u32 %v3506_v10, %v3229_v25  ;;  %1771 = vmatpush.bf16.msra.mxu0 %v3008_v23 }
 0x1eb   :  { %v3630_v42 = vpop.eup %3629  ;;  %v1534_v45 = vadd.f32 %v1533_v35, %v1445_v32 }
 0x1ec   :  { %2772 = vst [vmem:[%s6220_s5 + $0x238] sm:$0xff] %v3630_v42  ;;  %v1301_v49 = vpop.f32.mrf.mxu2  ;;  %1860 = vmatpush.bf16.msra.mxu1 %v3232_v27 }
 0x1ed   :  { %3633 = vtanh.f32 %v1534_v45  ;;  %v1302_v55 = vadd.f32 %v1301_v49, %v4574_v20  ;;  %v1390_v51 = vpop.f32.mrf.mxu3 }
 0x1ef   :  { %v3632_v12 = vpop.eup %3631  ;;  %v1391_v14 = vadd.f32 %v1390_v51, %v1302_v55 }
 0x1f0   :  { %2869 = vst [vmem:[%s6220_s5 + $0x540] sm:$0xff] %v3632_v12  ;;  %v1447_v26 = vpop.f32.mrf.mxu0 }
 0x1f1   :  { %3635 = vtanh.f32 %v1391_v14  ;;  %v1448_v29 = vadd.f32 %v1447_v26, %v4741_v44  ;;  %v1536_v31 = vpop.f32.mrf.mxu1  ;;  %1619 = vmatmul.bf16.gmra.mxu2 %v4506_v56 }
 0x1f2   :  { %1708 = vmatmul.bf16.gmra.mxu3 %v4511_v63 }
 0x1f3   :  { %v3634_v32 = vpop.eup %3633  ;;  %v1537_v35 = vadd.f32 %v1536_v31, %v1448_v29  ;;  %1486 = vmatmul.bf16.gmra.mxu0 %v4721_v7 }
 0x1f4   :  { %2779 = vst [vmem:[%s6220_s5 + $0x270] sm:$0xff] %v3634_v32  ;;  %1575 = vmatmul.bf16.gmra.mxu1 %v4726_v9  ;;  %v1304_v38 = vpop.f32.mrf.mxu2 }
 0x1f5   :  { %3637 = vtanh.f32 %v1537_v35  ;;  %v1305_v39 = vadd.f32 %v1304_v38, %v4574_v20  ;;  %v1393_v40 = vpop.f32.mrf.mxu3 }
 0x1f7   :  { %v3636_v42 = vpop.eup %3635  ;;  %v1394_v45 = vadd.f32 %v1393_v40, %v1305_v39  ;;  %v3095_v39 = vld [vmem:[%s6217_s3 + $0xb8] sm:$0xf]  ;;  %v3475_v40 = vld [vmem:[%s6217_s3 + $0xd0] sm:$0xf0] }
 0x1f8   :  { %2876 = vst [vmem:[%s6220_s5 + $0x578] sm:$0xff] %v3636_v42  ;;  %v1449_v46 = vpop.f32.mrf.mxu0 }
 0x1f9   :  { %3639 = vtanh.f32 %v1394_v45  ;;  %v1450_v47 = vadd.f32 %v1449_v46, %v4741_v44  ;;  %v1538_v49 = vpop.f32.mrf.mxu1  ;;  %v3096_v46 = vor.u32 %v3475_v40, %v3095_v39 }
 0x1fb   :  { %v3638_v50 = vpop.eup %3637  ;;  %v1539_v48 = vadd.f32 %v1538_v49, %v1450_v47  ;;  %v3319_v47 = vld [vmem:[%s6217_s3 + $0x278] sm:$0xf]  ;;  %v3531_v49 = vld [vmem:[%s6217_s3 + $0x290] sm:$0xf0]  ;;  %1946 = vmatpush.bf16.msra.mxu2 %v3096_v46 }
 0x1fc   :  { %2786 = vst [vmem:[%s6220_s5 + $0x2a8] sm:$0xff] %v3638_v50  ;;  %v1306_v52 = vpop.f32.mrf.mxu2  ;;  %v3320_v50 = vor.u32 %v3531_v49, %v3319_v47 }
 0x1fd   :  { %3641 = vtanh.f32 %v1539_v48  ;;  %v1307_v55 = vadd.f32 %v1306_v52, %v4574_v20  ;;  %v1395_v51 = vpop.f32.mrf.mxu3 }
 0x1fe   :  { %2035 = vmatpush.bf16.msra.mxu3 %v3320_v50 }
 0x1ff   :  { %v3640_v15 = vpop.eup %3639  ;;  %v1396_v57 = vadd.f32 %v1395_v51, %v1307_v55 }
 0x200   :  { %2883 = vst [vmem:[%s6220_s5 + $0x5b0] sm:$0xff] %v3640_v15  ;;  %v1452_v58 = vpop.f32.mrf.mxu0 }
 0x201   :  { %3643 = vtanh.f32 %v1396_v57  ;;  %v1453_v61 = vadd.f32 %v1452_v58, %v4741_v44  ;;  %v1541_v2 = vpop.f32.mrf.mxu1  ;;  %1624 = vmatmul.bf16.gmra.mxu2 %v4527_v22 }
 0x202   :  { %1713 = vmatmul.bf16.gmra.mxu3 %v4529_v24 }
 0x203   :  { %v3642_v5 = vpop.eup %3641  ;;  %v1542_v10 = vadd.f32 %v1541_v2, %v1453_v61  ;;  %1491 = vmatmul.bf16.gmra.mxu0 %v4756_v8 }
 0x204   :  { %2793 = vst [vmem:[%s6220_s5 + $0x2e0] sm:$0xff] %v3642_v5  ;;  %1580 = vmatmul.bf16.gmra.mxu1 %v4761_v11  ;;  %v1309_v12 = vpop.f32.mrf.mxu2 }
 0x205   :  { %3645 = vtanh.f32 %v1542_v10  ;;  %v1310_v14 = vadd.f32 %v1309_v12, %v4574_v20  ;;  %v1398_v23 = vpop.f32.mrf.mxu3 }
 0x207   :  { %v3644_v25 = vpop.eup %3643  ;;  %v1399_v26 = vadd.f32 %v1398_v23, %v1310_v14 }
 0x208   :  { %2890 = vst [vmem:[%s6220_s5 + $0x5e8] sm:$0xff] %v3644_v25  ;;  %v1454_v27 = vpop.f32.mrf.mxu0 }
 0x209   :  { %3647 = vtanh.f32 %v1399_v26  ;;  %v1455_v29 = vadd.f32 %v1454_v27, %v4741_v44  ;;  %v1543_v31 = vpop.f32.mrf.mxu1 }
 0x20b   :  { %v3646_v32 = vpop.eup %3645  ;;  %v1544_v35 = vadd.f32 %v1543_v31, %v1455_v29 }
 0x20c   :  { %2800 = vst [vmem:[%s6220_s5 + $0x318] sm:$0xff] %v3646_v32  ;;  %v1311_v38 = vpop.f32.mrf.mxu2 }
 0x20d   :  { %3649 = vtanh.f32 %v1544_v35  ;;  %v1312_v42 = vadd.f32 %v1311_v38, %v4574_v20  ;;  %v1400_v45 = vpop.f32.mrf.mxu3 }
 0x20f   :  { %v3648_v48 = vpop.eup %3647  ;;  %v1401_v52 = vadd.f32 %v1400_v45, %v1312_v42  ;;  %v5089_v45 = vld [vmem:[%s6219_s4] sm:$0x7f] }
 0x210   :  { %2897 = vst [vmem:[%s6220_s5 + $0x620] sm:$0xff] %v3648_v48  ;;  %v1457_v55 = vpop.f32.mrf.mxu0 }
 0x211   :  { %3651 = vtanh.f32 %v1401_v52  ;;  %v1458_v51 = vadd.f32 %v1457_v55, %v4741_v44  ;;  %v1546_v15 = vpop.f32.mrf.mxu1  ;;  %1629 = vmatmul.bf16.gmra.mxu2 %v4551_v53 }
 0x212   :  { %1718 = vmatmul.bf16.gmra.mxu3 %v4553_v54 }
 0x213   :  { %v3650_v57 = vpop.eup %3649  ;;  %v1547_v58 = vadd.f32 %v1546_v15, %v1458_v51  ;;  %1772 = vmatmul.bf16.vlgmr.msra.gmra.mxu0 %v4299_v4 }
 0x214   :  { %2807 = vst [vmem:[%s6220_s5 + $0x350] sm:$0xff] %v3650_v57  ;;  %1861 = vmatmul.bf16.vlgmr.msra.gmra.mxu1 %v4301_v6  ;;  %v1314_v61 = vpop.f32.mrf.mxu2 }
 0x215   :  { %3653 = vtanh.f32 %v1547_v58  ;;  %v1315_v2 = vadd.f32 %v1314_v61, %v4574_v20  ;;  %v1403_v5 = vpop.f32.mrf.mxu3 }
 0x217   :  { %v3652_v10 = vpop.eup %3651  ;;  %v1404_v12 = vadd.f32 %v1403_v5, %v1315_v2  ;;  %v3067_v5 = vld [vmem:[%s6217_s3 + $0x80] sm:$0xf] }
 0x218   :  { %2904 = vst [vmem:[%s6220_s5 + $0x658] sm:$0xff] %v3652_v10  ;;  %v1459_v14 = vpop.f32.mrf.mxu0  ;;  %v3468_v10 = vld [vmem:[%s6217_s3 + $0x98] sm:$0xf0] }
 0x219   :  { %3655 = vtanh.f32 %v1404_v12  ;;  %v1460_v23 = vadd.f32 %v1459_v14, %v4741_v44  ;;  %v1548_v25 = vpop.f32.mrf.mxu1 }
 0x21b   :  { %v3654_v26 = vpop.eup %3653  ;;  %v1549_v27 = vadd.f32 %v1548_v25, %v1460_v23  ;;  %v3068_v23 = vor.u32 %v3468_v10, %v3067_v5  ;;  %v3291_v25 = vld [vmem:[%s6217_s3 + $0x240] sm:$0xf] }
 0x21c   :  { %2814 = vst [vmem:[%s6220_s5 + $0x388] sm:$0xff] %v3654_v26  ;;  %v1316_v29 = vpop.f32.mrf.mxu2  ;;  %v3524_v26 = vld [vmem:[%s6217_s3 + $0x258] sm:$0xf0] }
 0x21d   :  { %3657 = vtanh.f32 %v1549_v27  ;;  %v1317_v31 = vadd.f32 %v1316_v29, %v4574_v20  ;;  %v1405_v32 = vpop.f32.mrf.mxu3  ;;  %v5092_v20 = vperm.slane %v5089_v45, 2  ;;  %v3292_v27 = vor.u32 %v3524_v26, %v3291_v25  ;;  %1947 = vmatpush.bf16.msra.mxu2 %v3068_v23 }
 0x21f   :  { %v3656_v35 = vpop.eup %3655  ;;  %v1406_v38 = vadd.f32 %v1405_v32, %v1317_v31  ;;  %2036 = vmatpush.bf16.msra.mxu3 %v3292_v27 }
 0x220   :  { %2911 = vst [vmem:[%s6220_s5 + $0x690] sm:$0xff] %v3656_v35  ;;  %v1462_v39 = vpop.f32.mrf.mxu0 }
 0x221   :  { %3659 = vtanh.f32 %v1406_v38  ;;  %v1463_v40 = vadd.f32 %v1462_v39, %v4741_v44  ;;  %v1551_v42 = vpop.f32.mrf.mxu1  ;;  %1634 = vmatmul.bf16.gmra.mxu2 %v4568_v16 }
 0x222   :  { %1723 = vmatmul.bf16.gmra.mxu3 %v4570_v17 }
 0x223   :  { %v3658_v46 = vpop.eup %3657  ;;  %v1552_v47 = vadd.f32 %v1551_v42, %v1463_v40  ;;  %1777 = vmatmul.bf16.gmra.mxu0 %v4335_v34 }
 0x224   :  { %2821 = vst [vmem:[%s6220_s5 + $0x3c0] sm:$0xff] %v3658_v46  ;;  %1866 = vmatmul.bf16.gmra.mxu1 %v4337_v36  ;;  %v1595_v49 = vpop.f32.mrf.mxu2 }
 0x225   :  { %3661 = vtanh.f32 %v1552_v47  ;;  %v1596_v50 = vadd.f32 %v1595_v49, %v5092_v20  ;;  %v1684_v48 = vpop.f32.mrf.mxu3 }
 0x227   :  { %v3660_v52 = vpop.eup %3659  ;;  %v1685_v55 = vadd.f32 %v1684_v48, %v1596_v50 }
 0x228   :  { %2918 = vst [vmem:[%s6220_s5 + $0x6c8] sm:$0xff] %v3660_v52  ;;  %v1464_v51 = vpop.f32.mrf.mxu0 }
 0x229   :  { %3663 = vtanh.f32 %v1685_v55  ;;  %v1465_v15 = vadd.f32 %v1464_v51, %v4741_v44  ;;  %v1553_v57 = vpop.f32.mrf.mxu1 }
 0x22b   :  { %v3662_v58 = vpop.eup %3661  ;;  %v1554_v61 = vadd.f32 %v1553_v57, %v1465_v15 }
 0x22c   :  { %2828 = vst [vmem:[%s6220_s5 + $0x3f8] sm:$0xff] %v3662_v58  ;;  %v1597_v2 = vpop.f32.mrf.mxu2 }
 0x22d   :  { %3665 = vtanh.f32 %v1554_v61  ;;  %v1598_v12 = vadd.f32 %v1597_v2, %v5092_v20  ;;  %v1686_v14 = vpop.f32.mrf.mxu3 }
 0x22f   :  { %v3664_v29 = vpop.eup %3663  ;;  %v1687_v31 = vadd.f32 %v1686_v14, %v1598_v12 }
 0x230   :  { %2702 = vst [vmem:[%s6220_s5 + $0x10] sm:$0xff] %v3664_v29  ;;  %v1467_v32 = vpop.f32.mrf.mxu0 }
 0x231   :  { %3667 = vtanh.f32 %v1687_v31  ;;  %v1468_v35 = vadd.f32 %v1467_v32, %v4741_v44  ;;  %v1556_v38 = vpop.f32.mrf.mxu1  ;;  %1639 = vmatmul.bf16.gmra.mxu2 %v4597_v0 }
 0x232   :  { %1728 = vmatmul.bf16.gmra.mxu3 %v4602_v3 }
 0x233   :  { %v3666_v39 = vpop.eup %3665  ;;  %v1557_v40 = vadd.f32 %v1556_v38, %v1468_v35  ;;  %1782 = vmatmul.bf16.gmra.mxu0 %v4359_v60 }
 0x234   :  { %2835 = vst [vmem:[%s6220_s5 + $0x430] sm:$0xff] %v3666_v39  ;;  %1871 = vmatmul.bf16.gmra.mxu1 %v4361_v62  ;;  %v1600_v42 = vpop.f32.mrf.mxu2 }
 0x235   :  { %3669 = vtanh.f32 %v1557_v40  ;;  %v1601_v46 = vadd.f32 %v1600_v42, %v5092_v20  ;;  %v1689_v47 = vpop.f32.mrf.mxu3 }
 0x237   :  { %v3668_v49 = vpop.eup %3667  ;;  %v1690_v50 = vadd.f32 %v1689_v47, %v1601_v46  ;;  %v3039_v47 = vld [vmem:[%s6217_s3 + $0x48] sm:$0xf] }
 0x238   :  { %2710 = vst [vmem:[%s6220_s5 + $0x48] sm:$0xff] %v3668_v49  ;;  %v1469_v48 = vpop.f32.mrf.mxu0  ;;  %v3461_v49 = vld [vmem:[%s6217_s3 + $0x60] sm:$0xf0] }
 0x239   :  { %3671 = vtanh.f32 %v1690_v50  ;;  %v1470_v52 = vadd.f32 %v1469_v48, %v4741_v44  ;;  %v1558_v55 = vpop.f32.mrf.mxu1 }
 0x23b   :  { %v3670_v51 = vpop.eup %3669  ;;  %v1559_v15 = vadd.f32 %v1558_v55, %v1470_v52  ;;  %v3040_v52 = vor.u32 %v3461_v49, %v3039_v47  ;;  %v3263_v55 = vld [vmem:[%s6217_s3 + $0x208] sm:$0xf] }
 0x23c   :  { %2842 = vst [vmem:[%s6220_s5 + $0x468] sm:$0xff] %v3670_v51  ;;  %v1602_v57 = vpop.f32.mrf.mxu2  ;;  %v3517_v51 = vld [vmem:[%s6217_s3 + $0x220] sm:$0xf0] }
 0x23d   :  { %3673 = vtanh.f32 %v1559_v15  ;;  %v1603_v58 = vadd.f32 %v1602_v57, %v5092_v20  ;;  %v1691_v61 = vpop.f32.mrf.mxu3  ;;  %v3264_v15 = vor.u32 %v3517_v51, %v3263_v55  ;;  %1948 = vmatpush.bf16.msra.mxu2 %v3040_v52 }
 0x23f   :  { %v3672_v2 = vpop.eup %3671  ;;  %v1692_v5 = vadd.f32 %v1691_v61, %v1603_v58  ;;  %2037 = vmatpush.bf16.msra.mxu3 %v3264_v15 }
 0x240   :  { %2717 = vst [vmem:[%s6220_s5 + $0x80] sm:$0xff] %v3672_v2  ;;  %v1472_v10 = vpop.f32.mrf.mxu0 }
 0x241   :  { %3675 = vtanh.f32 %v1692_v5  ;;  %v1473_v12 = vadd.f32 %v1472_v10, %v4741_v44  ;;  %v1561_v14 = vpop.f32.mrf.mxu1  ;;  %1644 = vmatmul.bf16.gmra.mxu2 %v4617_v41 }
 0x242   :  { %1733 = vmatmul.bf16.gmra.mxu3 %v4622_v43 }
 0x243   :  { %v3674_v23 = vpop.eup %3673  ;;  %v1562_v25 = vadd.f32 %v1561_v14, %v1473_v12  ;;  %1787 = vmatmul.bf16.gmra.mxu0 %v4395_v28 }
 0x244   :  { %2849 = vst [vmem:[%s6220_s5 + $0x4a0] sm:$0xff] %v3674_v23  ;;  %1876 = vmatmul.bf16.gmra.mxu1 %v4397_v30  ;;  %v1605_v26 = vpop.f32.mrf.mxu2 }
 0x245   :  { %3677 = vtanh.f32 %v1562_v25  ;;  %v1606_v27 = vadd.f32 %v1605_v26, %v5092_v20  ;;  %v1694_v29 = vpop.f32.mrf.mxu3 }
 0x247   :  { %v3676_v31 = vpop.eup %3675  ;;  %v1695_v32 = vadd.f32 %v1694_v29, %v1606_v27 }
 0x248   :  { %2724 = vst [vmem:[%s6220_s5 + $0xb8] sm:$0xff] %v3676_v31  ;;  %v1474_v35 = vpop.f32.mrf.mxu0 }
 0x249   :  { %3679 = vtanh.f32 %v1695_v32  ;;  %v1475_v38 = vadd.f32 %v1474_v35, %v4741_v44  ;;  %v1563_v39 = vpop.f32.mrf.mxu1 }
 0x24b   :  { %v3678_v40 = vpop.eup %3677  ;;  %v1564_v42 = vadd.f32 %v1563_v39, %v1475_v38 }
 0x24c   :  { %2856 = vst [vmem:[%s6220_s5 + $0x4d8] sm:$0xff] %v3678_v40  ;;  %v1607_v46 = vpop.f32.mrf.mxu2 }
 0x24d   :  { %3681 = vtanh.f32 %v1564_v42  ;;  %v1608_v50 = vadd.f32 %v1607_v46, %v5092_v20  ;;  %v1696_v48 = vpop.f32.mrf.mxu3 }
 0x24f   :  { %v3680_v57 = vpop.eup %3679  ;;  %v1697_v58 = vadd.f32 %v1696_v48, %v1608_v50 }
 0x250   :  { %2731 = vst [vmem:[%s6220_s5 + $0xf0] sm:$0xff] %v3680_v57  ;;  %v1477_v61 = vpop.f32.mrf.mxu0 }
 0x251   :  { %3683 = vtanh.f32 %v1697_v58  ;;  %v1478_v2 = vadd.f32 %v1477_v61, %v4741_v44  ;;  %v1566_v5 = vpop.f32.mrf.mxu1  ;;  %1649 = vmatmul.bf16.gmra.mxu2 %v4649_v33 }
 0x252   :  { %1738 = vmatmul.bf16.gmra.mxu3 %v4654_v37 }
 0x253   :  { %v3682_v10 = vpop.eup %3681  ;;  %v1567_v12 = vadd.f32 %v1566_v5, %v1478_v2  ;;  %1792 = vmatmul.bf16.gmra.mxu0 %v4428_v59 }
 0x254   :  { %2863 = vst [vmem:[%s6220_s5 + $0x510] sm:$0xff] %v3682_v10  ;;  %1881 = vmatmul.bf16.gmra.mxu1 %v4433_v1  ;;  %v1610_v14 = vpop.f32.mrf.mxu2 }
 0x255   :  { %3685 = vtanh.f32 %v1567_v12  ;;  %v1611_v23 = vadd.f32 %v1610_v14, %v5092_v20  ;;  %v1699_v25 = vpop.f32.mrf.mxu3 }
 0x257   :  { %v3684_v26 = vpop.eup %3683  ;;  %v1700_v27 = vadd.f32 %v1699_v25, %v1611_v23  ;;  %v3011_v25 = vld [vmem:[%s6217_s3 + $0x10] sm:$0xf] }
 0x258   :  { %2738 = vst [vmem:[%s6220_s5 + $0x128] sm:$0xff] %v3684_v26  ;;  %v1479_v29 = vpop.f32.mrf.mxu0  ;;  %v3454_v26 = vld [vmem:[%s6217_s3 + $0x28] sm:$0xf0] }
 0x259   :  { %3687 = vtanh.f32 %v1700_v27  ;;  %v1480_v31 = vadd.f32 %v1479_v29, %v4741_v44  ;;  %v1568_v32 = vpop.f32.mrf.mxu1 }
 0x25b   :  { %v3686_v35 = vpop.eup %3685  ;;  %v1569_v38 = vadd.f32 %v1568_v32, %v1480_v31  ;;  %v3012_v31 = vor.u32 %v3454_v26, %v3011_v25  ;;  %v3235_v32 = vld [vmem:[%s6217_s3 + $0x1d0] sm:$0xf] }
 0x25c   :  { %2870 = vst [vmem:[%s6220_s5 + $0x548] sm:$0xff] %v3686_v35  ;;  %v1612_v39 = vpop.f32.mrf.mxu2  ;;  %v3510_v35 = vld [vmem:[%s6217_s3 + $0x1e8] sm:$0xf0] }
 0x25d   :  { %3689 = vtanh.f32 %v1569_v38  ;;  %v1613_v40 = vadd.f32 %v1612_v39, %v5092_v20  ;;  %v1701_v42 = vpop.f32.mrf.mxu3  ;;  %v3236_v38 = vor.u32 %v3510_v35, %v3235_v32  ;;  %1949 = vmatpush.bf16.msra.mxu2 %v3012_v31 }
 0x25f   :  { %v3688_v46 = vpop.eup %3687  ;;  %v1702_v47 = vadd.f32 %v1701_v42, %v1613_v40  ;;  %2038 = vmatpush.bf16.msra.mxu3 %v3236_v38 }
 0x260   :  { %2745 = vst [vmem:[%s6220_s5 + $0x160] sm:$0xff] %v3688_v46  ;;  %v1482_v49 = vpop.f32.mrf.mxu0 }
 0x261   :  { %3691 = vtanh.f32 %v1702_v47  ;;  %v1483_v50 = vadd.f32 %v1482_v49, %v4741_v44  ;;  %v1571_v48 = vpop.f32.mrf.mxu1  ;;  %1654 = vmatmul.bf16.gmra.mxu2 %v4669_v18 }
 0x262   :  { %1743 = vmatmul.bf16.gmra.mxu3 %v4674_v21 }
 0x263   :  { %v3690_v52 = vpop.eup %3689  ;;  %v1572_v55 = vadd.f32 %v1571_v48, %v1483_v50  ;;  %1797 = vmatmul.bf16.gmra.mxu0 %v4506_v56 }
 0x264   :  { %2877 = vst [vmem:[%s6220_s5 + $0x580] sm:$0xff] %v3690_v52  ;;  %1886 = vmatmul.bf16.gmra.mxu1 %v4511_v63  ;;  %v1615_v51 = vpop.f32.mrf.mxu2 }
 0x265   :  { %3693 = vtanh.f32 %v1572_v55  ;;  %v1616_v15 = vadd.f32 %v1615_v51, %v5092_v20  ;;  %v1704_v57 = vpop.f32.mrf.mxu3 }
 0x267   :  { %v3692_v58 = vpop.eup %3691  ;;  %v1705_v61 = vadd.f32 %v1704_v57, %v1616_v15 }
 0x268   :  { %2752 = vst [vmem:[%s6220_s5 + $0x198] sm:$0xff] %v3692_v58  ;;  %v1484_v2 = vpop.f32.mrf.mxu0 }
 0x269   :  { %3695 = vtanh.f32 %v1705_v61  ;;  %v1485_v5 = vadd.f32 %v1484_v2, %v4741_v44  ;;  %v1573_v10 = vpop.f32.mrf.mxu1 }
 0x26b   :  { %v3694_v12 = vpop.eup %3693  ;;  %v1574_v14 = vadd.f32 %v1573_v10, %v1485_v5 }
 0x26c   :  { %2884 = vst [vmem:[%s6220_s5 + $0x5b8] sm:$0xff] %v3694_v12  ;;  %v1617_v23 = vpop.f32.mrf.mxu2 }
 0x26d   :  { %3697 = vtanh.f32 %v1574_v14  ;;  %v1618_v27 = vadd.f32 %v1617_v23, %v5092_v20  ;;  %v1706_v29 = vpop.f32.mrf.mxu3 }
 0x26f   :  { %v3696_v39 = vpop.eup %3695  ;;  %v1707_v40 = vadd.f32 %v1706_v29, %v1618_v27 }
 0x270   :  { %2759 = vst [vmem:[%s6220_s5 + $0x1d0] sm:$0xff] %v3696_v39  ;;  %v1487_v42 = vpop.f32.mrf.mxu0 }
 0x271   :  { %3699 = vtanh.f32 %v1707_v40  ;;  %v1488_v46 = vadd.f32 %v1487_v42, %v4741_v44  ;;  %v1576_v47 = vpop.f32.mrf.mxu1  ;;  %1659 = vmatmul.bf16.gmra.mxu2 %v4701_v13 }
 0x272   :  { %1748 = vmatmul.bf16.gmra.mxu3 %v4706_v19 }
 0x273   :  { %v3698_v49 = vpop.eup %3697  ;;  %v1577_v50 = vadd.f32 %v1576_v47, %v1488_v46  ;;  %1802 = vmatmul.bf16.gmra.mxu0 %v4527_v22 }
 0x274   :  { %2891 = vst [vmem:[%s6220_s5 + $0x5f0] sm:$0xff] %v3698_v49  ;;  %1891 = vmatmul.bf16.gmra.mxu1 %v4529_v24  ;;  %v1620_v48 = vpop.f32.mrf.mxu2 }
 0x275   :  { %3701 = vtanh.f32 %v1577_v50  ;;  %v1621_v52 = vadd.f32 %v1620_v48, %v5092_v20  ;;  %v1709_v55 = vpop.f32.mrf.mxu3 }
 0x277   :  { %v3700_v51 = vpop.eup %3699  ;;  %v1710_v15 = vadd.f32 %v1709_v55, %v1621_v52  ;;  %v3215_v55 = vld [vmem:[%s6217_s3 + $0x1a0] sm:$0xf] }
 0x278   :  { %2766 = vst [vmem:[%s6220_s5 + $0x208] sm:$0xff] %v3700_v51  ;;  %v1489_v57 = vpop.f32.mrf.mxu0  ;;  %v3504_v51 = vld [vmem:[%s6217_s3 + $0x1b8] sm:$0xf0] }
 0x279   :  { %3703 = vtanh.f32 %v1710_v15  ;;  %v1490_v58 = vadd.f32 %v1489_v57, %v4741_v44  ;;  %v1578_v61 = vpop.f32.mrf.mxu1  ;;  %v5272_v57 = vperm.slane %v5089_v45, 3  ;;  %v3500_v45 = vld [vmem:[%s6217_s3 + $0x19c] sm:$0xf] }
 0x27b   :  { %v3702_v2 = vpop.eup %3701  ;;  %v1579_v5 = vadd.f32 %v1578_v61, %v1490_v58  ;;  %v3216_v58 = vor.u32 %v3504_v51, %v3215_v55  ;;  %v3439_v61 = vld [vmem:[%s6217_s3 + $0x360] sm:$0xf] }
 0x27c   :  { %2898 = vst [vmem:[%s6220_s5 + $0x628] sm:$0xff] %v3702_v2  ;;  %v1622_v10 = vpop.f32.mrf.mxu2  ;;  %v3560_v2 = vld [vmem:[%s6217_s3 + $0x378] sm:$0xf0] }
 0x27d   :  { %3705 = vtanh.f32 %v1579_v5  ;;  %v1623_v12 = vadd.f32 %v1622_v10, %v5092_v20  ;;  %v1711_v14 = vpop.f32.mrf.mxu3  ;;  %v3440_v5 = vor.u32 %v3560_v2, %v3439_v61  ;;  %2298 = vmatpush.bf16.msrb.mxu2 %v3216_v58 }
 0x27f   :  { %v3704_v23 = vpop.eup %3703  ;;  %v1712_v25 = vadd.f32 %v1711_v14, %v1623_v12  ;;  %2387 = vmatpush.bf16.msrb.mxu3 %v3440_v5 }
 0x280   :  { %2773 = vst [vmem:[%s6220_s5 + $0x240] sm:$0xff] %v3704_v23  ;;  %v1492_v26 = vpop.f32.mrf.mxu0  ;;  %v3209_v23 = vld [vmem:[%s6217_s3 + $0x1b4] sm:$0xf0] }
 0x281   :  { %3707 = vtanh.f32 %v1712_v25  ;;  %v1493_v27 = vadd.f32 %v1492_v26, %v4741_v44  ;;  %v1581_v29 = vpop.f32.mrf.mxu1  ;;  %1664 = vmatmul.bf16.gmra.mxu2 %v4721_v7 }
 0x282   :  { %1753 = vmatmul.bf16.gmra.mxu3 %v4726_v9 }
 0x283   :  { %v3706_v31 = vpop.eup %3705  ;;  %v1582_v32 = vadd.f32 %v1581_v29, %v1493_v27  ;;  %1807 = vmatmul.bf16.gmra.mxu0 %v4551_v53  ;;  %v3212_v27 = vor.u32 %v3500_v45, %v3209_v23 }
 0x284   :  { %2905 = vst [vmem:[%s6220_s5 + $0x660] sm:$0xff] %v3706_v31  ;;  %1896 = vmatmul.bf16.gmra.mxu1 %v4553_v54  ;;  %v1625_v35 = vpop.f32.mrf.mxu2 }
 0x285   :  { %3709 = vtanh.f32 %v1582_v32  ;;  %v1626_v38 = vadd.f32 %v1625_v35, %v5092_v20  ;;  %v1714_v39 = vpop.f32.mrf.mxu3  ;;  %2120 = vmatpush.bf16.msrb.mxu0 %v3212_v27  ;;  %v3556_v35 = vld [vmem:[%s6217_s3 + $0x35c] sm:$0xf] }
 0x287   :  { %v3708_v40 = vpop.eup %3707  ;;  %v1715_v42 = vadd.f32 %v1714_v39, %v1626_v38  ;;  %v3433_v38 = vld [vmem:[%s6217_s3 + $0x374] sm:$0xf0] }
 0x288   :  { %2780 = vst [vmem:[%s6220_s5 + $0x278] sm:$0xff] %v3708_v40  ;;  %v1494_v46 = vpop.f32.mrf.mxu0 }
 0x289   :  { %3711 = vtanh.f32 %v1715_v42  ;;  %v1495_v47 = vadd.f32 %v1494_v46, %v4741_v44  ;;  %v1583_v49 = vpop.f32.mrf.mxu1  ;;  %v3436_v42 = vor.u32 %v3556_v35, %v3433_v38 }
 0x28b   :  { %v3710_v50 = vpop.eup %3709  ;;  %v1584_v48 = vadd.f32 %v1583_v49, %v1495_v47  ;;  %2209 = vmatpush.bf16.msrb.mxu1 %v3436_v42  ;;  %v3497_v42 = vld [vmem:[%s6217_s3 + $0x180] sm:$0xf0] }
 0x28c   :  { %2912 = vst [vmem:[%s6220_s5 + $0x698] sm:$0xff] %v3710_v50  ;;  %v1627_v52 = vpop.f32.mrf.mxu2 }
 0x28d   :  { %3713 = vtanh.f32 %v1584_v48  ;;  %v1628_v15 = vadd.f32 %v1627_v52, %v5092_v20  ;;  %v1716_v44 = vpop.f32.mrf.mxu3 }
 0x28f   :  { %v3712_v10 = vpop.eup %3711  ;;  %v1717_v12 = vadd.f32 %v1716_v44, %v1628_v15 }
 0x290   :  { %2787 = vst [vmem:[%s6220_s5 + $0x2b0] sm:$0xff] %v3712_v10  ;;  %v1773_v14 = vpop.f32.mrf.mxu0 }
 0x291   :  { %3715 = vtanh.f32 %v1717_v12  ;;  %v1774_v25 = vadd.f32 %v1773_v14, %v5272_v57  ;;  %v1862_v26 = vpop.f32.mrf.mxu1  ;;  %1669 = vmatmul.bf16.gmra.mxu2 %v4756_v8 }
 0x292   :  { %1758 = vmatmul.bf16.gmra.mxu3 %v4761_v11 }
 0x293   :  { %v3714_v29 = vpop.eup %3713  ;;  %v1863_v31 = vadd.f32 %v1862_v26, %v1774_v25  ;;  %1812 = vmatmul.bf16.gmra.mxu0 %v4568_v16 }
 0x294   :  { %2919 = vst [vmem:[%s6220_s5 + $0x6d0] sm:$0xff] %v3714_v29  ;;  %1901 = vmatmul.bf16.gmra.mxu1 %v4570_v17  ;;  %v1630_v32 = vpop.f32.mrf.mxu2 }
 0x295   :  { %3717 = vtanh.f32 %v1863_v31  ;;  %v1631_v39 = vadd.f32 %v1630_v32, %v5092_v20  ;;  %v1719_v40 = vpop.f32.mrf.mxu3 }
 0x297   :  { %v3716_v46 = vpop.eup %3715  ;;  %v1720_v47 = vadd.f32 %v1719_v40, %v1631_v39  ;;  %v3187_v40 = vld [vmem:[%s6217_s3 + $0x168] sm:$0xf] }
 0x298   :  { %2794 = vst [vmem:[%s6220_s5 + $0x2e8] sm:$0xff] %v3716_v46  ;;  %v1775_v49 = vpop.f32.mrf.mxu0 }
 0x299   :  { %3719 = vtanh.f32 %v1720_v47  ;;  %v1776_v50 = vadd.f32 %v1775_v49, %v5272_v57  ;;  %v1864_v48 = vpop.f32.mrf.mxu1  ;;  %v3188_v49 = vor.u32 %v3497_v42, %v3187_v40 }
 0x29b   :  { %v3718_v52 = vpop.eup %3717  ;;  %v1865_v55 = vadd.f32 %v1864_v48, %v1776_v50  ;;  %v3411_v50 = vld [vmem:[%s6217_s3 + $0x328] sm:$0xf]  ;;  %v3553_v48 = vld [vmem:[%s6217_s3 + $0x340] sm:$0xf0]  ;;  %2299 = vmatpush.bf16.msrb.mxu2 %v3188_v49 }
 0x29c   :  { %2703 = vst [vmem:[%s6220_s5 + $0x18] sm:$0xff] %v3718_v52  ;;  %v1632_v51 = vpop.f32.mrf.mxu2  ;;  %v3412_v52 = vor.u32 %v3553_v48, %v3411_v50 }
 0x29d   :  { %3721 = vtanh.f32 %v1865_v55  ;;  %v1633_v15 = vadd.f32 %v1632_v51, %v5092_v20  ;;  %v1721_v44 = vpop.f32.mrf.mxu3 }
 0x29e   :  { %2388 = vmatpush.bf16.msrb.mxu3 %v3412_v52 }
 0x29f   :  { %v3720_v58 = vpop.eup %3719  ;;  %v1722_v61 = vadd.f32 %v1721_v44, %v1633_v15  ;;  %v3493_v44 = vld [vmem:[%s6217_s3 + $0x164] sm:$0xf] }
 0x2a0   :  { %2801 = vst [vmem:[%s6220_s5 + $0x320] sm:$0xff] %v3720_v58  ;;  %v1778_v2 = vpop.f32.mrf.mxu0  ;;  %v3181_v58 = vld [vmem:[%s6217_s3 + $0x17c] sm:$0xf0] }
 0x2a1   :  { %3723 = vtanh.f32 %v1722_v61  ;;  %v1779_v5 = vadd.f32 %v1778_v2, %v5272_v57  ;;  %v1867_v10 = vpop.f32.mrf.mxu1  ;;  %1950 = vmatmul.bf16.vlgmr.msra.gmra.mxu2 %v4299_v4 }
 0x2a2   :  { %2039 = vmatmul.bf16.vlgmr.msra.gmra.mxu3 %v4301_v6 }
 0x2a3   :  { %v3722_v12 = vpop.eup %3721  ;;  %v1868_v14 = vadd.f32 %v1867_v10, %v1779_v5  ;;  %1817 = vmatmul.bf16.gmra.mxu0 %v4597_v0  ;;  %v3184_v5 = vor.u32 %v3493_v44, %v3181_v58 }
 0x2a4   :  { %2711 = vst [vmem:[%s6220_s5 + $0x50] sm:$0xff] %v3722_v12  ;;  %1906 = vmatmul.bf16.gmra.mxu1 %v4602_v3  ;;  %v1635_v45 = vpop.f32.mrf.mxu2 }
 0x2a5   :  { %3725 = vtanh.f32 %v1868_v14  ;;  %v1636_v23 = vadd.f32 %v1635_v45, %v5092_v20  ;;  %v1724_v25 = vpop.f32.mrf.mxu3  ;;  %2121 = vmatpush.bf16.msrb.mxu0 %v3184_v5  ;;  %v3549_v45 = vld [vmem:[%s6217_s3 + $0x324] sm:$0xf] }
 0x2a7   :  { %v3724_v26 = vpop.eup %3723  ;;  %v1725_v27 = vadd.f32 %v1724_v25, %v1636_v23  ;;  %v3405_v23 = vld [vmem:[%s6217_s3 + $0x33c] sm:$0xf0] }
 0x2a8   :  { %2808 = vst [vmem:[%s6220_s5 + $0x358] sm:$0xff] %v3724_v26  ;;  %v1780_v29 = vpop.f32.mrf.mxu0 }
 0x2a9   :  { %3727 = vtanh.f32 %v1725_v27  ;;  %v1781_v31 = vadd.f32 %v1780_v29, %v5272_v57  ;;  %v1869_v32 = vpop.f32.mrf.mxu1  ;;  %v3408_v27 = vor.u32 %v3549_v45, %v3405_v23 }
 0x2ab   :  { %v3726_v35 = vpop.eup %3725  ;;  %v1870_v38 = vadd.f32 %v1869_v32, %v1781_v31  ;;  %2210 = vmatpush.bf16.msrb.mxu1 %v3408_v27  ;;  %v3490_v27 = vld [vmem:[%s6217_s3 + $0x148] sm:$0xf0] }
 0x2ac   :  { %2718 = vst [vmem:[%s6220_s5 + $0x88] sm:$0xff] %v3726_v35  ;;  %v1637_v39 = vpop.f32.mrf.mxu2 }
 0x2ad   :  { %3729 = vtanh.f32 %v1870_v38  ;;  %v1638_v46 = vadd.f32 %v1637_v39, %v5092_v20  ;;  %v1726_v47 = vpop.f32.mrf.mxu3 }
 0x2af   :  { %v3728_v55 = vpop.eup %3727  ;;  %v1727_v51 = vadd.f32 %v1726_v47, %v1638_v46 }
 0x2b0   :  { %2815 = vst [vmem:[%s6220_s5 + $0x390] sm:$0xff] %v3728_v55  ;;  %v1783_v15 = vpop.f32.mrf.mxu0 }
 0x2b1   :  { %3731 = vtanh.f32 %v1727_v51  ;;  %v1784_v61 = vadd.f32 %v1783_v15, %v5272_v57  ;;  %v1872_v2 = vpop.f32.mrf.mxu1  ;;  %1955 = vmatmul.bf16.gmra.mxu2 %v4335_v34 }
 0x2b2   :  { %2044 = vmatmul.bf16.gmra.mxu3 %v4337_v36 }
 0x2b3   :  { %v3730_v10 = vpop.eup %3729  ;;  %v1873_v12 = vadd.f32 %v1872_v2, %v1784_v61  ;;  %1822 = vmatmul.bf16.gmra.mxu0 %v4617_v41 }
 0x2b4   :  { %2725 = vst [vmem:[%s6220_s5 + $0xc0] sm:$0xff] %v3730_v10  ;;  %1911 = vmatmul.bf16.gmra.mxu1 %v4622_v43  ;;  %v1640_v14 = vpop.f32.mrf.mxu2 }
 0x2b5   :  { %3733 = vtanh.f32 %v1873_v12  ;;  %v1641_v25 = vadd.f32 %v1640_v14, %v5092_v20  ;;  %v1729_v26 = vpop.f32.mrf.mxu3 }
 0x2b7   :  { %v3732_v29 = vpop.eup %3731  ;;  %v1730_v31 = vadd.f32 %v1729_v26, %v1641_v25  ;;  %v3159_v26 = vld [vmem:[%s6217_s3 + $0x130] sm:$0xf] }
 0x2b8   :  { %2822 = vst [vmem:[%s6220_s5 + $0x3c8] sm:$0xff] %v3732_v29  ;;  %v1785_v32 = vpop.f32.mrf.mxu0 }
 0x2b9   :  { %3735 = vtanh.f32 %v1730_v31  ;;  %v1786_v35 = vadd.f32 %v1785_v32, %v5272_v57  ;;  %v1874_v38 = vpop.f32.mrf.mxu1  ;;  %v3160_v32 = vor.u32 %v3490_v27, %v3159_v26 }
 0x2bb   :  { %v3734_v39 = vpop.eup %3733  ;;  %v1875_v40 = vadd.f32 %v1874_v38, %v1786_v35  ;;  %v3383_v35 = vld [vmem:[%s6217_s3 + $0x2f0] sm:$0xf]  ;;  %v3546_v38 = vld [vmem:[%s6217_s3 + $0x308] sm:$0xf0]  ;;  %2300 = vmatpush.bf16.msrb.mxu2 %v3160_v32  ;;  %v3479_v32 = vld [vmem:[%s6217_s3 + $0xf4] sm:$0xf] }
 0x2bc   :  { %2732 = vst [vmem:[%s6220_s5 + $0xf8] sm:$0xff] %v3734_v39  ;;  %v1642_v42 = vpop.f32.mrf.mxu2  ;;  %v3384_v39 = vor.u32 %v3546_v38, %v3383_v35  ;;  %v3125_v35 = vld [vmem:[%s6217_s3 + $0x10c] sm:$0xf0]  ;;  %v3535_v38 = vld [vmem:[%s6217_s3 + $0x2b4] sm:$0xf] }
 0x2bd   :  { %3737 = vtanh.f32 %v1875_v40  ;;  %v1643_v46 = vadd.f32 %v1642_v42, %v5092_v20  ;;  %v1731_v47 = vpop.f32.mrf.mxu3 }
 0x2be   :  { %2389 = vmatpush.bf16.msrb.mxu3 %v3384_v39 }
 0x2bf   :  { %v3736_v49 = vpop.eup %3735  ;;  %v1732_v50 = vadd.f32 %v1731_v47, %v1643_v46  ;;  %v3486_v47 = vld [vmem:[%s6217_s3 + $0x12c] sm:$0xf] }
 0x2c0   :  { %2829 = vst [vmem:[%s6220_s5 + $0x400] sm:$0xff] %v3736_v49  ;;  %v1788_v48 = vpop.f32.mrf.mxu0  ;;  %v3153_v49 = vld [vmem:[%s6217_s3 + $0x144] sm:$0xf0] }
 0x2c1   :  { %3739 = vtanh.f32 %v1732_v50  ;;  %v1789_v52 = vadd.f32 %v1788_v48, %v5272_v57  ;;  %v1877_v55 = vpop.f32.mrf.mxu1  ;;  %1960 = vmatmul.bf16.gmra.mxu2 %v4359_v60 }
 0x2c2   :  { %2049 = vmatmul.bf16.gmra.mxu3 %v4361_v62 }
 0x2c3   :  { %v3738_v51 = vpop.eup %3737  ;;  %v1878_v15 = vadd.f32 %v1877_v55, %v1789_v52  ;;  %1827 = vmatmul.bf16.gmra.mxu0 %v4649_v33  ;;  %v3156_v52 = vor.u32 %v3486_v47, %v3153_v49 }
 0x2c4   :  { %2739 = vst [vmem:[%s6220_s5 + $0x130] sm:$0xff] %v3738_v51  ;;  %1916 = vmatmul.bf16.gmra.mxu1 %v4654_v37  ;;  %v1645_v44 = vpop.f32.mrf.mxu2 }
 0x2c5   :  { %3741 = vtanh.f32 %v1878_v15  ;;  %v1646_v58 = vadd.f32 %v1645_v44, %v5092_v20  ;;  %v1734_v61 = vpop.f32.mrf.mxu3  ;;  %2122 = vmatpush.bf16.msrb.mxu0 %v3156_v52  ;;  %v3542_v44 = vld [vmem:[%s6217_s3 + $0x2ec] sm:$0xf]  ;;  %v3472_v52 = vld [vmem:[%s6217_s3 + $0xbc] sm:$0xf] }
 0x2c7   :  { %v3740_v2 = vpop.eup %3739  ;;  %v1735_v5 = vadd.f32 %v1734_v61, %v1646_v58  ;;  %v3377_v58 = vld [vmem:[%s6217_s3 + $0x304] sm:$0xf0] }
 0x2c8   :  { %2836 = vst [vmem:[%s6220_s5 + $0x438] sm:$0xff] %v3740_v2  ;;  %v1790_v10 = vpop.f32.mrf.mxu0 }
 0x2c9   :  { %3743 = vtanh.f32 %v1735_v5  ;;  %v1791_v12 = vadd.f32 %v1790_v10, %v5272_v57  ;;  %v1879_v14 = vpop.f32.mrf.mxu1  ;;  %v3380_v5 = vor.u32 %v3542_v44, %v3377_v58 }
 0x2cb   :  { %v3742_v45 = vpop.eup %3741  ;;  %v1880_v23 = vadd.f32 %v1879_v14, %v1791_v12  ;;  %2211 = vmatpush.bf16.msrb.mxu1 %v3380_v5 }
 0x2cc   :  { %2746 = vst [vmem:[%s6220_s5 + $0x168] sm:$0xff] %v3742_v45  ;;  %v1647_v25 = vpop.f32.mrf.mxu2 }
 0x2cd   :  { %3745 = vtanh.f32 %v1880_v23  ;;  %v1648_v29 = vadd.f32 %v1647_v25, %v5092_v20  ;;  %v1736_v31 = vpop.f32.mrf.mxu3 }
 0x2cf   :  { %v3744_v40 = vpop.eup %3743  ;;  %v1737_v42 = vadd.f32 %v1736_v31, %v1648_v29 }
 0x2d0   :  { %2843 = vst [vmem:[%s6220_s5 + $0x470] sm:$0xff] %v3744_v40  ;;  %v1793_v46 = vpop.f32.mrf.mxu0 }
 0x2d1   :  { %3747 = vtanh.f32 %v1737_v42  ;;  %v1794_v50 = vadd.f32 %v1793_v46, %v5272_v57  ;;  %v1882_v48 = vpop.f32.mrf.mxu1  ;;  %1965 = vmatmul.bf16.gmra.mxu2 %v4395_v28  ;;  %v3128_v42 = vor.u32 %v3479_v32, %v3125_v35  ;;  %v3349_v46 = vld [vmem:[%s6217_s3 + $0x2cc] sm:$0xf0] }
 0x2d2   :  { %2054 = vmatmul.bf16.gmra.mxu3 %v4397_v30  ;;  %v3352_v49 = vor.u32 %v3535_v38, %v3349_v46 }
 0x2d3   :  { %v3746_v55 = vpop.eup %3745  ;;  %v1883_v51 = vadd.f32 %v1882_v48, %v1794_v50  ;;  %1832 = vmatmul.bf16.gmra.mxu0 %v4669_v18 }
 0x2d4   :  { %2753 = vst [vmem:[%s6220_s5 + $0x1a0] sm:$0xff] %v3746_v55  ;;  %1921 = vmatmul.bf16.gmra.mxu1 %v4674_v21  ;;  %v1650_v15 = vpop.f32.mrf.mxu2  ;;  %2123 = vmatpush.bf16.msrb.mxu0 %v3128_v42  ;;  %v3097_v55 = vld [vmem:[%s6217_s3 + $0xd4] sm:$0xf0]  ;;  %v3514_v42 = vld [vmem:[%s6217_s3 + $0x20c] sm:$0xf] }
 0x2d5   :  { %3749 = vtanh.f32 %v1883_v51  ;;  %v1651_v61 = vadd.f32 %v1650_v15, %v5092_v20  ;;  %v1739_v2 = vpop.f32.mrf.mxu3  ;;  %2212 = vmatpush.bf16.msrb.mxu1 %v3352_v49  ;;  %v3528_v51 = vld [vmem:[%s6217_s3 + $0x27c] sm:$0xf]  ;;  %v3100_v58 = vor.u32 %v3472_v52, %v3097_v55  ;;  %v3131_v52 = vld [vmem:[%s6217_s3 + $0xf8] sm:$0xf]  ;;  %v3483_v55 = vld [vmem:[%s6217_s3 + $0x110] sm:$0xf0] }
 0x2d7   :  { %v3748_v10 = vpop.eup %3747  ;;  %v1740_v12 = vadd.f32 %v1739_v2, %v1651_v61  ;;  %v3321_v61 = vld [vmem:[%s6217_s3 + $0x294] sm:$0xf0] }
 0x2d8   :  { %2850 = vst [vmem:[%s6220_s5 + $0x4a8] sm:$0xff] %v3748_v10  ;;  %v1795_v14 = vpop.f32.mrf.mxu0  ;;  %v3324_v5 = vor.u32 %v3528_v51, %v3321_v61  ;;  %2124 = vmatpush.bf16.msrb.mxu0 %v3100_v58  ;;  %v3132_v58 = vor.u32 %v3483_v55, %v3131_v52  ;;  %v3355_v61 = vld [vmem:[%s6217_s3 + $0x2b8] sm:$0xf] }
 0x2d9   :  { %3751 = vtanh.f32 %v1740_v12  ;;  %v1796_v45 = vadd.f32 %v1795_v14, %v5272_v57  ;;  %v1884_v23 = vpop.f32.mrf.mxu1  ;;  %v3465_v14 = vld [vmem:[%s6217_s3 + $0x84] sm:$0xf] }
 0x2da   :  { %2213 = vmatpush.bf16.msrb.mxu1 %v3324_v5  ;;  %2301 = vmatpush.bf16.msrb.mxu2 %v3132_v58 }
 0x2db   :  { %v3750_v25 = vpop.eup %3749  ;;  %v1885_v26 = vadd.f32 %v1884_v23, %v1796_v45  ;;  %v3069_v45 = vld [vmem:[%s6217_s3 + $0x9c] sm:$0xf0]  ;;  %v3521_v23 = vld [vmem:[%s6217_s3 + $0x244] sm:$0xf] }
 0x2dc   :  { %2760 = vst [vmem:[%s6220_s5 + $0x1d8] sm:$0xff] %v3750_v25  ;;  %v1652_v27 = vpop.f32.mrf.mxu2 }
 0x2dd   :  { %3753 = vtanh.f32 %v1885_v26  ;;  %v1653_v29 = vadd.f32 %v1652_v27, %v5092_v20  ;;  %v1741_v31 = vpop.f32.mrf.mxu3  ;;  %v3072_v27 = vor.u32 %v3465_v14, %v3069_v45  ;;  %v3507_v14 = vld [vmem:[%s6217_s3 + $0x1d4] sm:$0xf] }
 0x2df   :  { %v3752_v39 = vpop.eup %3751  ;;  %v1742_v40 = vadd.f32 %v1741_v31, %v1653_v29  ;;  %v3293_v29 = vld [vmem:[%s6217_s3 + $0x25c] sm:$0xf0]  ;;  %2125 = vmatpush.bf16.msrb.mxu0 %v3072_v27 }
 0x2e0   :  { %2857 = vst [vmem:[%s6220_s5 + $0x4e0] sm:$0xff] %v3752_v39  ;;  %v1798_v47 = vpop.f32.mrf.mxu0  ;;  %v3296_v32 = vor.u32 %v3521_v23, %v3293_v29  ;;  %v3458_v39 = vld [vmem:[%s6217_s3 + $0x4c] sm:$0xf] }
 0x2e1   :  { %3755 = vtanh.f32 %v1742_v40  ;;  %v1799_v50 = vadd.f32 %v1798_v47, %v5272_v57  ;;  %v1887_v48 = vpop.f32.mrf.mxu1  ;;  %1970 = vmatmul.bf16.gmra.mxu2 %v4428_v59  ;;  %v3041_v40 = vld [vmem:[%s6217_s3 + $0x64] sm:$0xf0] }
 0x2e2   :  { %2059 = vmatmul.bf16.gmra.mxu3 %v4433_v1  ;;  %2214 = vmatpush.bf16.msrb.mxu1 %v3296_v32  ;;  %v3044_v49 = vor.u32 %v3458_v39, %v3041_v40 }
 0x2e3   :  { %v3754_v15 = vpop.eup %3753  ;;  %v1888_v44 = vadd.f32 %v1887_v48, %v1799_v50  ;;  %1837 = vmatmul.bf16.gmra.mxu0 %v4701_v13  ;;  %v3265_v50 = vld [vmem:[%s6217_s3 + $0x224] sm:$0xf0] }
 0x2e4   :  { %2767 = vst [vmem:[%s6220_s5 + $0x210] sm:$0xff] %v3754_v15  ;;  %1926 = vmatmul.bf16.gmra.mxu1 %v4706_v19  ;;  %v1655_v2 = vpop.f32.mrf.mxu2  ;;  %v3268_v51 = vor.u32 %v3514_v42, %v3265_v50  ;;  %2126 = vmatpush.bf16.msrb.mxu0 %v3044_v49 }
 0x2e5   :  { %3757 = vtanh.f32 %v1888_v44  ;;  %v1656_v10 = vadd.f32 %v1655_v2, %v5092_v20  ;;  %v1744_v12 = vpop.f32.mrf.mxu3  ;;  %v3539_v2 = vld [vmem:[%s6217_s3 + $0x2d0] sm:$0xf0] }
 0x2e6   :  { %v3356_v5 = vor.u32 %v3539_v2, %v3355_v61  ;;  %2215 = vmatpush.bf16.msrb.mxu1 %v3268_v51 }
 0x2e7   :  { %v3756_v25 = vpop.eup %3755  ;;  %v1745_v26 = vadd.f32 %v1744_v12, %v1656_v10  ;;  %v3451_v10 = vld [vmem:[%s6217_s3 + $0x14] sm:$0xf]  ;;  %v3013_v12 = vld [vmem:[%s6217_s3 + $0x2c] sm:$0xf0] }
 0x2e8   :  { %2864 = vst [vmem:[%s6220_s5 + $0x518] sm:$0xff] %v3756_v25  ;;  %v1800_v31 = vpop.f32.mrf.mxu0  ;;  %v3016_v25 = vor.u32 %v3451_v10, %v3013_v12  ;;  %2390 = vmatpush.bf16.msrb.mxu3 %v3356_v5 }
 0x2e9   :  { %3759 = vtanh.f32 %v1745_v26  ;;  %v1801_v35 = vadd.f32 %v1800_v31, %v5272_v57  ;;  %v1889_v38 = vpop.f32.mrf.mxu1  ;;  %v3237_v26 = vld [vmem:[%s6217_s3 + $0x1ec] sm:$0xf0] }
 0x2ea   :  { %v3240_v29 = vor.u32 %v3507_v14, %v3237_v26  ;;  %2127 = vmatpush.bf16.msrb.mxu0 %v3016_v25 }
 0x2eb   :  { %v3758_v46 = vpop.eup %3757  ;;  %v1890_v47 = vadd.f32 %v1889_v38, %v1801_v35 }
 0x2ec   :  { %2774 = vst [vmem:[%s6220_s5 + $0x248] sm:$0xff] %v3758_v46  ;;  %v1657_v48 = vpop.f32.mrf.mxu2  ;;  %2216 = vmatpush.bf16.msrb.mxu1 %v3240_v29 }
 0x2ed   :  { %3761 = vtanh.f32 %v1890_v47  ;;  %v1658_v15 = vadd.f32 %v1657_v48, %v5092_v20  ;;  %v1746_v44 = vpop.f32.mrf.mxu3 }
 0x2ef   :  { %v3760_v45 = vpop.eup %3759  ;;  %v1747_v23 = vadd.f32 %v1746_v44, %v1658_v15 }
 0x2f0   :  { %2871 = vst [vmem:[%s6220_s5 + $0x550] sm:$0xff] %v3760_v45  ;;  %v1803_v27 = vpop.f32.mrf.mxu0 }
 0x2f1   :  { %3763 = vtanh.f32 %v1747_v23  ;;  %v1804_v31 = vadd.f32 %v1803_v27, %v5272_v57  ;;  %v1892_v32 = vpop.f32.mrf.mxu1  ;;  %1975 = vmatmul.bf16.gmra.mxu2 %v4506_v56 }
 0x2f2   :  { %2064 = vmatmul.bf16.gmra.mxu3 %v4511_v63 }
 0x2f3   :  { %v3762_v35 = vpop.eup %3761  ;;  %v1893_v38 = vadd.f32 %v1892_v32, %v1804_v31  ;;  %1842 = vmatmul.bf16.gmra.mxu0 %v4721_v7 }
 0x2f4   :  { %2781 = vst [vmem:[%s6220_s5 + $0x280] sm:$0xff] %v3762_v35  ;;  %1931 = vmatmul.bf16.gmra.mxu1 %v4726_v9  ;;  %v1660_v39 = vpop.f32.mrf.mxu2 }
 0x2f5   :  { %3765 = vtanh.f32 %v1893_v38  ;;  %v1661_v40 = vadd.f32 %v1660_v39, %v5092_v20  ;;  %v1749_v42 = vpop.f32.mrf.mxu3 }
 0x2f7   :  { %v3764_v46 = vpop.eup %3763  ;;  %v1750_v47 = vadd.f32 %v1749_v42, %v1661_v40  ;;  %v3103_v40 = vld [vmem:[%s6217_s3 + $0xc0] sm:$0xf]  ;;  %v3476_v42 = vld [vmem:[%s6217_s3 + $0xd8] sm:$0xf0] }
 0x2f8   :  { %2878 = vst [vmem:[%s6220_s5 + $0x588] sm:$0xff] %v3764_v46  ;;  %v1805_v49 = vpop.f32.mrf.mxu0 }
 0x2f9   :  { %3767 = vtanh.f32 %v1750_v47  ;;  %v1806_v50 = vadd.f32 %v1805_v49, %v5272_v57  ;;  %v1894_v48 = vpop.f32.mrf.mxu1  ;;  %v3104_v49 = vor.u32 %v3476_v42, %v3103_v40 }
 0x2fb   :  { %v3766_v52 = vpop.eup %3765  ;;  %v1895_v55 = vadd.f32 %v1894_v48, %v1806_v50  ;;  %v3327_v50 = vld [vmem:[%s6217_s3 + $0x280] sm:$0xf]  ;;  %v3532_v48 = vld [vmem:[%s6217_s3 + $0x298] sm:$0xf0]  ;;  %2302 = vmatpush.bf16.msrb.mxu2 %v3104_v49 }
 0x2fc   :  { %2788 = vst [vmem:[%s6220_s5 + $0x2b8] sm:$0xff] %v3766_v52  ;;  %v1662_v51 = vpop.f32.mrf.mxu2  ;;  %v3328_v52 = vor.u32 %v3532_v48, %v3327_v50 }
 0x2fd   :  { %3769 = vtanh.f32 %v1895_v55  ;;  %v1663_v15 = vadd.f32 %v1662_v51, %v5092_v20  ;;  %v1751_v44 = vpop.f32.mrf.mxu3 }
 0x2fe   :  { %2391 = vmatpush.bf16.msrb.mxu3 %v3328_v52 }
 0x2ff   :  { %v3768_v58 = vpop.eup %3767  ;;  %v1752_v61 = vadd.f32 %v1751_v44, %v1663_v15 }
 0x300   :  { %2885 = vst [vmem:[%s6220_s5 + $0x5c0] sm:$0xff] %v3768_v58  ;;  %v1808_v2 = vpop.f32.mrf.mxu0 }
 0x301   :  { %3771 = vtanh.f32 %v1752_v61  ;;  %v1809_v5 = vadd.f32 %v1808_v2, %v5272_v57  ;;  %v1897_v10 = vpop.f32.mrf.mxu1  ;;  %1980 = vmatmul.bf16.gmra.mxu2 %v4527_v22 }
 0x302   :  { %2069 = vmatmul.bf16.gmra.mxu3 %v4529_v24 }
 0x303   :  { %v3770_v12 = vpop.eup %3769  ;;  %v1898_v14 = vadd.f32 %v1897_v10, %v1809_v5  ;;  %1847 = vmatmul.bf16.gmra.mxu0 %v4756_v8 }
 0x304   :  { %2795 = vst [vmem:[%s6220_s5 + $0x2f0] sm:$0xff] %v3770_v12  ;;  %1936 = vmatmul.bf16.gmra.mxu1 %v4761_v11  ;;  %v1665_v45 = vpop.f32.mrf.mxu2 }
 0x305   :  { %3773 = vtanh.f32 %v1898_v14  ;;  %v1666_v23 = vadd.f32 %v1665_v45, %v5092_v20  ;;  %v1754_v25 = vpop.f32.mrf.mxu3 }
 0x307   :  { %v3772_v26 = vpop.eup %3771  ;;  %v1755_v27 = vadd.f32 %v1754_v25, %v1666_v23 }
 0x308   :  { %2892 = vst [vmem:[%s6220_s5 + $0x5f8] sm:$0xff] %v3772_v26  ;;  %v1810_v29 = vpop.f32.mrf.mxu0 }
 0x309   :  { %3775 = vtanh.f32 %v1755_v27  ;;  %v1811_v31 = vadd.f32 %v1810_v29, %v5272_v57  ;;  %v1899_v32 = vpop.f32.mrf.mxu1 }
 0x30b   :  { %v3774_v35 = vpop.eup %3773  ;;  %v1900_v38 = vadd.f32 %v1899_v32, %v1811_v31 }
 0x30c   :  { %2802 = vst [vmem:[%s6220_s5 + $0x328] sm:$0xff] %v3774_v35  ;;  %v1667_v39 = vpop.f32.mrf.mxu2 }
 0x30d   :  { %3777 = vtanh.f32 %v1900_v38  ;;  %v1668_v46 = vadd.f32 %v1667_v39, %v5092_v20  ;;  %v1756_v47 = vpop.f32.mrf.mxu3 }
 0x30f   :  { %v3776_v55 = vpop.eup %3775  ;;  %v1757_v51 = vadd.f32 %v1756_v47, %v1668_v46  ;;  %v5612_v47 = vld [vmem:[%s6219_s4] sm:$0x7f] }
 0x310   :  { %2899 = vst [vmem:[%s6220_s5 + $0x630] sm:$0xff] %v3776_v55  ;;  %v1813_v15 = vpop.f32.mrf.mxu0 }
 0x311   :  { %3779 = vtanh.f32 %v1757_v51  ;;  %v1814_v44 = vadd.f32 %v1813_v15, %v5272_v57  ;;  %v1902_v58 = vpop.f32.mrf.mxu1  ;;  %1985 = vmatmul.bf16.gmra.mxu2 %v4551_v53 }
 0x312   :  { %2074 = vmatmul.bf16.gmra.mxu3 %v4553_v54 }
 0x313   :  { %v3778_v61 = vpop.eup %3777  ;;  %v1903_v2 = vadd.f32 %v1902_v58, %v1814_v44  ;;  %2128 = vmatmul.bf16.vlgmr.msrb.gmra.mxu0 %v4299_v4 }
 0x314   :  { %2809 = vst [vmem:[%s6220_s5 + $0x360] sm:$0xff] %v3778_v61  ;;  %2217 = vmatmul.bf16.vlgmr.msrb.gmra.mxu1 %v4301_v6  ;;  %v1670_v5 = vpop.f32.mrf.mxu2 }
 0x315   :  { %3781 = vtanh.f32 %v1903_v2  ;;  %v1671_v10 = vadd.f32 %v1670_v5, %v5092_v20  ;;  %v1759_v12 = vpop.f32.mrf.mxu3 }
 0x317   :  { %v3780_v14 = vpop.eup %3779  ;;  %v1760_v45 = vadd.f32 %v1759_v12, %v1671_v10  ;;  %v3075_v12 = vld [vmem:[%s6217_s3 + $0x88] sm:$0xf] }
 0x318   :  { %2906 = vst [vmem:[%s6220_s5 + $0x668] sm:$0xff] %v3780_v14  ;;  %v1815_v23 = vpop.f32.mrf.mxu0  ;;  %v3469_v14 = vld [vmem:[%s6217_s3 + $0xa0] sm:$0xf0] }
 0x319   :  { %3783 = vtanh.f32 %v1760_v45  ;;  %v1816_v25 = vadd.f32 %v1815_v23, %v5272_v57  ;;  %v1904_v26 = vpop.f32.mrf.mxu1 }
 0x31b   :  { %v3782_v27 = vpop.eup %3781  ;;  %v1905_v29 = vadd.f32 %v1904_v26, %v1816_v25  ;;  %v3076_v25 = vor.u32 %v3469_v14, %v3075_v12  ;;  %v3299_v26 = vld [vmem:[%s6217_s3 + $0x248] sm:$0xf] }
 0x31c   :  { %2816 = vst [vmem:[%s6220_s5 + $0x398] sm:$0xff] %v3782_v27  ;;  %v1672_v31 = vpop.f32.mrf.mxu2  ;;  %v3525_v27 = vld [vmem:[%s6217_s3 + $0x260] sm:$0xf0] }
 0x31d   :  { %3785 = vtanh.f32 %v1905_v29  ;;  %v1673_v32 = vadd.f32 %v1672_v31, %v5092_v20  ;;  %v1761_v35 = vpop.f32.mrf.mxu3  ;;  %v5615_v20 = vperm.slane %v5612_v47, 4  ;;  %v3300_v29 = vor.u32 %v3525_v27, %v3299_v26  ;;  %2303 = vmatpush.bf16.msrb.mxu2 %v3076_v25 }
 0x31f   :  { %v3784_v38 = vpop.eup %3783  ;;  %v1762_v39 = vadd.f32 %v1761_v35, %v1673_v32  ;;  %2392 = vmatpush.bf16.msrb.mxu3 %v3300_v29 }
 0x320   :  { %2913 = vst [vmem:[%s6220_s5 + $0x6a0] sm:$0xff] %v3784_v38  ;;  %v1818_v40 = vpop.f32.mrf.mxu0 }
 0x321   :  { %3787 = vtanh.f32 %v1762_v39  ;;  %v1819_v42 = vadd.f32 %v1818_v40, %v5272_v57  ;;  %v1907_v46 = vpop.f32.mrf.mxu1  ;;  %1990 = vmatmul.bf16.gmra.mxu2 %v4568_v16 }
 0x322   :  { %2079 = vmatmul.bf16.gmra.mxu3 %v4570_v17 }
 0x323   :  { %v3786_v49 = vpop.eup %3785  ;;  %v1908_v50 = vadd.f32 %v1907_v46, %v1819_v42  ;;  %2133 = vmatmul.bf16.gmra.mxu0 %v4335_v34 }
 0x324   :  { %2823 = vst [vmem:[%s6220_s5 + $0x3d0] sm:$0xff] %v3786_v49  ;;  %2222 = vmatmul.bf16.gmra.mxu1 %v4337_v36  ;;  %v1951_v48 = vpop.f32.mrf.mxu2 }
 0x325   :  { %3789 = vtanh.f32 %v1908_v50  ;;  %v1952_v52 = vadd.f32 %v1951_v48, %v5615_v20  ;;  %v2040_v55 = vpop.f32.mrf.mxu3 }
 0x327   :  { %v3788_v51 = vpop.eup %3787  ;;  %v2041_v15 = vadd.f32 %v2040_v55, %v1952_v52 }
 0x328   :  { %2920 = vst [vmem:[%s6220_s5 + $0x6d8] sm:$0xff] %v3788_v51  ;;  %v1820_v44 = vpop.f32.mrf.mxu0 }
 0x329   :  { %3791 = vtanh.f32 %v2041_v15  ;;  %v1821_v58 = vadd.f32 %v1820_v44, %v5272_v57  ;;  %v1909_v61 = vpop.f32.mrf.mxu1 }
 0x32b   :  { %v3790_v2 = vpop.eup %3789  ;;  %v1910_v5 = vadd.f32 %v1909_v61, %v1821_v58 }
 0x32c   :  { %2830 = vst [vmem:[%s6220_s5 + $0x408] sm:$0xff] %v3790_v2  ;;  %v1953_v10 = vpop.f32.mrf.mxu2 }
 0x32d   :  { %3793 = vtanh.f32 %v1910_v5  ;;  %v1954_v45 = vadd.f32 %v1953_v10, %v5615_v20  ;;  %v2042_v23 = vpop.f32.mrf.mxu3 }
 0x32f   :  { %v3792_v31 = vpop.eup %3791  ;;  %v2043_v32 = vadd.f32 %v2042_v23, %v1954_v45 }
 0x330   :  { %2704 = vst [vmem:[%s6220_s5 + $0x20] sm:$0xff] %v3792_v31  ;;  %v1823_v35 = vpop.f32.mrf.mxu0 }
 0x331   :  { %3795 = vtanh.f32 %v2043_v32  ;;  %v1824_v38 = vadd.f32 %v1823_v35, %v5272_v57  ;;  %v1912_v39 = vpop.f32.mrf.mxu1  ;;  %1995 = vmatmul.bf16.gmra.mxu2 %v4597_v0 }
 0x332   :  { %2084 = vmatmul.bf16.gmra.mxu3 %v4602_v3 }
 0x333   :  { %v3794_v40 = vpop.eup %3793  ;;  %v1913_v42 = vadd.f32 %v1912_v39, %v1824_v38  ;;  %2138 = vmatmul.bf16.gmra.mxu0 %v4359_v60 }
 0x334   :  { %2837 = vst [vmem:[%s6220_s5 + $0x440] sm:$0xff] %v3794_v40  ;;  %2227 = vmatmul.bf16.gmra.mxu1 %v4361_v62  ;;  %v1956_v46 = vpop.f32.mrf.mxu2 }
 0x335   :  { %3797 = vtanh.f32 %v1913_v42  ;;  %v1957_v49 = vadd.f32 %v1956_v46, %v5615_v20  ;;  %v2045_v50 = vpop.f32.mrf.mxu3 }
 0x337   :  { %v3796_v48 = vpop.eup %3795  ;;  %v2046_v52 = vadd.f32 %v2045_v50, %v1957_v49  ;;  %v3047_v50 = vld [vmem:[%s6217_s3 + $0x50] sm:$0xf] }
 0x338   :  { %2712 = vst [vmem:[%s6220_s5 + $0x58] sm:$0xff] %v3796_v48  ;;  %v1825_v55 = vpop.f32.mrf.mxu0  ;;  %v3462_v48 = vld [vmem:[%s6217_s3 + $0x68] sm:$0xf0] }
 0x339   :  { %3799 = vtanh.f32 %v2046_v52  ;;  %v1826_v51 = vadd.f32 %v1825_v55, %v5272_v57  ;;  %v1914_v15 = vpop.f32.mrf.mxu1 }
 0x33b   :  { %v3798_v44 = vpop.eup %3797  ;;  %v1915_v58 = vadd.f32 %v1914_v15, %v1826_v51  ;;  %v3048_v51 = vor.u32 %v3462_v48, %v3047_v50  ;;  %v3271_v15 = vld [vmem:[%s6217_s3 + $0x210] sm:$0xf] }
 0x33c   :  { %2844 = vst [vmem:[%s6220_s5 + $0x478] sm:$0xff] %v3798_v44  ;;  %v1958_v61 = vpop.f32.mrf.mxu2  ;;  %v3518_v44 = vld [vmem:[%s6217_s3 + $0x228] sm:$0xf0] }
 0x33d   :  { %3801 = vtanh.f32 %v1915_v58  ;;  %v1959_v2 = vadd.f32 %v1958_v61, %v5615_v20  ;;  %v2047_v5 = vpop.f32.mrf.mxu3  ;;  %v3272_v58 = vor.u32 %v3518_v44, %v3271_v15  ;;  %2304 = vmatpush.bf16.msrb.mxu2 %v3048_v51 }
 0x33f   :  { %v3800_v10 = vpop.eup %3799  ;;  %v2048_v12 = vadd.f32 %v2047_v5, %v1959_v2  ;;  %2393 = vmatpush.bf16.msrb.mxu3 %v3272_v58 }
 0x340   :  { %2719 = vst [vmem:[%s6220_s5 + $0x90] sm:$0xff] %v3800_v10  ;;  %v1828_v14 = vpop.f32.mrf.mxu0 }
 0x341   :  { %3803 = vtanh.f32 %v2048_v12  ;;  %v1829_v45 = vadd.f32 %v1828_v14, %v5272_v57  ;;  %v1917_v23 = vpop.f32.mrf.mxu1  ;;  %2000 = vmatmul.bf16.gmra.mxu2 %v4617_v41 }
 0x342   :  { %2089 = vmatmul.bf16.gmra.mxu3 %v4622_v43 }
 0x343   :  { %v3802_v25 = vpop.eup %3801  ;;  %v1918_v26 = vadd.f32 %v1917_v23, %v1829_v45  ;;  %2143 = vmatmul.bf16.gmra.mxu0 %v4395_v28 }
 0x344   :  { %2851 = vst [vmem:[%s6220_s5 + $0x4b0] sm:$0xff] %v3802_v25  ;;  %2232 = vmatmul.bf16.gmra.mxu1 %v4397_v30  ;;  %v1961_v27 = vpop.f32.mrf.mxu2 }
 0x345   :  { %3805 = vtanh.f32 %v1918_v26  ;;  %v1962_v29 = vadd.f32 %v1961_v27, %v5615_v20  ;;  %v2050_v31 = vpop.f32.mrf.mxu3 }
 0x347   :  { %v3804_v32 = vpop.eup %3803  ;;  %v2051_v35 = vadd.f32 %v2050_v31, %v1962_v29 }
 0x348   :  { %2726 = vst [vmem:[%s6220_s5 + $0xc8] sm:$0xff] %v3804_v32  ;;  %v1830_v38 = vpop.f32.mrf.mxu0 }
 0x349   :  { %3807 = vtanh.f32 %v2051_v35  ;;  %v1831_v39 = vadd.f32 %v1830_v38, %v5272_v57  ;;  %v1919_v40 = vpop.f32.mrf.mxu1 }
 0x34b   :  { %v3806_v42 = vpop.eup %3805  ;;  %v1920_v46 = vadd.f32 %v1919_v40, %v1831_v39 }
 0x34c   :  { %2858 = vst [vmem:[%s6220_s5 + $0x4e8] sm:$0xff] %v3806_v42  ;;  %v1963_v49 = vpop.f32.mrf.mxu2 }
 0x34d   :  { %3809 = vtanh.f32 %v1920_v46  ;;  %v1964_v52 = vadd.f32 %v1963_v49, %v5615_v20  ;;  %v2052_v55 = vpop.f32.mrf.mxu3 }
 0x34f   :  { %v3808_v61 = vpop.eup %3807  ;;  %v2053_v2 = vadd.f32 %v2052_v55, %v1964_v52 }
 0x350   :  { %2733 = vst [vmem:[%s6220_s5 + $0x100] sm:$0xff] %v3808_v61  ;;  %v1833_v5 = vpop.f32.mrf.mxu0 }
 0x351   :  { %3811 = vtanh.f32 %v2053_v2  ;;  %v1834_v10 = vadd.f32 %v1833_v5, %v5272_v57  ;;  %v1922_v12 = vpop.f32.mrf.mxu1  ;;  %2005 = vmatmul.bf16.gmra.mxu2 %v4649_v33 }
 0x352   :  { %2094 = vmatmul.bf16.gmra.mxu3 %v4654_v37 }
 0x353   :  { %v3810_v14 = vpop.eup %3809  ;;  %v1923_v45 = vadd.f32 %v1922_v12, %v1834_v10  ;;  %2148 = vmatmul.bf16.gmra.mxu0 %v4428_v59 }
 0x354   :  { %2865 = vst [vmem:[%s6220_s5 + $0x520] sm:$0xff] %v3810_v14  ;;  %2237 = vmatmul.bf16.gmra.mxu1 %v4433_v1  ;;  %v1966_v23 = vpop.f32.mrf.mxu2 }
 0x355   :  { %3813 = vtanh.f32 %v1923_v45  ;;  %v1967_v25 = vadd.f32 %v1966_v23, %v5615_v20  ;;  %v2055_v26 = vpop.f32.mrf.mxu3 }
 0x357   :  { %v3812_v27 = vpop.eup %3811  ;;  %v2056_v29 = vadd.f32 %v2055_v26, %v1967_v25  ;;  %v3019_v26 = vld [vmem:[%s6217_s3 + $0x18] sm:$0xf] }
 0x358   :  { %2740 = vst [vmem:[%s6220_s5 + $0x138] sm:$0xff] %v3812_v27  ;;  %v1835_v31 = vpop.f32.mrf.mxu0  ;;  %v3455_v27 = vld [vmem:[%s6217_s3 + $0x30] sm:$0xf0] }
 0x359   :  { %3815 = vtanh.f32 %v2056_v29  ;;  %v1836_v32 = vadd.f32 %v1835_v31, %v5272_v57  ;;  %v1924_v35 = vpop.f32.mrf.mxu1 }
 0x35b   :  { %v3814_v38 = vpop.eup %3813  ;;  %v1925_v39 = vadd.f32 %v1924_v35, %v1836_v32  ;;  %v3020_v32 = vor.u32 %v3455_v27, %v3019_v26  ;;  %v3243_v35 = vld [vmem:[%s6217_s3 + $0x1d8] sm:$0xf] }
 0x35c   :  { %2872 = vst [vmem:[%s6220_s5 + $0x558] sm:$0xff] %v3814_v38  ;;  %v1968_v40 = vpop.f32.mrf.mxu2  ;;  %v3511_v38 = vld [vmem:[%s6217_s3 + $0x1f0] sm:$0xf0] }
 0x35d   :  { %3817 = vtanh.f32 %v1925_v39  ;;  %v1969_v42 = vadd.f32 %v1968_v40, %v5615_v20  ;;  %v2057_v46 = vpop.f32.mrf.mxu3  ;;  %v3244_v39 = vor.u32 %v3511_v38, %v3243_v35  ;;  %2305 = vmatpush.bf16.msrb.mxu2 %v3020_v32 }
 0x35f   :  { %v3816_v49 = vpop.eup %3815  ;;  %v2058_v50 = vadd.f32 %v2057_v46, %v1969_v42  ;;  %2394 = vmatpush.bf16.msrb.mxu3 %v3244_v39 }
 0x360   :  { %2747 = vst [vmem:[%s6220_s5 + $0x170] sm:$0xff] %v3816_v49  ;;  %v1838_v48 = vpop.f32.mrf.mxu0 }
 0x361   :  { %3819 = vtanh.f32 %v2058_v50  ;;  %v1839_v52 = vadd.f32 %v1838_v48, %v5272_v57  ;;  %v1927_v55 = vpop.f32.mrf.mxu1  ;;  %2010 = vmatmul.bf16.gmra.mxu2 %v4669_v18 }
 0x362   :  { %2099 = vmatmul.bf16.gmra.mxu3 %v4674_v21 }
 0x363   :  { %v3818_v51 = vpop.eup %3817  ;;  %v1928_v15 = vadd.f32 %v1927_v55, %v1839_v52  ;;  %2153 = vmatmul.bf16.gmra.mxu0 %v4506_v56 }
 0x364   :  { %2879 = vst [vmem:[%s6220_s5 + $0x590] sm:$0xff] %v3818_v51  ;;  %2242 = vmatmul.bf16.gmra.mxu1 %v4511_v63  ;;  %v1971_v44 = vpop.f32.mrf.mxu2 }
 0x365   :  { %3821 = vtanh.f32 %v1928_v15  ;;  %v1972_v58 = vadd.f32 %v1971_v44, %v5615_v20  ;;  %v2060_v61 = vpop.f32.mrf.mxu3 }
 0x367   :  { %v3820_v2 = vpop.eup %3819  ;;  %v2061_v5 = vadd.f32 %v2060_v61, %v1972_v58 }
 0x368   :  { %2754 = vst [vmem:[%s6220_s5 + $0x1a8] sm:$0xff] %v3820_v2  ;;  %v1840_v10 = vpop.f32.mrf.mxu0 }
 0x369   :  { %3823 = vtanh.f32 %v2061_v5  ;;  %v1841_v12 = vadd.f32 %v1840_v10, %v5272_v57  ;;  %v1929_v14 = vpop.f32.mrf.mxu1 }
 0x36b   :  { %v3822_v45 = vpop.eup %3821  ;;  %v1930_v23 = vadd.f32 %v1929_v14, %v1841_v12 }
 0x36c   :  { %2886 = vst [vmem:[%s6220_s5 + $0x5c8] sm:$0xff] %v3822_v45  ;;  %v1973_v25 = vpop.f32.mrf.mxu2 }
 0x36d   :  { %3825 = vtanh.f32 %v1930_v23  ;;  %v1974_v29 = vadd.f32 %v1973_v25, %v5615_v20  ;;  %v2062_v31 = vpop.f32.mrf.mxu3 }
 0x36f   :  { %v3824_v40 = vpop.eup %3823  ;;  %v2063_v42 = vadd.f32 %v2062_v31, %v1974_v29 }
 0x370   :  { %2761 = vst [vmem:[%s6220_s5 + $0x1e0] sm:$0xff] %v3824_v40  ;;  %v1843_v46 = vpop.f32.mrf.mxu0 }
 0x371   :  { %3827 = vtanh.f32 %v2063_v42  ;;  %v1844_v49 = vadd.f32 %v1843_v46, %v5272_v57  ;;  %v1932_v50 = vpop.f32.mrf.mxu1  ;;  %2015 = vmatmul.bf16.gmra.mxu2 %v4701_v13 }
 0x372   :  { %2104 = vmatmul.bf16.gmra.mxu3 %v4706_v19 }
 0x373   :  { %v3826_v48 = vpop.eup %3825  ;;  %v1933_v52 = vadd.f32 %v1932_v50, %v1844_v49  ;;  %2158 = vmatmul.bf16.gmra.mxu0 %v4527_v22 }
 0x374   :  { %2893 = vst [vmem:[%s6220_s5 + $0x600] sm:$0xff] %v3826_v48  ;;  %2247 = vmatmul.bf16.gmra.mxu1 %v4529_v24  ;;  %v1976_v55 = vpop.f32.mrf.mxu2 }
 0x375   :  { %3829 = vtanh.f32 %v1933_v52  ;;  %v1977_v51 = vadd.f32 %v1976_v55, %v5615_v20  ;;  %v2065_v15 = vpop.f32.mrf.mxu3 }
 0x377   :  { %v3828_v44 = vpop.eup %3827  ;;  %v2066_v58 = vadd.f32 %v2065_v15, %v1977_v51 }
 0x378   :  { %2768 = vst [vmem:[%s6220_s5 + $0x218] sm:$0xff] %v3828_v44  ;;  %v1845_v61 = vpop.f32.mrf.mxu0 }
 0x379   :  { %3831 = vtanh.f32 %v2066_v58  ;;  %v1846_v2 = vadd.f32 %v1845_v61, %v5272_v57  ;;  %v1934_v5 = vpop.f32.mrf.mxu1  ;;  %v5789_v58 = vperm.slane %v5612_v47, 5 }
 0x37b   :  { %v3830_v10 = vpop.eup %3829  ;;  %v1935_v12 = vadd.f32 %v1934_v5, %v1846_v2 }
 0x37c   :  { %2900 = vst [vmem:[%s6220_s5 + $0x638] sm:$0xff] %v3830_v10  ;;  %v1978_v14 = vpop.f32.mrf.mxu2 }
 0x37d   :  { %3833 = vtanh.f32 %v1935_v12  ;;  %v1979_v45 = vadd.f32 %v1978_v14, %v5615_v20  ;;  %v2067_v23 = vpop.f32.mrf.mxu3 }
 0x37f   :  { %v3832_v25 = vpop.eup %3831  ;;  %v2068_v26 = vadd.f32 %v2067_v23, %v1979_v45 }
 0x380   :  { %2775 = vst [vmem:[%s6220_s5 + $0x250] sm:$0xff] %v3832_v25  ;;  %v1848_v27 = vpop.f32.mrf.mxu0 }
 0x381   :  { %3835 = vtanh.f32 %v2068_v26  ;;  %v1849_v29 = vadd.f32 %v1848_v27, %v5272_v57  ;;  %v1937_v31 = vpop.f32.mrf.mxu1  ;;  %2020 = vmatmul.bf16.gmra.mxu2 %v4721_v7 }
 0x382   :  { %2109 = vmatmul.bf16.gmra.mxu3 %v4726_v9 }
 0x383   :  { %v3834_v32 = vpop.eup %3833  ;;  %v1938_v35 = vadd.f32 %v1937_v31, %v1849_v29  ;;  %2163 = vmatmul.bf16.gmra.mxu0 %v4551_v53 }
 0x384   :  { %2907 = vst [vmem:[%s6220_s5 + $0x670] sm:$0xff] %v3834_v32  ;;  %2252 = vmatmul.bf16.gmra.mxu1 %v4553_v54  ;;  %v1981_v38 = vpop.f32.mrf.mxu2 }
 0x385   :  { %3837 = vtanh.f32 %v1938_v35  ;;  %v1982_v39 = vadd.f32 %v1981_v38, %v5615_v20  ;;  %v2070_v40 = vpop.f32.mrf.mxu3 }
 0x387   :  { %v3836_v42 = vpop.eup %3835  ;;  %v2071_v46 = vadd.f32 %v2070_v40, %v1982_v39 }
 0x388   :  { %2782 = vst [vmem:[%s6220_s5 + $0x288] sm:$0xff] %v3836_v42  ;;  %v1850_v49 = vpop.f32.mrf.mxu0 }
 0x389   :  { %3839 = vtanh.f32 %v2071_v46  ;;  %v1851_v50 = vadd.f32 %v1850_v49, %v5272_v57  ;;  %v1939_v48 = vpop.f32.mrf.mxu1 }
 0x38b   :  { %v3838_v52 = vpop.eup %3837  ;;  %v1940_v55 = vadd.f32 %v1939_v48, %v1851_v50 }
 0x38c   :  { %2914 = vst [vmem:[%s6220_s5 + $0x6a8] sm:$0xff] %v3838_v52  ;;  %v1983_v51 = vpop.f32.mrf.mxu2 }
 0x38d   :  { %3841 = vtanh.f32 %v1940_v55  ;;  %v1984_v15 = vadd.f32 %v1983_v51, %v5615_v20  ;;  %v2072_v44 = vpop.f32.mrf.mxu3 }
 0x38f   :  { %v3840_v61 = vpop.eup %3839  ;;  %v2073_v2 = vadd.f32 %v2072_v44, %v1984_v15 }
 0x390   :  { %2789 = vst [vmem:[%s6220_s5 + $0x2c0] sm:$0xff] %v3840_v61  ;;  %v2129_v57 = vpop.f32.mrf.mxu0 }
 0x391   :  { %3843 = vtanh.f32 %v2073_v2  ;;  %v2130_v5 = vadd.f32 %v2129_v57, %v5789_v58  ;;  %v2218_v10 = vpop.f32.mrf.mxu1  ;;  %2025 = vmatmul.bf16.gmra.mxu2 %v4756_v8 }
 0x392   :  { %2114 = vmatmul.bf16.gmra.mxu3 %v4761_v11 }
 0x393   :  { %v3842_v12 = vpop.eup %3841  ;;  %v2219_v14 = vadd.f32 %v2218_v10, %v2130_v5  ;;  %2168 = vmatmul.bf16.gmra.mxu0 %v4568_v16 }
 0x394   :  { %2921 = vst [vmem:[%s6220_s5 + $0x6e0] sm:$0xff] %v3842_v12  ;;  %2257 = vmatmul.bf16.gmra.mxu1 %v4570_v17  ;;  %v1986_v47 = vpop.f32.mrf.mxu2 }
 0x395   :  { %3845 = vtanh.f32 %v2219_v14  ;;  %v1987_v45 = vadd.f32 %v1986_v47, %v5615_v20  ;;  %v2075_v23 = vpop.f32.mrf.mxu3 }
 0x397   :  { %v3844_v25 = vpop.eup %3843  ;;  %v2076_v26 = vadd.f32 %v2075_v23, %v1987_v45 }
 0x398   :  { %2796 = vst [vmem:[%s6220_s5 + $0x2f8] sm:$0xff] %v3844_v25  ;;  %v2131_v27 = vpop.f32.mrf.mxu0 }
 0x399   :  { %3847 = vtanh.f32 %v2076_v26  ;;  %v2132_v29 = vadd.f32 %v2131_v27, %v5789_v58  ;;  %v2220_v31 = vpop.f32.mrf.mxu1 }
 0x39b   :  { %v3846_v32 = vpop.eup %3845  ;;  %v2221_v35 = vadd.f32 %v2220_v31, %v2132_v29 }
 0x39c   :  { %2705 = vst [vmem:[%s6220_s5 + $0x28] sm:$0xff] %v3846_v32  ;;  %v1988_v38 = vpop.f32.mrf.mxu2 }
 0x39d   :  { %3849 = vtanh.f32 %v2221_v35  ;;  %v1989_v39 = vadd.f32 %v1988_v38, %v5615_v20  ;;  %v2077_v40 = vpop.f32.mrf.mxu3 }
 0x39f   :  { %v3848_v42 = vpop.eup %3847  ;;  %v2078_v46 = vadd.f32 %v2077_v40, %v1989_v39 }
 0x3a0   :  { %2803 = vst [vmem:[%s6220_s5 + $0x330] sm:$0xff] %v3848_v42  ;;  %v2134_v49 = vpop.f32.mrf.mxu0 }
 0x3a1   :  { %3851 = vtanh.f32 %v2078_v46  ;;  %v2135_v50 = vadd.f32 %v2134_v49, %v5789_v58  ;;  %v2223_v48 = vpop.f32.mrf.mxu1  ;;  %2306 = vmatmul.bf16.vlgmr.msrb.gmra.mxu2 %v4299_v4 }
 0x3a2   :  { %2395 = vmatmul.bf16.vlgmr.msrb.gmra.mxu3 %v4301_v6 }
 0x3a3   :  { %v3850_v52 = vpop.eup %3849  ;;  %v2224_v55 = vadd.f32 %v2223_v48, %v2135_v50  ;;  %2173 = vmatmul.bf16.gmra.mxu0 %v4597_v0 }
 0x3a4   :  { %2713 = vst [vmem:[%s6220_s5 + $0x60] sm:$0xff] %v3850_v52  ;;  %2262 = vmatmul.bf16.gmra.mxu1 %v4602_v3  ;;  %v1991_v51 = vpop.f32.mrf.mxu2 }
 0x3a5   :  { %3853 = vtanh.f32 %v2224_v55  ;;  %v1992_v15 = vadd.f32 %v1991_v51, %v5615_v20  ;;  %v2080_v44 = vpop.f32.mrf.mxu3 }
 0x3a7   :  { %v3852_v61 = vpop.eup %3851  ;;  %v2081_v2 = vadd.f32 %v2080_v44, %v1992_v15 }
 0x3a8   :  { %2810 = vst [vmem:[%s6220_s5 + $0x368] sm:$0xff] %v3852_v61  ;;  %v2136_v4 = vpop.f32.mrf.mxu0 }
 0x3a9   :  { %3855 = vtanh.f32 %v2081_v2  ;;  %v2137_v6 = vadd.f32 %v2136_v4, %v5789_v58  ;;  %v2225_v57 = vpop.f32.mrf.mxu1 }
 0x3ab   :  { %v3854_v5 = vpop.eup %3853  ;;  %v2226_v10 = vadd.f32 %v2225_v57, %v2137_v6 }
 0x3ac   :  { %2720 = vst [vmem:[%s6220_s5 + $0x98] sm:$0xff] %v3854_v5  ;;  %v1993_v12 = vpop.f32.mrf.mxu2 }
 0x3ad   :  { %3857 = vtanh.f32 %v2226_v10  ;;  %v1994_v14 = vadd.f32 %v1993_v12, %v5615_v20  ;;  %v2082_v47 = vpop.f32.mrf.mxu3 }
 0x3af   :  { %v3856_v45 = vpop.eup %3855  ;;  %v2083_v23 = vadd.f32 %v2082_v47, %v1994_v14 }
 0x3b0   :  { %2817 = vst [vmem:[%s6220_s5 + $0x3a0] sm:$0xff] %v3856_v45  ;;  %v2139_v25 = vpop.f32.mrf.mxu0 }
 0x3b1   :  { %3859 = vtanh.f32 %v2083_v23  ;;  %v2140_v26 = vadd.f32 %v2139_v25, %v5789_v58  ;;  %v2228_v27 = vpop.f32.mrf.mxu1  ;;  %2311 = vmatmul.bf16.gmra.mxu2 %v4335_v34 }
 0x3b2   :  { %2400 = vmatmul.bf16.gmra.mxu3 %v4337_v36 }
 0x3b3   :  { %v3858_v29 = vpop.eup %3857  ;;  %v2229_v31 = vadd.f32 %v2228_v27, %v2140_v26  ;;  %2178 = vmatmul.bf16.gmra.mxu0 %v4617_v41 }
 0x3b4   :  { %2727 = vst [vmem:[%s6220_s5 + $0xd0] sm:$0xff] %v3858_v29  ;;  %2267 = vmatmul.bf16.gmra.mxu1 %v4622_v43  ;;  %v1996_v32 = vpop.f32.mrf.mxu2 }
 0x3b5   :  { %3861 = vtanh.f32 %v2229_v31  ;;  %v1997_v35 = vadd.f32 %v1996_v32, %v5615_v20  ;;  %v2085_v38 = vpop.f32.mrf.mxu3 }
 0x3b7   :  { %v3860_v39 = vpop.eup %3859  ;;  %v2086_v40 = vadd.f32 %v2085_v38, %v1997_v35 }
 0x3b8   :  { %2824 = vst [vmem:[%s6220_s5 + $0x3d8] sm:$0xff] %v3860_v39  ;;  %v2141_v34 = vpop.f32.mrf.mxu0 }
 0x3b9   :  { %3863 = vtanh.f32 %v2086_v40  ;;  %v2142_v36 = vadd.f32 %v2141_v34, %v5789_v58  ;;  %v2230_v42 = vpop.f32.mrf.mxu1 }
 0x3bb   :  { %v3862_v46 = vpop.eup %3861  ;;  %v2231_v49 = vadd.f32 %v2230_v42, %v2142_v36 }
 0x3bc   :  { %2734 = vst [vmem:[%s6220_s5 + $0x108] sm:$0xff] %v3862_v46  ;;  %v1998_v50 = vpop.f32.mrf.mxu2 }
 0x3bd   :  { %3865 = vtanh.f32 %v2231_v49  ;;  %v1999_v48 = vadd.f32 %v1998_v50, %v5615_v20  ;;  %v2087_v52 = vpop.f32.mrf.mxu3 }
 0x3bf   :  { %v3864_v55 = vpop.eup %3863  ;;  %v2088_v51 = vadd.f32 %v2087_v52, %v1999_v48 }
 0x3c0   :  { %2831 = vst [vmem:[%s6220_s5 + $0x410] sm:$0xff] %v3864_v55  ;;  %v2144_v15 = vpop.f32.mrf.mxu0 }
 0x3c1   :  { %3867 = vtanh.f32 %v2088_v51  ;;  %v2145_v44 = vadd.f32 %v2144_v15, %v5789_v58  ;;  %v2233_v61 = vpop.f32.mrf.mxu1  ;;  %2316 = vmatmul.bf16.gmra.mxu2 %v4359_v60 }
 0x3c2   :  { %2405 = vmatmul.bf16.gmra.mxu3 %v4361_v62 }
 0x3c3   :  { %v3866_v2 = vpop.eup %3865  ;;  %v2234_v4 = vadd.f32 %v2233_v61, %v2145_v44  ;;  %2183 = vmatmul.bf16.gmra.mxu0 %v4649_v33 }
 0x3c4   :  { %2741 = vst [vmem:[%s6220_s5 + $0x140] sm:$0xff] %v3866_v2  ;;  %2272 = vmatmul.bf16.gmra.mxu1 %v4654_v37  ;;  %v2001_v6 = vpop.f32.mrf.mxu2 }
 0x3c5   :  { %3869 = vtanh.f32 %v2234_v4  ;;  %v2002_v57 = vadd.f32 %v2001_v6, %v5615_v20  ;;  %v2090_v5 = vpop.f32.mrf.mxu3 }
 0x3c7   :  { %v3868_v10 = vpop.eup %3867  ;;  %v2091_v12 = vadd.f32 %v2090_v5, %v2002_v57 }
 0x3c8   :  { %2838 = vst [vmem:[%s6220_s5 + $0x448] sm:$0xff] %v3868_v10  ;;  %v2146_v60 = vpop.f32.mrf.mxu0 }
 0x3c9   :  { %3871 = vtanh.f32 %v2091_v12  ;;  %v2147_v62 = vadd.f32 %v2146_v60, %v5789_v58  ;;  %v2235_v14 = vpop.f32.mrf.mxu1 }
 0x3cb   :  { %v3870_v47 = vpop.eup %3869  ;;  %v2236_v45 = vadd.f32 %v2235_v14, %v2147_v62 }
 0x3cc   :  { %2748 = vst [vmem:[%s6220_s5 + $0x178] sm:$0xff] %v3870_v47  ;;  %v2003_v23 = vpop.f32.mrf.mxu2 }
 0x3cd   :  { %3873 = vtanh.f32 %v2236_v45  ;;  %v2004_v25 = vadd.f32 %v2003_v23, %v5615_v20  ;;  %v2092_v26 = vpop.f32.mrf.mxu3 }
 0x3cf   :  { %v3872_v27 = vpop.eup %3871  ;;  %v2093_v29 = vadd.f32 %v2092_v26, %v2004_v25 }
 0x3d0   :  { %2845 = vst [vmem:[%s6220_s5 + $0x480] sm:$0xff] %v3872_v27  ;;  %v2149_v31 = vpop.f32.mrf.mxu0 }
 0x3d1   :  { %3875 = vtanh.f32 %v2093_v29  ;;  %v2150_v32 = vadd.f32 %v2149_v31, %v5789_v58  ;;  %v2238_v35 = vpop.f32.mrf.mxu1  ;;  %2321 = vmatmul.bf16.gmra.mxu2 %v4395_v28 }
 0x3d2   :  { %2410 = vmatmul.bf16.gmra.mxu3 %v4397_v30 }
 0x3d3   :  { %v3874_v38 = vpop.eup %3873  ;;  %v2239_v39 = vadd.f32 %v2238_v35, %v2150_v32  ;;  %2188 = vmatmul.bf16.gmra.mxu0 %v4669_v18 }
 0x3d4   :  { %2755 = vst [vmem:[%s6220_s5 + $0x1b0] sm:$0xff] %v3874_v38  ;;  %2277 = vmatmul.bf16.gmra.mxu1 %v4674_v21  ;;  %v2006_v40 = vpop.f32.mrf.mxu2 }
 0x3d5   :  { %3877 = vtanh.f32 %v2239_v39  ;;  %v2007_v34 = vadd.f32 %v2006_v40, %v5615_v20  ;;  %v2095_v36 = vpop.f32.mrf.mxu3 }
 0x3d7   :  { %v3876_v42 = vpop.eup %3875  ;;  %v2096_v46 = vadd.f32 %v2095_v36, %v2007_v34 }
 0x3d8   :  { %2852 = vst [vmem:[%s6220_s5 + $0x4b8] sm:$0xff] %v3876_v42  ;;  %v2151_v28 = vpop.f32.mrf.mxu0 }
 0x3d9   :  { %3879 = vtanh.f32 %v2096_v46  ;;  %v2152_v30 = vadd.f32 %v2151_v28, %v5789_v58  ;;  %v2240_v49 = vpop.f32.mrf.mxu1 }
 0x3db   :  { %v3878_v50 = vpop.eup %3877  ;;  %v2241_v48 = vadd.f32 %v2240_v49, %v2152_v30 }
 0x3dc   :  { %2762 = vst [vmem:[%s6220_s5 + $0x1e8] sm:$0xff] %v3878_v50  ;;  %v2008_v52 = vpop.f32.mrf.mxu2 }
 0x3dd   :  { %3881 = vtanh.f32 %v2241_v48  ;;  %v2009_v55 = vadd.f32 %v2008_v52, %v5615_v20  ;;  %v2097_v51 = vpop.f32.mrf.mxu3 }
 0x3df   :  { %v3880_v15 = vpop.eup %3879  ;;  %v2098_v44 = vadd.f32 %v2097_v51, %v2009_v55 }
 0x3e0   :  { %2859 = vst [vmem:[%s6220_s5 + $0x4f0] sm:$0xff] %v3880_v15  ;;  %v2154_v61 = vpop.f32.mrf.mxu0 }
 0x3e1   :  { %3883 = vtanh.f32 %v2098_v44  ;;  %v2155_v2 = vadd.f32 %v2154_v61, %v5789_v58  ;;  %v2243_v4 = vpop.f32.mrf.mxu1  ;;  %2326 = vmatmul.bf16.gmra.mxu2 %v4428_v59 }
 0x3e2   :  { %2415 = vmatmul.bf16.gmra.mxu3 %v4433_v1 }
 0x3e3   :  { %v3882_v6 = vpop.eup %3881  ;;  %v2244_v57 = vadd.f32 %v2243_v4, %v2155_v2  ;;  %2193 = vmatmul.bf16.gmra.mxu0 %v4701_v13 }
 0x3e4   :  { %2769 = vst [vmem:[%s6220_s5 + $0x220] sm:$0xff] %v3882_v6  ;;  %2282 = vmatmul.bf16.gmra.mxu1 %v4706_v19  ;;  %v2011_v5 = vpop.f32.mrf.mxu2 }
 0x3e5   :  { %3885 = vtanh.f32 %v2244_v57  ;;  %v2012_v10 = vadd.f32 %v2011_v5, %v5615_v20  ;;  %v2100_v12 = vpop.f32.mrf.mxu3 }
 0x3e7   :  { %v3884_v60 = vpop.eup %3883  ;;  %v2101_v62 = vadd.f32 %v2100_v12, %v2012_v10 }
 0x3e8   :  { %2866 = vst [vmem:[%s6220_s5 + $0x528] sm:$0xff] %v3884_v60  ;;  %v2156_v59 = vpop.f32.mrf.mxu0 }
 0x3e9   :  { %3887 = vtanh.f32 %v2101_v62  ;;  %v2157_v1 = vadd.f32 %v2156_v59, %v5789_v58  ;;  %v2245_v14 = vpop.f32.mrf.mxu1 }
 0x3eb   :  { %v3886_v47 = vpop.eup %3885  ;;  %v2246_v45 = vadd.f32 %v2245_v14, %v2157_v1 }
 0x3ec   :  { %2776 = vst [vmem:[%s6220_s5 + $0x258] sm:$0xff] %v3886_v47  ;;  %v2013_v23 = vpop.f32.mrf.mxu2 }
 0x3ed   :  { %3889 = vtanh.f32 %v2246_v45  ;;  %v2014_v25 = vadd.f32 %v2013_v23, %v5615_v20  ;;  %v2102_v26 = vpop.f32.mrf.mxu3 }
 0x3ef   :  { %v3888_v27 = vpop.eup %3887  ;;  %v2103_v29 = vadd.f32 %v2102_v26, %v2014_v25 }
 0x3f0   :  { %2873 = vst [vmem:[%s6220_s5 + $0x560] sm:$0xff] %v3888_v27  ;;  %v2159_v31 = vpop.f32.mrf.mxu0 }
 0x3f1   :  { %3891 = vtanh.f32 %v2103_v29  ;;  %v2160_v32 = vadd.f32 %v2159_v31, %v5789_v58  ;;  %v2248_v35 = vpop.f32.mrf.mxu1  ;;  %2331 = vmatmul.bf16.gmra.mxu2 %v4506_v56 }
 0x3f2   :  { %2420 = vmatmul.bf16.gmra.mxu3 %v4511_v63 }
 0x3f3   :  { %v3890_v38 = vpop.eup %3889  ;;  %v2249_v39 = vadd.f32 %v2248_v35, %v2160_v32  ;;  %2198 = vmatmul.bf16.gmra.mxu0 %v4721_v7 }
 0x3f4   :  { %2783 = vst [vmem:[%s6220_s5 + $0x290] sm:$0xff] %v3890_v38  ;;  %2287 = vmatmul.bf16.gmra.mxu1 %v4726_v9  ;;  %v2016_v40 = vpop.f32.mrf.mxu2 }
 0x3f5   :  { %3893 = vtanh.f32 %v2249_v39  ;;  %v2017_v34 = vadd.f32 %v2016_v40, %v5615_v20  ;;  %v2105_v36 = vpop.f32.mrf.mxu3 }
 0x3f7   :  { %v3892_v42 = vpop.eup %3891  ;;  %v2106_v46 = vadd.f32 %v2105_v36, %v2017_v34 }
 0x3f8   :  { %2880 = vst [vmem:[%s6220_s5 + $0x598] sm:$0xff] %v3892_v42  ;;  %v2161_v56 = vpop.f32.mrf.mxu0 }
 0x3f9   :  { %3895 = vtanh.f32 %v2106_v46  ;;  %v2162_v63 = vadd.f32 %v2161_v56, %v5789_v58  ;;  %v2250_v28 = vpop.f32.mrf.mxu1 }
 0x3fb   :  { %v3894_v30 = vpop.eup %3893  ;;  %v2251_v49 = vadd.f32 %v2250_v28, %v2162_v63 }
 0x3fc   :  { %2790 = vst [vmem:[%s6220_s5 + $0x2c8] sm:$0xff] %v3894_v30  ;;  %v2018_v50 = vpop.f32.mrf.mxu2 }
 0x3fd   :  { %3897 = vtanh.f32 %v2251_v49  ;;  %v2019_v48 = vadd.f32 %v2018_v50, %v5615_v20  ;;  %v2107_v52 = vpop.f32.mrf.mxu3 }
 0x3ff   :  { %v3896_v55 = vpop.eup %3895  ;;  %v2108_v51 = vadd.f32 %v2107_v52, %v2019_v48  ;;  %v4011_v52 = vld [vmem:[%s6219_s4] sm:$0x7f] }
 0x400   :  { %2887 = vst [vmem:[%s6220_s5 + $0x5d0] sm:$0xff] %v3896_v55  ;;  %v2164_v15 = vpop.f32.mrf.mxu0  ;;  %v5977_v55 = vperm.slane %v4011_v52, 6 }
 0x401   :  { %3899 = vtanh.f32 %v2108_v51  ;;  %v2165_v44 = vadd.f32 %v2164_v15, %v5789_v58  ;;  %v2253_v61 = vpop.f32.mrf.mxu1  ;;  %2336 = vmatmul.bf16.gmra.mxu2 %v4527_v22 }
 0x402   :  { %2425 = vmatmul.bf16.gmra.mxu3 %v4529_v24 }
 0x403   :  { %v3898_v2 = vpop.eup %3897  ;;  %v2254_v4 = vadd.f32 %v2253_v61, %v2165_v44  ;;  %2203 = vmatmul.bf16.gmra.mxu0 %v4756_v8 }
 0x404   :  { %2797 = vst [vmem:[%s6220_s5 + $0x300] sm:$0xff] %v3898_v2  ;;  %2292 = vmatmul.bf16.gmra.mxu1 %v4761_v11  ;;  %v2021_v6 = vpop.f32.mrf.mxu2 }
 0x405   :  { %3901 = vtanh.f32 %v2254_v4  ;;  %v2022_v57 = vadd.f32 %v2021_v6, %v5615_v20  ;;  %v2110_v5 = vpop.f32.mrf.mxu3 }
 0x407   :  { %v3900_v10 = vpop.eup %3899  ;;  %v2111_v12 = vadd.f32 %v2110_v5, %v2022_v57 }
 0x408   :  { %2894 = vst [vmem:[%s6220_s5 + $0x608] sm:$0xff] %v3900_v10  ;;  %v2166_v22 = vpop.f32.mrf.mxu0 }
 0x409   :  { %3903 = vtanh.f32 %v2111_v12  ;;  %v2167_v24 = vadd.f32 %v2166_v22, %v5789_v58  ;;  %v2255_v60 = vpop.f32.mrf.mxu1 }
 0x40b   :  { %v3902_v62 = vpop.eup %3901  ;;  %v2256_v59 = vadd.f32 %v2255_v60, %v2167_v24 }
 0x40c   :  { %2804 = vst [vmem:[%s6220_s5 + $0x338] sm:$0xff] %v3902_v62  ;;  %v2023_v1 = vpop.f32.mrf.mxu2 }
 0x40d   :  { %3905 = vtanh.f32 %v2256_v59  ;;  %v2024_v14 = vadd.f32 %v2023_v1, %v5615_v20  ;;  %v2112_v47 = vpop.f32.mrf.mxu3 }
 0x40f   :  { %v3904_v45 = vpop.eup %3903  ;;  %v2113_v23 = vadd.f32 %v2112_v47, %v2024_v14 }
 0x410   :  { %2901 = vst [vmem:[%s6220_s5 + $0x640] sm:$0xff] %v3904_v45  ;;  %v2169_v25 = vpop.f32.mrf.mxu0 }
 0x411   :  { %3907 = vtanh.f32 %v2113_v23  ;;  %v2170_v26 = vadd.f32 %v2169_v25, %v5789_v58  ;;  %v2258_v27 = vpop.f32.mrf.mxu1  ;;  %2341 = vmatmul.bf16.gmra.mxu2 %v4551_v53 }
 0x412   :  { %2430 = vmatmul.bf16.gmra.mxu3 %v4553_v54 }
 0x413   :  { %v3906_v29 = vpop.eup %3905  ;;  %v2259_v31 = vadd.f32 %v2258_v27, %v2170_v26 }
 0x414   :  { %2811 = vst [vmem:[%s6220_s5 + $0x370] sm:$0xff] %v3906_v29  ;;  %v2026_v32 = vpop.f32.mrf.mxu2 }
 0x415   :  { %3909 = vtanh.f32 %v2259_v31  ;;  %v2027_v35 = vadd.f32 %v2026_v32, %v5615_v20  ;;  %v2115_v38 = vpop.f32.mrf.mxu3 }
 0x417   :  { %v3908_v39 = vpop.eup %3907  ;;  %v2116_v40 = vadd.f32 %v2115_v38, %v2027_v35 }
 0x418   :  { %2908 = vst [vmem:[%s6220_s5 + $0x678] sm:$0xff] %v3908_v39  ;;  %v2171_v53 = vpop.f32.mrf.mxu0 }
 0x419   :  { %3911 = vtanh.f32 %v2116_v40  ;;  %v2172_v54 = vadd.f32 %v2171_v53, %v5789_v58  ;;  %v2260_v34 = vpop.f32.mrf.mxu1 }
 0x41b   :  { %v3910_v36 = vpop.eup %3909  ;;  %v2261_v42 = vadd.f32 %v2260_v34, %v2172_v54 }
 0x41c   :  { %2818 = vst [vmem:[%s6220_s5 + $0x3a8] sm:$0xff] %v3910_v36  ;;  %v2028_v46 = vpop.f32.mrf.mxu2 }
 0x41d   :  { %3913 = vtanh.f32 %v2261_v42  ;;  %v2029_v56 = vadd.f32 %v2028_v46, %v5615_v20  ;;  %v2117_v63 = vpop.f32.mrf.mxu3 }
 0x41f   :  { %v3912_v28 = vpop.eup %3911  ;;  %v2118_v30 = vadd.f32 %v2117_v63, %v2029_v56 }
 0x420   :  { %2915 = vst [vmem:[%s6220_s5 + $0x6b0] sm:$0xff] %v3912_v28  ;;  %v2174_v49 = vpop.f32.mrf.mxu0 }
 0x421   :  { %3915 = vtanh.f32 %v2118_v30  ;;  %v2175_v50 = vadd.f32 %v2174_v49, %v5789_v58  ;;  %v2263_v48 = vpop.f32.mrf.mxu1  ;;  %2346 = vmatmul.bf16.gmra.mxu2 %v4568_v16 }
 0x422   :  { %2435 = vmatmul.bf16.gmra.mxu3 %v4570_v17 }
 0x423   :  { %v3914_v20 = vpop.eup %3913  ;;  %v2264_v51 = vadd.f32 %v2263_v48, %v2175_v50 }
 0x424   :  { %2825 = vst [vmem:[%s6220_s5 + $0x3e0] sm:$0xff] %v3914_v20  ;;  %v2307_v15 = vpop.f32.mrf.mxu2 }
 0x425   :  { %3917 = vtanh.f32 %v2264_v51  ;;  %v2308_v44 = vadd.f32 %v2307_v15, %v5977_v55  ;;  %v2396_v61 = vpop.f32.mrf.mxu3 }
 0x427   :  { %v3916_v16 = vpop.eup %3915  ;;  %v2397_v2 = vadd.f32 %v2396_v61, %v2308_v44 }
 0x428   :  { %2922 = vst [vmem:[%s6220_s5 + $0x6e8] sm:$0xff] %v3916_v16  ;;  %v2176_v4 = vpop.f32.mrf.mxu0 }
 0x429   :  { %3919 = vtanh.f32 %v2397_v2  ;;  %v2177_v17 = vadd.f32 %v2176_v4, %v5789_v58  ;;  %v2265_v6 = vpop.f32.mrf.mxu1 }
 0x42b   :  { %v3918_v57 = vpop.eup %3917  ;;  %v2266_v5 = vadd.f32 %v2265_v6, %v2177_v17 }
 0x42c   :  { %2832 = vst [vmem:[%s6220_s5 + $0x418] sm:$0xff] %v3918_v57  ;;  %v2309_v10 = vpop.f32.mrf.mxu2 }
 0x42d   :  { %3921 = vtanh.f32 %v2266_v5  ;;  %v2310_v12 = vadd.f32 %v2309_v10, %v5977_v55  ;;  %v2398_v22 = vpop.f32.mrf.mxu3 }
 0x42f   :  { %v3920_v24 = vpop.eup %3919  ;;  %v2399_v60 = vadd.f32 %v2398_v22, %v2310_v12 }
 0x430   :  { %2707 = vst.msk [vmem:[%s6220_s5 + $0x30] sm:$0xff] %vm2706_vm1, %v3920_v24  ;;  %v2179_v62 = vpop.f32.mrf.mxu0 }
 0x431   :  { %3923 = vtanh.f32 %v2399_v60  ;;  %v2180_v59 = vadd.f32 %v2179_v62, %v5789_v58  ;;  %v2268_v1 = vpop.f32.mrf.mxu1  ;;  %2351 = vmatmul.bf16.gmra.mxu2 %v4597_v0 }
 0x432   :  { %2440 = vmatmul.bf16.gmra.mxu3 %v4602_v3 }
 0x433   :  { %v3922_v14 = vpop.eup %3921  ;;  %v2269_v47 = vadd.f32 %v2268_v1, %v2180_v59 }
 0x434   :  { %2839 = vst [vmem:[%s6220_s5 + $0x450] sm:$0xff] %v3922_v14  ;;  %v2312_v45 = vpop.f32.mrf.mxu2 }
 0x435   :  { %3925 = vtanh.f32 %v2269_v47  ;;  %v2313_v23 = vadd.f32 %v2312_v45, %v5977_v55  ;;  %v2401_v25 = vpop.f32.mrf.mxu3 }
 0x437   :  { %v3924_v26 = vpop.eup %3923  ;;  %v2402_v27 = vadd.f32 %v2401_v25, %v2313_v23 }
 0x438   :  { %2714 = vst.msk [vmem:[%s6220_s5 + $0x68] sm:$0xff] %vm2706_vm1, %v3924_v26  ;;  %v2181_v0 = vpop.f32.mrf.mxu0 }
 0x439   :  { %3927 = vtanh.f32 %v2402_v27  ;;  %v2182_v3 = vadd.f32 %v2181_v0, %v5789_v58  ;;  %v2270_v29 = vpop.f32.mrf.mxu1 }
 0x43b   :  { %v3926_v31 = vpop.eup %3925  ;;  %v2271_v32 = vadd.f32 %v2270_v29, %v2182_v3 }
 0x43c   :  { %2846 = vst [vmem:[%s6220_s5 + $0x488] sm:$0xff] %v3926_v31  ;;  %v2314_v35 = vpop.f32.mrf.mxu2 }
 0x43d   :  { %3929 = vtanh.f32 %v2271_v32  ;;  %v2315_v38 = vadd.f32 %v2314_v35, %v5977_v55  ;;  %v2403_v39 = vpop.f32.mrf.mxu3 }
 0x43f   :  { %v3928_v40 = vpop.eup %3927  ;;  %v2404_v53 = vadd.f32 %v2403_v39, %v2315_v38 }
 0x440   :  { %2721 = vst.msk [vmem:[%s6220_s5 + $0xa0] sm:$0xff] %vm2706_vm1, %v3928_v40  ;;  %v2184_v54 = vpop.f32.mrf.mxu0 }
 0x441   :  { %3931 = vtanh.f32 %v2404_v53  ;;  %v2185_v34 = vadd.f32 %v2184_v54, %v5789_v58  ;;  %v2273_v36 = vpop.f32.mrf.mxu1  ;;  %2356 = vmatmul.bf16.gmra.mxu2 %v4617_v41 }
 0x442   :  { %2445 = vmatmul.bf16.gmra.mxu3 %v4622_v43 }
 0x443   :  { %v3930_v42 = vpop.eup %3929  ;;  %v2274_v46 = vadd.f32 %v2273_v36, %v2185_v34 }
 0x444   :  { %2853 = vst [vmem:[%s6220_s5 + $0x4c0] sm:$0xff] %v3930_v42  ;;  %v2317_v56 = vpop.f32.mrf.mxu2 }
 0x445   :  { %3933 = vtanh.f32 %v2274_v46  ;;  %v2318_v63 = vadd.f32 %v2317_v56, %v5977_v55  ;;  %v2406_v28 = vpop.f32.mrf.mxu3 }
 0x447   :  { %v3932_v30 = vpop.eup %3931  ;;  %v2407_v49 = vadd.f32 %v2406_v28, %v2318_v63 }
 0x448   :  { %2728 = vst.msk [vmem:[%s6220_s5 + $0xd8] sm:$0xff] %vm2706_vm1, %v3932_v30  ;;  %v2186_v41 = vpop.f32.mrf.mxu0 }
 0x449   :  { %3935 = vtanh.f32 %v2407_v49  ;;  %v2187_v43 = vadd.f32 %v2186_v41, %v5789_v58  ;;  %v2275_v50 = vpop.f32.mrf.mxu1 }
 0x44b   :  { %v3934_v48 = vpop.eup %3933  ;;  %v2276_v52 = vadd.f32 %v2275_v50, %v2187_v43 }
 0x44c   :  { %2860 = vst [vmem:[%s6220_s5 + $0x4f8] sm:$0xff] %v3934_v48  ;;  %v2319_v20 = vpop.f32.mrf.mxu2 }
 0x44d   :  { %3937 = vtanh.f32 %v2276_v52  ;;  %v2320_v51 = vadd.f32 %v2319_v20, %v5977_v55  ;;  %v2408_v15 = vpop.f32.mrf.mxu3 }
 0x44f   :  { %v3936_v44 = vpop.eup %3935  ;;  %v2409_v61 = vadd.f32 %v2408_v15, %v2320_v51 }
 0x450   :  { %2735 = vst.msk [vmem:[%s6220_s5 + $0x110] sm:$0xff] %vm2706_vm1, %v3936_v44  ;;  %v2189_v16 = vpop.f32.mrf.mxu0 }
 0x451   :  { %3939 = vtanh.f32 %v2409_v61  ;;  %v2190_v2 = vadd.f32 %v2189_v16, %v5789_v58  ;;  %v2278_v4 = vpop.f32.mrf.mxu1  ;;  %2361 = vmatmul.bf16.gmra.mxu2 %v4649_v33 }
 0x452   :  { %2450 = vmatmul.bf16.gmra.mxu3 %v4654_v37 }
 0x453   :  { %v3938_v17 = vpop.eup %3937  ;;  %v2279_v6 = vadd.f32 %v2278_v4, %v2190_v2 }
 0x454   :  { %2867 = vst [vmem:[%s6220_s5 + $0x530] sm:$0xff] %v3938_v17  ;;  %v2322_v57 = vpop.f32.mrf.mxu2 }
 0x455   :  { %3941 = vtanh.f32 %v2279_v6  ;;  %v2323_v5 = vadd.f32 %v2322_v57, %v5977_v55  ;;  %v2411_v10 = vpop.f32.mrf.mxu3 }
 0x457   :  { %v3940_v12 = vpop.eup %3939  ;;  %v2412_v22 = vadd.f32 %v2411_v10, %v2323_v5 }
 0x458   :  { %2742 = vst.msk [vmem:[%s6220_s5 + $0x148] sm:$0xff] %vm2706_vm1, %v3940_v12  ;;  %v2191_v33 = vpop.f32.mrf.mxu0 }
 0x459   :  { %3943 = vtanh.f32 %v2412_v22  ;;  %v2192_v37 = vadd.f32 %v2191_v33, %v5789_v58  ;;  %v2280_v24 = vpop.f32.mrf.mxu1 }
 0x45b   :  { %v3942_v60 = vpop.eup %3941  ;;  %v2281_v62 = vadd.f32 %v2280_v24, %v2192_v37 }
 0x45c   :  { %2874 = vst [vmem:[%s6220_s5 + $0x568] sm:$0xff] %v3942_v60  ;;  %v2324_v59 = vpop.f32.mrf.mxu2 }
 0x45d   :  { %3945 = vtanh.f32 %v2281_v62  ;;  %v2325_v1 = vadd.f32 %v2324_v59, %v5977_v55  ;;  %v2413_v14 = vpop.f32.mrf.mxu3 }
 0x45f   :  { %v3944_v47 = vpop.eup %3943  ;;  %v2414_v45 = vadd.f32 %v2413_v14, %v2325_v1 }
 0x460   :  { %2749 = vst.msk [vmem:[%s6220_s5 + $0x180] sm:$0xff] %vm2706_vm1, %v3944_v47  ;;  %v2194_v23 = vpop.f32.mrf.mxu0 }
 0x461   :  { %3947 = vtanh.f32 %v2414_v45  ;;  %v2195_v25 = vadd.f32 %v2194_v23, %v5789_v58  ;;  %v2283_v26 = vpop.f32.mrf.mxu1  ;;  %2366 = vmatmul.bf16.gmra.mxu2 %v4669_v18 }
 0x462   :  { %2455 = vmatmul.bf16.gmra.mxu3 %v4674_v21 }
 0x463   :  { %v3946_v27 = vpop.eup %3945  ;;  %v2284_v0 = vadd.f32 %v2283_v26, %v2195_v25 }
 0x464   :  { %2881 = vst [vmem:[%s6220_s5 + $0x5a0] sm:$0xff] %v3946_v27  ;;  %v2327_v3 = vpop.f32.mrf.mxu2 }
 0x465   :  { %3949 = vtanh.f32 %v2284_v0  ;;  %v2328_v29 = vadd.f32 %v2327_v3, %v5977_v55  ;;  %v2416_v31 = vpop.f32.mrf.mxu3 }
 0x467   :  { %v3948_v32 = vpop.eup %3947  ;;  %v2417_v35 = vadd.f32 %v2416_v31, %v2328_v29 }
 0x468   :  { %2756 = vst.msk [vmem:[%s6220_s5 + $0x1b8] sm:$0xff] %vm2706_vm1, %v3948_v32  ;;  %v2196_v18 = vpop.f32.mrf.mxu0 }
 0x469   :  { %3951 = vtanh.f32 %v2417_v35  ;;  %v2197_v21 = vadd.f32 %v2196_v18, %v5789_v58  ;;  %v2285_v38 = vpop.f32.mrf.mxu1 }
 0x46b   :  { %v3950_v39 = vpop.eup %3949  ;;  %v2286_v40 = vadd.f32 %v2285_v38, %v2197_v21 }
 0x46c   :  { %2888 = vst [vmem:[%s6220_s5 + $0x5d8] sm:$0xff] %v3950_v39  ;;  %v2329_v53 = vpop.f32.mrf.mxu2 }
 0x46d   :  { %3953 = vtanh.f32 %v2286_v40  ;;  %v2330_v54 = vadd.f32 %v2329_v53, %v5977_v55  ;;  %v2418_v34 = vpop.f32.mrf.mxu3 }
 0x46f   :  { %v3952_v36 = vpop.eup %3951  ;;  %v2419_v42 = vadd.f32 %v2418_v34, %v2330_v54 }
 0x470   :  { %2763 = vst.msk [vmem:[%s6220_s5 + $0x1f0] sm:$0xff] %vm2706_vm1, %v3952_v36  ;;  %v2199_v46 = vpop.f32.mrf.mxu0 }
 0x471   :  { %3955 = vtanh.f32 %v2419_v42  ;;  %v2200_v56 = vadd.f32 %v2199_v46, %v5789_v58  ;;  %v2288_v63 = vpop.f32.mrf.mxu1  ;;  %2371 = vmatmul.bf16.gmra.mxu2 %v4701_v13 }
 0x472   :  { %2460 = vmatmul.bf16.gmra.mxu3 %v4706_v19 }
 0x473   :  { %v3954_v28 = vpop.eup %3953  ;;  %v2289_v30 = vadd.f32 %v2288_v63, %v2200_v56 }
 0x474   :  { %2895 = vst [vmem:[%s6220_s5 + $0x610] sm:$0xff] %v3954_v28  ;;  %v2332_v49 = vpop.f32.mrf.mxu2 }
 0x475   :  { %3957 = vtanh.f32 %v2289_v30  ;;  %v2333_v41 = vadd.f32 %v2332_v49, %v5977_v55  ;;  %v2421_v43 = vpop.f32.mrf.mxu3 }
 0x477   :  { %v3956_v50 = vpop.eup %3955  ;;  %v2422_v48 = vadd.f32 %v2421_v43, %v2333_v41 }
 0x478   :  { %2770 = vst.msk [vmem:[%s6220_s5 + $0x228] sm:$0xff] %vm2706_vm1, %v3956_v50  ;;  %v2201_v13 = vpop.f32.mrf.mxu0 }
 0x479   :  { %3959 = vtanh.f32 %v2422_v48  ;;  %v2202_v19 = vadd.f32 %v2201_v13, %v5789_v58  ;;  %v2290_v52 = vpop.f32.mrf.mxu1 }
 0x47b   :  { %v3958_v20 = vpop.eup %3957  ;;  %v2291_v51 = vadd.f32 %v2290_v52, %v2202_v19 }
 0x47c   :  { %2902 = vst [vmem:[%s6220_s5 + $0x648] sm:$0xff] %v3958_v20  ;;  %v2334_v15 = vpop.f32.mrf.mxu2 }
 0x47d   :  { %3961 = vtanh.f32 %v2291_v51  ;;  %v2335_v44 = vadd.f32 %v2334_v15, %v5977_v55  ;;  %v2423_v61 = vpop.f32.mrf.mxu3 }
 0x47f   :  { %v3960_v16 = vpop.eup %3959  ;;  %v2424_v2 = vadd.f32 %v2423_v61, %v2335_v44 }
 0x480   :  { %2777 = vst.msk [vmem:[%s6220_s5 + $0x260] sm:$0xff] %vm2706_vm1, %v3960_v16  ;;  %v2204_v4 = vpop.f32.mrf.mxu0 }
 0x481   :  { %3963 = vtanh.f32 %v2424_v2  ;;  %v2205_v17 = vadd.f32 %v2204_v4, %v5789_v58  ;;  %v2293_v6 = vpop.f32.mrf.mxu1  ;;  %2376 = vmatmul.bf16.gmra.mxu2 %v4721_v7 }
 0x482   :  { %2465 = vmatmul.bf16.gmra.mxu3 %v4726_v9 }
 0x483   :  { %v3962_v57 = vpop.eup %3961  ;;  %v2294_v5 = vadd.f32 %v2293_v6, %v2205_v17 }
 0x484   :  { %2909 = vst [vmem:[%s6220_s5 + $0x680] sm:$0xff] %v3962_v57  ;;  %v2337_v10 = vpop.f32.mrf.mxu2 }
 0x485   :  { %3965 = vtanh.f32 %v2294_v5  ;;  %v2338_v12 = vadd.f32 %v2337_v10, %v5977_v55  ;;  %v2426_v22 = vpop.f32.mrf.mxu3 }
 0x487   :  { %v3964_v33 = vpop.eup %3963  ;;  %v2427_v37 = vadd.f32 %v2426_v22, %v2338_v12 }
 0x488   :  { %2784 = vst.msk [vmem:[%s6220_s5 + $0x298] sm:$0xff] %vm2706_vm1, %v3964_v33  ;;  %v2206_v7 = vpop.f32.mrf.mxu0 }
 0x489   :  { %3967 = vtanh.f32 %v2427_v37  ;;  %v2207_v9 = vadd.f32 %v2206_v7, %v5789_v58  ;;  %v2295_v24 = vpop.f32.mrf.mxu1 }
 0x48b   :  { %v3966_v60 = vpop.eup %3965  ;;  %v2296_v62 = vadd.f32 %v2295_v24, %v2207_v9 }
 0x48c   :  { %2916 = vst [vmem:[%s6220_s5 + $0x6b8] sm:$0xff] %v3966_v60  ;;  %v2339_v59 = vpop.f32.mrf.mxu2 }
 0x48d   :  { %3969 = vtanh.f32 %v2296_v62  ;;  %v2340_v1 = vadd.f32 %v2339_v59, %v5977_v55  ;;  %v2428_v14 = vpop.f32.mrf.mxu3 }
 0x48f   :  { %v3968_v47 = vpop.eup %3967  ;;  %v2429_v45 = vadd.f32 %v2428_v14, %v2340_v1 }
 0x490   :  { %2791 = vst.msk [vmem:[%s6220_s5 + $0x2d0] sm:$0xff] %vm2706_vm1, %v3968_v47 }
 0x491   :  { %3971 = vtanh.f32 %v2429_v45  ;;  %2381 = vmatmul.bf16.gmra.mxu2 %v4756_v8 }
 0x492   :  { %2470 = vmatmul.bf16.gmra.mxu3 %v4761_v11 }
 0x493   :  { %v3970_v58 = vpop.eup %3969 }
 0x494   :  { %2923 = vst [vmem:[%s6220_s5 + $0x6f0] sm:$0xff] %v3970_v58  ;;  %v2342_v23 = vpop.f32.mrf.mxu2 }
 0x495   :  { %v2343_v25 = vadd.f32 %v2342_v23, %v5977_v55  ;;  %v2431_v26 = vpop.f32.mrf.mxu3 }
 0x497   :  { %v3972_v27 = vpop.eup %3971  ;;  %v2432_v0 = vadd.f32 %v2431_v26, %v2343_v25 }
 0x498   :  { %2798 = vst.msk [vmem:[%s6220_s5 + $0x308] sm:$0xff] %vm2706_vm1, %v3972_v27 }
 0x499   :  { %3973 = vtanh.f32 %v2432_v0 }
 0x49c   :  { %v2344_v8 = vpop.f32.mrf.mxu2 }
 0x49d   :  { %v2345_v11 = vadd.f32 %v2344_v8, %v5977_v55  ;;  %v2433_v3 = vpop.f32.mrf.mxu3 }
 0x49f   :  { %v3974_v29 = vpop.eup %3973  ;;  %v2434_v31 = vadd.f32 %v2433_v3, %v2345_v11 }
 0x4a0   :  { %2805 = vst.msk [vmem:[%s6220_s5 + $0x340] sm:$0xff] %vm2706_vm1, %v3974_v29 }
 0x4a1   :  { %3975 = vtanh.f32 %v2434_v31 }
 0x4a4   :  { %v2347_v32 = vpop.f32.mrf.mxu2 }
 0x4a5   :  { %v2348_v35 = vadd.f32 %v2347_v32, %v5977_v55  ;;  %v2436_v18 = vpop.f32.mrf.mxu3 }
 0x4a7   :  { %v3976_v21 = vpop.eup %3975  ;;  %v2437_v38 = vadd.f32 %v2436_v18, %v2348_v35 }
 0x4a8   :  { %2812 = vst.msk [vmem:[%s6220_s5 + $0x378] sm:$0xff] %vm2706_vm1, %v3976_v21 }
 0x4a9   :  { %3977 = vtanh.f32 %v2437_v38 }
 0x4ac   :  { %v2349_v39 = vpop.f32.mrf.mxu2 }
 0x4ad   :  { %v2350_v40 = vadd.f32 %v2349_v39, %v5977_v55  ;;  %v2438_v53 = vpop.f32.mrf.mxu3 }
 0x4af   :  { %v3978_v54 = vpop.eup %3977  ;;  %v2439_v34 = vadd.f32 %v2438_v53, %v2350_v40 }
 0x4b0   :  { %2819 = vst.msk [vmem:[%s6220_s5 + $0x3b0] sm:$0xff] %vm2706_vm1, %v3978_v54 }
 0x4b1   :  { %3979 = vtanh.f32 %v2439_v34 }
 0x4b4   :  { %v2352_v36 = vpop.f32.mrf.mxu2 }
 0x4b5   :  { %v2353_v42 = vadd.f32 %v2352_v36, %v5977_v55  ;;  %v2441_v46 = vpop.f32.mrf.mxu3 }
 0x4b7   :  { %v3980_v56 = vpop.eup %3979  ;;  %v2442_v63 = vadd.f32 %v2441_v46, %v2353_v42 }
 0x4b8   :  { %2826 = vst.msk [vmem:[%s6220_s5 + $0x3e8] sm:$0xff] %vm2706_vm1, %v3980_v56 }
 0x4b9   :  { %3981 = vtanh.f32 %v2442_v63 }
 0x4bc   :  { %v2354_v28 = vpop.f32.mrf.mxu2 }
 0x4bd   :  { %v2355_v30 = vadd.f32 %v2354_v28, %v5977_v55  ;;  %v2443_v49 = vpop.f32.mrf.mxu3 }
 0x4bf   :  { %v3982_v41 = vpop.eup %3981  ;;  %v2444_v43 = vadd.f32 %v2443_v49, %v2355_v30 }
 0x4c0   :  { %2833 = vst.msk [vmem:[%s6220_s5 + $0x420] sm:$0xff] %vm2706_vm1, %v3982_v41 }
 0x4c1   :  { %3983 = vtanh.f32 %v2444_v43 }
 0x4c4   :  { %v2357_v50 = vpop.f32.mrf.mxu2 }
 0x4c5   :  { %v2358_v48 = vadd.f32 %v2357_v50, %v5977_v55  ;;  %v2446_v13 = vpop.f32.mrf.mxu3 }
 0x4c7   :  { %v3984_v19 = vpop.eup %3983  ;;  %v2447_v52 = vadd.f32 %v2446_v13, %v2358_v48 }
 0x4c8   :  { %2840 = vst.msk [vmem:[%s6220_s5 + $0x458] sm:$0xff] %vm2706_vm1, %v3984_v19 }
 0x4c9   :  { %3985 = vtanh.f32 %v2447_v52 }
 0x4cc   :  { %v2359_v20 = vpop.f32.mrf.mxu2 }
 0x4cd   :  { %v2360_v51 = vadd.f32 %v2359_v20, %v5977_v55  ;;  %v2448_v15 = vpop.f32.mrf.mxu3 }
 0x4cf   :  { %v3986_v44 = vpop.eup %3985  ;;  %v2449_v61 = vadd.f32 %v2448_v15, %v2360_v51 }
 0x4d0   :  { %2847 = vst.msk [vmem:[%s6220_s5 + $0x490] sm:$0xff] %vm2706_vm1, %v3986_v44 }
 0x4d1   :  { %3987 = vtanh.f32 %v2449_v61 }
 0x4d4   :  { %v2362_v16 = vpop.f32.mrf.mxu2 }
 0x4d5   :  { %v2363_v2 = vadd.f32 %v2362_v16, %v5977_v55  ;;  %v2451_v4 = vpop.f32.mrf.mxu3 }
 0x4d7   :  { %v3988_v17 = vpop.eup %3987  ;;  %v2452_v6 = vadd.f32 %v2451_v4, %v2363_v2 }
 0x4d8   :  { %2854 = vst.msk [vmem:[%s6220_s5 + $0x4c8] sm:$0xff] %vm2706_vm1, %v3988_v17 }
 0x4d9   :  { %3989 = vtanh.f32 %v2452_v6 }
 0x4dc   :  { %v2364_v57 = vpop.f32.mrf.mxu2 }
 0x4dd   :  { %v2365_v5 = vadd.f32 %v2364_v57, %v5977_v55  ;;  %v2453_v10 = vpop.f32.mrf.mxu3 }
 0x4df   :  { %v3990_v12 = vpop.eup %3989  ;;  %v2454_v22 = vadd.f32 %v2453_v10, %v2365_v5 }
 0x4e0   :  { %2861 = vst.msk [vmem:[%s6220_s5 + $0x500] sm:$0xff] %vm2706_vm1, %v3990_v12 }
 0x4e1   :  { %3991 = vtanh.f32 %v2454_v22 }
 0x4e4   :  { %v2367_v33 = vpop.f32.mrf.mxu2 }
 0x4e5   :  { %v2368_v37 = vadd.f32 %v2367_v33, %v5977_v55  ;;  %v2456_v7 = vpop.f32.mrf.mxu3 }
 0x4e7   :  { %v3992_v9 = vpop.eup %3991  ;;  %v2457_v24 = vadd.f32 %v2456_v7, %v2368_v37 }
 0x4e8   :  { %2868 = vst.msk [vmem:[%s6220_s5 + $0x538] sm:$0xff] %vm2706_vm1, %v3992_v9 }
 0x4e9   :  { %3993 = vtanh.f32 %v2457_v24 }
 0x4ec   :  { %v2369_v60 = vpop.f32.mrf.mxu2 }
 0x4ed   :  { %v2370_v62 = vadd.f32 %v2369_v60, %v5977_v55  ;;  %v2458_v59 = vpop.f32.mrf.mxu3 }
 0x4ef   :  { %v3994_v1 = vpop.eup %3993  ;;  %v2459_v14 = vadd.f32 %v2458_v59, %v2370_v62 }
 0x4f0   :  { %2875 = vst.msk [vmem:[%s6220_s5 + $0x570] sm:$0xff] %vm2706_vm1, %v3994_v1 }
 0x4f1   :  { %3995 = vtanh.f32 %v2459_v14 }
 0x4f4   :  { %v2372_v47 = vpop.f32.mrf.mxu2 }
 0x4f5   :  { %v2373_v45 = vadd.f32 %v2372_v47, %v5977_v55  ;;  %v2461_v58 = vpop.f32.mrf.mxu3 }
 0x4f7   :  { %v3996_v23 = vpop.eup %3995  ;;  %v2462_v25 = vadd.f32 %v2461_v58, %v2373_v45 }
 0x4f8   :  { %2882 = vst.msk [vmem:[%s6220_s5 + $0x5a8] sm:$0xff] %vm2706_vm1, %v3996_v23 }
 0x4f9   :  { %3997 = vtanh.f32 %v2462_v25 }
 0x4fc   :  { %v2374_v26 = vpop.f32.mrf.mxu2 }
 0x4fd   :  { %v2375_v27 = vadd.f32 %v2374_v26, %v5977_v55  ;;  %v2463_v0 = vpop.f32.mrf.mxu3 }
 0x4ff   :  { %v3998_v8 = vpop.eup %3997  ;;  %v2464_v11 = vadd.f32 %v2463_v0, %v2375_v27 }
 0x500   :  { %2889 = vst.msk [vmem:[%s6220_s5 + $0x5e0] sm:$0xff] %vm2706_vm1, %v3998_v8 }
 0x501   :  { %3999 = vtanh.f32 %v2464_v11 }
 0x504   :  { %v2377_v3 = vpop.f32.mrf.mxu2 }
 0x505   :  { %v2378_v29 = vadd.f32 %v2377_v3, %v5977_v55  ;;  %v2466_v31 = vpop.f32.mrf.mxu3 }
 0x507   :  { %v4000_v32 = vpop.eup %3999  ;;  %v2467_v35 = vadd.f32 %v2466_v31, %v2378_v29 }
 0x508   :  { %2896 = vst.msk [vmem:[%s6220_s5 + $0x618] sm:$0xff] %vm2706_vm1, %v4000_v32 }
 0x509   :  { %4001 = vtanh.f32 %v2467_v35 }
 0x50c   :  { %v2379_v18 = vpop.f32.mrf.mxu2 }
 0x50d   :  { %v2380_v21 = vadd.f32 %v2379_v18, %v5977_v55  ;;  %v2468_v38 = vpop.f32.mrf.mxu3 }
 0x50f   :  { %v4002_v39 = vpop.eup %4001  ;;  %v2469_v40 = vadd.f32 %v2468_v38, %v2380_v21 }
 0x510   :  { %2903 = vst.msk [vmem:[%s6220_s5 + $0x650] sm:$0xff] %vm2706_vm1, %v4002_v39 }
 0x511   :  { %4003 = vtanh.f32 %v2469_v40 }
 0x514   :  { %v2382_v53 = vpop.f32.mrf.mxu2 }
 0x515   :  { %v2383_v54 = vadd.f32 %v2382_v53, %v5977_v55  ;;  %v2471_v34 = vpop.f32.mrf.mxu3 }
 0x517   :  { %v4004_v36 = vpop.eup %4003  ;;  %v2472_v42 = vadd.f32 %v2471_v34, %v2383_v54 }
 0x518   :  { %2910 = vst.msk [vmem:[%s6220_s5 + $0x688] sm:$0xff] %vm2706_vm1, %v4004_v36 }
 0x519   :  { %4005 = vtanh.f32 %v2472_v42 }
 0x51c   :  { %v2384_v46 = vpop.f32.mrf.mxu2 }
 0x51d   :  { %v2385_v56 = vadd.f32 %v2384_v46, %v5977_v55  ;;  %v2473_v63 = vpop.f32.mrf.mxu3 }
 0x51f   :  { %v4006_v28 = vpop.eup %4005  ;;  %v2474_v30 = vadd.f32 %v2473_v63, %v2385_v56 }
 0x520   :  { %2917 = vst.msk [vmem:[%s6220_s5 + $0x6c0] sm:$0xff] %vm2706_vm1, %v4006_v28 }
 0x521   :  { %4007 = vtanh.f32 %v2474_v30 }
 0x527   :  { %v4008_v49 = vpop.eup %4007 }
 0x528   :  { %2924 = vst.msk [vmem:[%s6220_s5 + $0x6f8] sm:$0xff] %vm2706_vm1, %v4008_v49 }

</bundles_post_ra>
